<compile_context>
chip_gen: v7x
topology: tpu7x:2x2x1
jax: 0.10.0
libtpu: 0.0.40
codegen_flags: <defaults>
</compile_context>

<pallas_src>
import numpy as np

import jax
import jax.numpy as jnp
from jax import lax
from jax.experimental import pallas as pl
from jax.experimental.pallas import tpu as pltpu


# ---------------------------------------------------------------------------
# Static geometry (LeNet5 on 28x28 -> padded 32x32, flat-row layout, batch in lanes)
# ---------------------------------------------------------------------------
R_IN   = 33 * 32    # 1056 flat input rows per image (32x32 + 1 guard row of zeros)
R_C1   = 28 * 32    # 896 conv1 output rows: 28 heights x full width 32 (cols>=28 garbage)
R_P1   = 208        # pooled1 rows per channel: 14x14=196 real + 12 zero guard rows
R_C2S  = 144        # conv2 accumulator rows: 10x14=140 used (+4 guard), width-14 flat rows
R_P2   = 32         # pooled2 rows per channel: 5x5=25 real + 7 zero rows
N_FEAT = 16 * R_P2  # 512 flattened features (channel*32 + spatial, zero padded)
BT     = 128        # images per grid step (lane dimension)
CH1    = 128        # conv1 row chunk kept in registers while accumulating taps


# ---------------------------------------------------------------------------
# The fused kernel: one batch tile (128 images, lanes) per grid step
# ---------------------------------------------------------------------------
def _lenet5_kernel(x_ref, p1m_ref, p2m_ref,
                   fw1_ref, fb1_ref, fw2_ref, fb2_ref, fw3_ref, fb3_ref,
                   w1_ref, b1_ref, w2_ref, b2_ref, off2_ref,
                   o_ref, h1_ref, p1_ref, feat_ref):
    f32 = jnp.float32

    # ---- block1 + block2a: conv1 (1->6, 5x5) + ReLU + 2x2 avg-pool --------------
    def conv1_channel(co, carry):
        def chunk(c, carry2):
            c0 = c * CH1

            def taps(kh, acc):                       # accumulate 25 taps in registers
                base = c0 + kh * 32
                wb = co * 25 + kh * 5
                for kw in range(5):
                    acc = acc + x_ref[pl.ds(base + kw, CH1), :] * w1_ref[wb + kw]
                return acc

            acc = lax.fori_loop(0, 5, taps, jnp.zeros((CH1, BT), f32))
            dst = pl.multiple_of(c0, 8)
            h1_ref[pl.ds(dst, CH1), :] = jnp.maximum(acc + b1_ref[co], 0.0)
            return carry2

        lax.fori_loop(0, R_C1 // CH1, chunk, 0)
        # 2x2 average pool as one MXU matmul (also discards flat-row garbage columns).
        dst = pl.multiple_of(co * R_P1, 8)
        p1_ref[pl.ds(dst, R_P1), :] = jnp.dot(
            p1m_ref[...], h1_ref[...], preferred_element_type=f32)
        return carry

    lax.fori_loop(0, 6, conv1_channel, 0)

    # ---- block2b + block3a: conv2 (6->16, 5x5) + ReLU + 2x2 avg-pool ------------
    def conv2_channel(co, carry):
        def taps(t, acc):                            # t enumerates (ci, kh): 30 steps
            base = off2_ref[t]                       # ci*R_P1 + kh*14
            wb = co * 150 + t * 5                    # co*150 + ci*25 + kh*5
            for kw in range(5):
                acc = acc + p1_ref[pl.ds(base + kw, R_C2S), :] * w2_ref[wb + kw]
            return acc

        acc = lax.fori_loop(0, 30, taps, jnp.zeros((R_C2S, BT), f32))
        h2 = jnp.maximum(acc + b2_ref[co], 0.0)
        dst = pl.multiple_of(co * R_P2, 8)
        feat_ref[pl.ds(dst, R_P2), :] = jnp.dot(
            p2m_ref[...], h2, preferred_element_type=f32)
        return carry

    lax.fori_loop(0, 16, conv2_channel, 0)

    # ---- block3b..block5: fc1 -> ReLU -> fc2 -> ReLU -> fc3 (batch stays in lanes)
    h = jnp.dot(fw1_ref[...], feat_ref[...], preferred_element_type=f32) + fb1_ref[...]
    h = jnp.maximum(h, 0.0)
    h = jnp.dot(fw2_ref[...], h, preferred_element_type=f32) + fb2_ref[...]
    h = jnp.maximum(h, 0.0)
    o_ref[...] = jnp.dot(fw3_ref[...], h, preferred_element_type=f32) + fb3_ref[...]


def _lenet5_pallas(xT, packed):
    _, Bp = xT.shape
    grid = (Bp // BT,)
    vspec = lambda shape: pl.BlockSpec(shape, lambda i: (0, 0))
    sspec = pl.BlockSpec(memory_space=pltpu.MemorySpace.SMEM)
    return pl.pallas_call(
        _lenet5_kernel,
        out_shape=jax.ShapeDtypeStruct((128, Bp), jnp.float32),
        grid=grid,
        in_specs=[
            pl.BlockSpec((R_IN, BT), lambda i: (0, i)),   # input, batch tile in lanes
            vspec((R_P1, R_C1)),                          # pool1 matrix
            vspec((R_P2, R_C2S)),                         # pool2 matrix
            vspec((128, N_FEAT)), vspec((128, 1)),        # fc1 weight / bias (padded)
            vspec((128, 128)),    vspec((128, 1)),        # fc2 weight / bias
            vspec((128, 128)),    vspec((128, 1)),        # fc3 weight / bias
            sspec,                                        # conv1 weights (150,) f32
            sspec,                                        # conv1 bias (6,) f32
            sspec,                                        # conv2 weights (2400,) f32
            sspec,                                        # conv2 bias (16,) f32
            sspec,                                        # conv2 (ci,kh) offsets (30,) i32
        ],
        out_specs=pl.BlockSpec((128, BT), lambda i: (0, i)),
        scratch_shapes=[
            pltpu.VMEM((R_C1, BT), jnp.float32),          # h1: one conv1 channel
            pltpu.VMEM((6 * R_P1, BT), jnp.float32),      # pooled1: all 6 channels
            pltpu.VMEM((N_FEAT, BT), jnp.float32),        # pooled2 features (512, BT)
        ],
        compiler_params=pltpu.CompilerParams(
            dimension_semantics=("parallel",),            # shard batch tiles across TCs
            vmem_limit_bytes=32 * 1024 * 1024,
        ),
    )(xT, packed["pool1"], packed["pool2"],
      packed["fc1_w"], packed["fc1_b"], packed["fc2_w"], packed["fc2_b"],
      packed["fc3_w"], packed["fc3_b"],
      packed["conv1_w"], packed["conv1_b"], packed["conv2_w"], packed["conv2_b"],
      packed["off2"])


# ---------------------------------------------------------------------------
# One-time host-side packing (hoisted out of the per-call path)
# ---------------------------------------------------------------------------
def pack_params(params):
    cv1 = np.asarray(params["conv1_w"], np.float32).reshape(6, 25).reshape(-1)
    cb1 = np.asarray(params["conv1_b"], np.float32)
    cv2 = np.asarray(params["conv2_w"], np.float32).reshape(16, 150).reshape(-1)
    cb2 = np.asarray(params["conv2_b"], np.float32)
    off2 = np.array([ci * R_P1 + kh * 14 for ci in range(6) for kh in range(5)],
                    np.int32)

    # pool1: conv1 flat rows (h*32+w) -> pooled rows (ph*14+pw); guard rows stay zero.
    p1 = np.zeros((R_P1, R_C1), np.float32)
    for ph in range(14):
        for pw in range(14):
            for dh in (0, 1):
                for dw in (0, 1):
                    p1[ph * 14 + pw, (2 * ph + dh) * 32 + 2 * pw + dw] = 0.25
    # pool2: conv2 flat rows (oh*14+ow) -> pooled rows (qh*5+qw); rows 25..31 stay zero.
    p2 = np.zeros((R_P2, R_C2S), np.float32)
    for qh in range(5):
        for qw in range(5):
            for dh in (0, 1):
                for dw in (0, 1):
                    p2[qh * 5 + qw, (2 * qh + dh) * 14 + 2 * qw + dw] = 0.25

    # fc1: PyTorch flatten order is c*25+s; our feature rows are c*32+s (zero padded).
    fw1 = np.zeros((128, 16, R_P2), np.float32)
    fw1[:120, :, :25] = np.asarray(params["fc1_w"], np.float32).reshape(120, 16, 25)
    fw1 = fw1.reshape(128, N_FEAT)
    fb1 = np.zeros((128, 1), np.float32); fb1[:120, 0] = np.asarray(params["fc1_b"])
    fw2 = np.zeros((128, 128), np.float32); fw2[:84, :120] = np.asarray(params["fc2_w"])
    fb2 = np.zeros((128, 1), np.float32); fb2[:84, 0] = np.asarray(params["fc2_b"])
    fw3 = np.zeros((128, 128), np.float32); fw3[:10, :84] = np.asarray(params["fc3_w"])
    fb3 = np.zeros((128, 1), np.float32); fb3[:10, 0] = np.asarray(params["fc3_b"])

    return {k: jnp.asarray(v) for k, v in {
        "conv1_w": cv1, "conv1_b": cb1, "conv2_w": cv2, "conv2_b": cb2, "off2": off2,
        "pool1": p1, "pool2": p2,
        "fc1_w": fw1, "fc1_b": fb1, "fc2_w": fw2, "fc2_b": fb2,
        "fc3_w": fw3, "fc3_b": fb3,
    }.items()}


# ---------------------------------------------------------------------------
# Full LeNet5 forward (mirrors the SequentialBlockModel of block1..block5)
# ---------------------------------------------------------------------------
def lenet5_forward(packed, xs):
    x = xs.reshape(-1, 28, 28).astype(jnp.float32)
    B = x.shape[0]
    # F.pad(...,(2,2,2,2)) to 32x32, plus one zero guard row for the flat-shift trick.
    xpad = jnp.pad(x, ((0, 0), (2, 3), (2, 2)))         # (B, 33, 32)
    xflat = xpad.reshape(B, R_IN)
    Bp = ((B + BT - 1) // BT) * BT
    if Bp != B:
        xflat = jnp.pad(xflat, ((0, Bp - B), (0, 0)))
    out = _lenet5_pallas(xflat.T, packed)                # (128, Bp): batch in lanes
    return out[:10, :B].T                                # (B, 10)


# ---------------------------------------------------------------------------
# Parameters (deterministic, PyTorch-default-style uniform init)
# ---------------------------------------------------------------------------
def init_params(key):
    def uniform(k, shape, fan_in):
        bound = 1.0 / float(fan_in) ** 0.5
        return jax.random.uniform(k, shape, jnp.float32, -bound, bound)

    ks = jax.random.split(key, 10)
    return {
        "conv1_w": uniform(ks[0], (6, 1, 5, 5), 25),
        "conv1_b": uniform(ks[1], (6,), 25),
        "conv2_w": uniform(ks[2], (16, 6, 5, 5), 150),
        "conv2_b": uniform(ks[3], (16,), 150),
        "fc1_w": uniform(ks[4], (120, 400), 400),
        "fc1_b": uniform(ks[5], (120,), 400),
        "fc2_w": uniform(ks[6], (84, 120), 120),
        "fc2_b": uniform(ks[7], (84,), 120),
        "fc3_w": uniform(ks[8], (10, 84), 84),
        "fc3_b": uniform(ks[9], (10,), 84),
    }


# Pure-JAX reference (no Pallas) for a numerical cross-check.
def lenet5_reference(params, xs):
    x = xs.reshape(-1, 1, 28, 28).astype(jnp.float32)
    x = jnp.pad(x, ((0, 0), (0, 0), (2, 2), (2, 2)))
    dn = ("NCHW", "OIHW", "NCHW")
    x = jax.lax.conv_general_dilated(x, params["conv1_w"], (1, 1), "VALID",
                                     dimension_numbers=dn)
    x = jax.nn.relu(x + params["conv1_b"][None, :, None, None])
    x = x.reshape(x.shape[0], x.shape[1], 14, 2, 14, 2).mean(axis=(3, 5))
    x = jax.lax.conv_general_dilated(x, params["conv2_w"], (1, 1), "VALID",
                                     dimension_numbers=dn)
    x = jax.nn.relu(x + params["conv2_b"][None, :, None, None])
    x = x.reshape(x.shape[0], x.shape[1], 5, 2, 5, 2).mean(axis=(3, 5))
    x = x.reshape(x.shape[0], -1)
    x = jax.nn.relu(x @ params["fc1_w"].T + params["fc1_b"])
    x = jax.nn.relu(x @ params["fc2_w"].T + params["fc2_b"])
    return x @ params["fc3_w"].T + params["fc3_b"]


if __name__ == "__main__":
    key = jax.random.PRNGKey(0)
    pkey, xkey = jax.random.split(key)
    params = init_params(pkey)
    packed = pack_params(params)                          # one-time packing, outside jit
    xs = jax.random.normal(xkey, (2, 784), jnp.float32)   # batch=2 flat MNIST-like inputs

    fwd = jax.jit(lenet5_forward)
    out = jax.block_until_ready(fwd(packed, xs))
    assert out.shape == (2, 10) and out.dtype == jnp.float32

    ref = jax.block_until_ready(lenet5_reference(params, xs))
    assert jnp.allclose(out, ref, atol=1e-3, rtol=1e-3), "Pallas output mismatch vs reference"

    print("KERNEL_OK")
</pallas_src>

<mosaic_0001>
module attributes {stable_mosaic.version = 11 : i64} {
  func.func @_lenet5_kernel(%arg0: i32, %arg1: memref<1056x128xf32, #tpu.memory_space<vmem>>, %arg2: memref<208x896xf32, #tpu.memory_space<vmem>>, %arg3: memref<32x144xf32, #tpu.memory_space<vmem>>, %arg4: memref<128x512xf32, #tpu.memory_space<vmem>>, %arg5: memref<128x1xf32, #tpu.memory_space<vmem>>, %arg6: memref<128x128xf32, #tpu.memory_space<vmem>>, %arg7: memref<128x1xf32, #tpu.memory_space<vmem>>, %arg8: memref<128x128xf32, #tpu.memory_space<vmem>>, %arg9: memref<128x1xf32, #tpu.memory_space<vmem>>, %arg10: memref<150xf32, #tpu.memory_space<smem>>, %arg11: memref<6xf32, #tpu.memory_space<smem>>, %arg12: memref<2400xf32, #tpu.memory_space<smem>>, %arg13: memref<16xf32, #tpu.memory_space<smem>>, %arg14: memref<30xi32, #tpu.memory_space<smem>>, %arg15: memref<128x128xf32, #tpu.memory_space<vmem>>, %arg16: memref<896x128xf32, #tpu.memory_space<vmem>>, %arg17: memref<1248x128xf32, #tpu.memory_space<vmem>>, %arg18: memref<512x128xf32, #tpu.memory_space<vmem>>) attributes {dimension_semantics = [#tpu.dimension_semantics<parallel>], iteration_bounds = array<i64: 1>, scalar_prefetch = 0 : i64, scratch_operands = 3 : i64, tpu.core_type = #tpu.core_type<tc>, window_params = [{transform_indices = @transform_0, window_bounds = array<i64: 1056, 128>}, {pipeline_mode = #tpu.pipeline_mode<synchronous>, transform_indices = @transform_1, window_bounds = array<i64: 208, 896>}, {pipeline_mode = #tpu.pipeline_mode<synchronous>, transform_indices = @transform_2, window_bounds = array<i64: 32, 144>}, {pipeline_mode = #tpu.pipeline_mode<synchronous>, transform_indices = @transform_3, window_bounds = array<i64: 128, 512>}, {pipeline_mode = #tpu.pipeline_mode<synchronous>, transform_indices = @transform_4, window_bounds = array<i64: 128, 1>}, {pipeline_mode = #tpu.pipeline_mode<synchronous>, transform_indices = @transform_5, window_bounds = array<i64: 128, 128>}, {pipeline_mode = #tpu.pipeline_mode<synchronous>, transform_indices = @transform_6, window_bounds = array<i64: 128, 1>}, {pipeline_mode = #tpu.pipeline_mode<synchronous>, transform_indices = @transform_7, window_bounds = array<i64: 128, 128>}, {pipeline_mode = #tpu.pipeline_mode<synchronous>, transform_indices = @transform_8, window_bounds = array<i64: 128, 1>}, {transform_indices = @transform_9, window_bounds = array<i64: 150>}, {transform_indices = @transform_10, window_bounds = array<i64: 6>}, {transform_indices = @transform_11, window_bounds = array<i64: 2400>}, {transform_indices = @transform_12, window_bounds = array<i64: 16>}, {transform_indices = @transform_13, window_bounds = array<i64: 30>}, {transform_indices = @transform_14, window_bounds = array<i64: 128, 128>}]} {
    %c0_i32 = arith.constant 0 : i32
    %c6_i32 = arith.constant 6 : i32
    %0 = arith.addi %c0_i32, %c6_i32 : i32
    %c1_i32 = arith.constant 1 : i32
    scf.for %arg19 = %c0_i32 to %0 step %c1_i32  : i32 {
      %c0_i32_23 = arith.constant 0 : i32
      %c7_i32 = arith.constant 7 : i32
      %23 = arith.addi %c0_i32_23, %c7_i32 : i32
      %c1_i32_24 = arith.constant 1 : i32
      scf.for %arg20 = %c0_i32_23 to %23 step %c1_i32_24  : i32 {
        %c128_i32 = arith.constant 128 : i32
        %31 = arith.muli %arg20, %c128_i32 : i32
        %cst_32 = arith.constant 0.000000e+00 : f32
        %32 = vector.broadcast %cst_32 : f32 to vector<128x128xf32>
        %c0_i32_33 = arith.constant 0 : i32
        %c5_i32 = arith.constant 5 : i32
        %33 = arith.addi %c0_i32_33, %c5_i32 : i32
        %c1_i32_34 = arith.constant 1 : i32
        %34 = scf.for %arg21 = %c0_i32_33 to %33 step %c1_i32_34 iter_args(%arg22 = %32) -> (vector<128x128xf32>)  : i32 {
          %c32_i32 = arith.constant 32 : i32
          %44 = arith.muli %arg21, %c32_i32 : i32
          %45 = arith.addi %31, %44 : i32
          %c25_i32 = arith.constant 25 : i32
          %46 = arith.muli %arg19, %c25_i32 : i32
          %c5_i32_38 = arith.constant 5 : i32
          %47 = arith.muli %arg21, %c5_i32_38 : i32
          %48 = arith.addi %46, %47 : i32
          %c0_i32_39 = arith.constant 0 : i32
          %49 = arith.addi %45, %c0_i32_39 : i32
          %50 = arith.index_cast %49 : i32 to index
          %c0_40 = arith.constant 0 : index
          %51 = vector.load %arg1[%50, %c0_40] : memref<1056x128xf32, #tpu.memory_space<vmem>>, vector<128x128xf32>
          %c0_i32_41 = arith.constant 0 : i32
          %52 = arith.addi %48, %c0_i32_41 : i32
          %53 = arith.index_cast %52 : i32 to index
          %54 = memref.load %arg10[%53] : memref<150xf32, #tpu.memory_space<smem>>
          %55 = vector.broadcast %54 : f32 to vector<128x128xf32>
          %56 = arith.mulf %51, %55 : vector<128x128xf32>
          %57 = arith.addf %arg22, %56 : vector<128x128xf32>
          %c1_i32_42 = arith.constant 1 : i32
          %58 = arith.addi %45, %c1_i32_42 : i32
          %59 = arith.index_cast %58 : i32 to index
          %c0_43 = arith.constant 0 : index
          %60 = vector.load %arg1[%59, %c0_43] : memref<1056x128xf32, #tpu.memory_space<vmem>>, vector<128x128xf32>
          %c1_i32_44 = arith.constant 1 : i32
          %61 = arith.addi %48, %c1_i32_44 : i32
          %62 = arith.index_cast %61 : i32 to index
          %63 = memref.load %arg10[%62] : memref<150xf32, #tpu.memory_space<smem>>
          %64 = vector.broadcast %63 : f32 to vector<128x128xf32>
          %65 = arith.mulf %60, %64 : vector<128x128xf32>
          %66 = arith.addf %57, %65 : vector<128x128xf32>
          %c2_i32 = arith.constant 2 : i32
          %67 = arith.addi %45, %c2_i32 : i32
          %68 = arith.index_cast %67 : i32 to index
          %c0_45 = arith.constant 0 : index
          %69 = vector.load %arg1[%68, %c0_45] : memref<1056x128xf32, #tpu.memory_space<vmem>>, vector<128x128xf32>
          %c2_i32_46 = arith.constant 2 : i32
          %70 = arith.addi %48, %c2_i32_46 : i32
          %71 = arith.index_cast %70 : i32 to index
          %72 = memref.load %arg10[%71] : memref<150xf32, #tpu.memory_space<smem>>
          %73 = vector.broadcast %72 : f32 to vector<128x128xf32>
          %74 = arith.mulf %69, %73 : vector<128x128xf32>
          %75 = arith.addf %66, %74 : vector<128x128xf32>
          %c3_i32 = arith.constant 3 : i32
          %76 = arith.addi %45, %c3_i32 : i32
          %77 = arith.index_cast %76 : i32 to index
          %c0_47 = arith.constant 0 : index
          %78 = vector.load %arg1[%77, %c0_47] : memref<1056x128xf32, #tpu.memory_space<vmem>>, vector<128x128xf32>
          %c3_i32_48 = arith.constant 3 : i32
          %79 = arith.addi %48, %c3_i32_48 : i32
          %80 = arith.index_cast %79 : i32 to index
          %81 = memref.load %arg10[%80] : memref<150xf32, #tpu.memory_space<smem>>
          %82 = vector.broadcast %81 : f32 to vector<128x128xf32>
          %83 = arith.mulf %78, %82 : vector<128x128xf32>
          %84 = arith.addf %75, %83 : vector<128x128xf32>
          %c4_i32 = arith.constant 4 : i32
          %85 = arith.addi %45, %c4_i32 : i32
          %86 = arith.index_cast %85 : i32 to index
          %c0_49 = arith.constant 0 : index
          %87 = vector.load %arg1[%86, %c0_49] : memref<1056x128xf32, #tpu.memory_space<vmem>>, vector<128x128xf32>
          %c4_i32_50 = arith.constant 4 : i32
          %88 = arith.addi %48, %c4_i32_50 : i32
          %89 = arith.index_cast %88 : i32 to index
          %90 = memref.load %arg10[%89] : memref<150xf32, #tpu.memory_space<smem>>
          %91 = vector.broadcast %90 : f32 to vector<128x128xf32>
          %92 = arith.mulf %87, %91 : vector<128x128xf32>
          %93 = arith.addf %84, %92 : vector<128x128xf32>
          scf.yield %93 : vector<128x128xf32>
        }
        %c5_i32_35 = arith.constant 5 : i32
        %35 = tpu.assume_multiple %31, 8 : i32
        %36 = arith.index_cast %arg19 : i32 to index
        %37 = memref.load %arg11[%36] : memref<6xf32, #tpu.memory_space<smem>>
        %38 = vector.broadcast %37 : f32 to vector<128x128xf32>
        %39 = arith.addf %34, %38 : vector<128x128xf32>
        %cst_36 = arith.constant 0.000000e+00 : f32
        %40 = vector.broadcast %cst_36 : f32 to vector<128x128xf32>
        %41 = arith.maximumf %39, %40 : vector<128x128xf32>
        %42 = arith.index_cast %35 : i32 to index
        %c0_37 = arith.constant 0 : index
        %43 = vector.load %arg16[%42, %c0_37] : memref<896x128xf32, #tpu.memory_space<vmem>>, vector<128x128xf32>
        tpu.vector_store %arg16[%42, %c0_37], %41 {strides = array<i32>} : memref<896x128xf32, #tpu.memory_space<vmem>>, vector<128x128xf32>,
      }
      %c7_i32_25 = arith.constant 7 : i32
      %c208_i32 = arith.constant 208 : i32
      %24 = arith.muli %arg19, %c208_i32 : i32
      %25 = tpu.assume_multiple %24, 8 : i32
      %c0_26 = arith.constant 0 : index
      %c0_27 = arith.constant 0 : index
      %26 = vector.load %arg2[%c0_26, %c0_27] : memref<208x896xf32, #tpu.memory_space<vmem>>, vector<208x896xf32>
      %c0_28 = arith.constant 0 : index
      %c0_29 = arith.constant 0 : index
      %27 = vector.load %arg16[%c0_28, %c0_29] : memref<896x128xf32, #tpu.memory_space<vmem>>, vector<896x128xf32>
      %cst_30 = arith.constant dense<0.000000e+00> : vector<208x128xf32>
      %28 = tpu.matmul %26, %27, %cst_30 {dimension_numbers = #tpu.dot_dimension_numbers<[1], [0], [0], [1], [0, 0, 1, 1], [], []>} : vector<208x896xf32>, vector<896x128xf32>, vector<208x128xf32> -> vector<208x128xf32>
      %29 = arith.index_cast %25 : i32 to index
      %c0_31 = arith.constant 0 : index
      %30 = vector.load %arg17[%29, %c0_31] : memref<1248x128xf32, #tpu.memory_space<vmem>>, vector<208x128xf32>
      tpu.vector_store %arg17[%29, %c0_31], %28 {strides = array<i32>} : memref<1248x128xf32, #tpu.memory_space<vmem>>, vector<208x128xf32>,
    }
    %c6_i32_0 = arith.constant 6 : i32
    %c0_i32_1 = arith.constant 0 : i32
    %c16_i32 = arith.constant 16 : i32
    %1 = arith.addi %c0_i32_1, %c16_i32 : i32
    %c1_i32_2 = arith.constant 1 : i32
    scf.for %arg19 = %c0_i32_1 to %1 step %c1_i32_2  : i32 {
      %cst_23 = arith.constant 0.000000e+00 : f32
      %23 = vector.broadcast %cst_23 : f32 to vector<144x128xf32>
      %c0_i32_24 = arith.constant 0 : i32
      %c30_i32 = arith.constant 30 : i32
      %24 = arith.addi %c0_i32_24, %c30_i32 : i32
      %c1_i32_25 = arith.constant 1 : i32
      %25 = scf.for %arg20 = %c0_i32_24 to %24 step %c1_i32_25 iter_args(%arg21 = %23) -> (vector<144x128xf32>)  : i32 {
        %38 = arith.index_cast %arg20 : i32 to index
        %39 = memref.load %arg14[%38] : memref<30xi32, #tpu.memory_space<smem>>
        %c150_i32 = arith.constant 150 : i32
        %40 = arith.muli %arg19, %c150_i32 : i32
        %c5_i32 = arith.constant 5 : i32
        %41 = arith.muli %arg20, %c5_i32 : i32
        %42 = arith.addi %40, %41 : i32
        %c0_i32_32 = arith.constant 0 : i32
        %43 = arith.addi %39, %c0_i32_32 : i32
        %44 = arith.index_cast %43 : i32 to index
        %c0_33 = arith.constant 0 : index
        %45 = vector.load %arg17[%44, %c0_33] : memref<1248x128xf32, #tpu.memory_space<vmem>>, vector<144x128xf32>
        %c0_i32_34 = arith.constant 0 : i32
        %46 = arith.addi %42, %c0_i32_34 : i32
        %47 = arith.index_cast %46 : i32 to index
        %48 = memref.load %arg12[%47] : memref<2400xf32, #tpu.memory_space<smem>>
        %49 = vector.broadcast %48 : f32 to vector<144x128xf32>
        %50 = arith.mulf %45, %49 : vector<144x128xf32>
        %51 = arith.addf %arg21, %50 : vector<144x128xf32>
        %c1_i32_35 = arith.constant 1 : i32
        %52 = arith.addi %39, %c1_i32_35 : i32
        %53 = arith.index_cast %52 : i32 to index
        %c0_36 = arith.constant 0 : index
        %54 = vector.load %arg17[%53, %c0_36] : memref<1248x128xf32, #tpu.memory_space<vmem>>, vector<144x128xf32>
        %c1_i32_37 = arith.constant 1 : i32
        %55 = arith.addi %42, %c1_i32_37 : i32
        %56 = arith.index_cast %55 : i32 to index
        %57 = memref.load %arg12[%56] : memref<2400xf32, #tpu.memory_space<smem>>
        %58 = vector.broadcast %57 : f32 to vector<144x128xf32>
        %59 = arith.mulf %54, %58 : vector<144x128xf32>
        %60 = arith.addf %51, %59 : vector<144x128xf32>
        %c2_i32 = arith.constant 2 : i32
        %61 = arith.addi %39, %c2_i32 : i32
        %62 = arith.index_cast %61 : i32 to index
        %c0_38 = arith.constant 0 : index
        %63 = vector.load %arg17[%62, %c0_38] : memref<1248x128xf32, #tpu.memory_space<vmem>>, vector<144x128xf32>
        %c2_i32_39 = arith.constant 2 : i32
        %64 = arith.addi %42, %c2_i32_39 : i32
        %65 = arith.index_cast %64 : i32 to index
        %66 = memref.load %arg12[%65] : memref<2400xf32, #tpu.memory_space<smem>>
        %67 = vector.broadcast %66 : f32 to vector<144x128xf32>
        %68 = arith.mulf %63, %67 : vector<144x128xf32>
        %69 = arith.addf %60, %68 : vector<144x128xf32>
        %c3_i32 = arith.constant 3 : i32
        %70 = arith.addi %39, %c3_i32 : i32
        %71 = arith.index_cast %70 : i32 to index
        %c0_40 = arith.constant 0 : index
        %72 = vector.load %arg17[%71, %c0_40] : memref<1248x128xf32, #tpu.memory_space<vmem>>, vector<144x128xf32>
        %c3_i32_41 = arith.constant 3 : i32
        %73 = arith.addi %42, %c3_i32_41 : i32
        %74 = arith.index_cast %73 : i32 to index
        %75 = memref.load %arg12[%74] : memref<2400xf32, #tpu.memory_space<smem>>
        %76 = vector.broadcast %75 : f32 to vector<144x128xf32>
        %77 = arith.mulf %72, %76 : vector<144x128xf32>
        %78 = arith.addf %69, %77 : vector<144x128xf32>
        %c4_i32 = arith.constant 4 : i32
        %79 = arith.addi %39, %c4_i32 : i32
        %80 = arith.index_cast %79 : i32 to index
        %c0_42 = arith.constant 0 : index
        %81 = vector.load %arg17[%80, %c0_42] : memref<1248x128xf32, #tpu.memory_space<vmem>>, vector<144x128xf32>
        %c4_i32_43 = arith.constant 4 : i32
        %82 = arith.addi %42, %c4_i32_43 : i32
        %83 = arith.index_cast %82 : i32 to index
        %84 = memref.load %arg12[%83] : memref<2400xf32, #tpu.memory_space<smem>>
        %85 = vector.broadcast %84 : f32 to vector<144x128xf32>
        %86 = arith.mulf %81, %85 : vector<144x128xf32>
        %87 = arith.addf %78, %86 : vector<144x128xf32>
        scf.yield %87 : vector<144x128xf32>
      }
      %c30_i32_26 = arith.constant 30 : i32
      %26 = arith.index_cast %arg19 : i32 to index
      %27 = memref.load %arg13[%26] : memref<16xf32, #tpu.memory_space<smem>>
      %28 = vector.broadcast %27 : f32 to vector<144x128xf32>
      %29 = arith.addf %25, %28 : vector<144x128xf32>
      %cst_27 = arith.constant 0.000000e+00 : f32
      %30 = vector.broadcast %cst_27 : f32 to vector<144x128xf32>
      %31 = arith.maximumf %29, %30 : vector<144x128xf32>
      %c32_i32 = arith.constant 32 : i32
      %32 = arith.muli %arg19, %c32_i32 : i32
      %33 = tpu.assume_multiple %32, 8 : i32
      %c0_28 = arith.constant 0 : index
      %c0_29 = arith.constant 0 : index
      %34 = vector.load %arg3[%c0_28, %c0_29] : memref<32x144xf32, #tpu.memory_space<vmem>>, vector<32x144xf32>
      %cst_30 = arith.constant dense<0.000000e+00> : vector<32x128xf32>
      %35 = tpu.matmul %34, %31, %cst_30 {dimension_numbers = #tpu.dot_dimension_numbers<[1], [0], [0], [1], [0, 0, 1, 1], [], []>} : vector<32x144xf32>, vector<144x128xf32>, vector<32x128xf32> -> vector<32x128xf32>
      %36 = arith.index_cast %33 : i32 to index
      %c0_31 = arith.constant 0 : index
      %37 = vector.load %arg18[%36, %c0_31] : memref<512x128xf32, #tpu.memory_space<vmem>>, vector<32x128xf32>
      tpu.vector_store %arg18[%36, %c0_31], %35 {strides = array<i32>} : memref<512x128xf32, #tpu.memory_space<vmem>>, vector<32x128xf32>,
    }
    %c16_i32_3 = arith.constant 16 : i32
    %c0 = arith.constant 0 : index
    %c0_4 = arith.constant 0 : index
    %2 = vector.load %arg4[%c0, %c0_4] : memref<128x512xf32, #tpu.memory_space<vmem>>, vector<128x512xf32>
    %c0_5 = arith.constant 0 : index
    %c0_6 = arith.constant 0 : index
    %3 = vector.load %arg18[%c0_5, %c0_6] : memref<512x128xf32, #tpu.memory_space<vmem>>, vector<512x128xf32>
    %cst = arith.constant dense<0.000000e+00> : vector<128x128xf32>
    %4 = tpu.matmul %2, %3, %cst {dimension_numbers = #tpu.dot_dimension_numbers<[1], [0], [0], [1], [0, 0, 1, 1], [], []>} : vector<128x512xf32>, vector<512x128xf32>, vector<128x128xf32> -> vector<128x128xf32>
    %c0_7 = arith.constant 0 : index
    %c0_8 = arith.constant 0 : index
    %5 = vector.load %arg5[%c0_7, %c0_8] : memref<128x1xf32, #tpu.memory_space<vmem>>, vector<128x1xf32>
    %6 = vector.broadcast %5 : vector<128x1xf32> to vector<128x128xf32>
    %7 = arith.addf %4, %6 : vector<128x128xf32>
    %cst_9 = arith.constant 0.000000e+00 : f32
    %8 = vector.broadcast %cst_9 : f32 to vector<128x128xf32>
    %9 = arith.maximumf %7, %8 : vector<128x128xf32>
    %c0_10 = arith.constant 0 : index
    %c0_11 = arith.constant 0 : index
    %10 = vector.load %arg6[%c0_10, %c0_11] : memref<128x128xf32, #tpu.memory_space<vmem>>, vector<128x128xf32>
    %cst_12 = arith.constant dense<0.000000e+00> : vector<128x128xf32>
    %11 = tpu.matmul %10, %9, %cst_12 {dimension_numbers = #tpu.dot_dimension_numbers<[1], [0], [0], [1], [0, 0, 1, 1], [], []>} : vector<128x128xf32>, vector<128x128xf32>, vector<128x128xf32> -> vector<128x128xf32>
    %c0_13 = arith.constant 0 : index
    %c0_14 = arith.constant 0 : index
    %12 = vector.load %arg7[%c0_13, %c0_14] : memref<128x1xf32, #tpu.memory_space<vmem>>, vector<128x1xf32>
    %13 = vector.broadcast %12 : vector<128x1xf32> to vector<128x128xf32>
    %14 = arith.addf %11, %13 : vector<128x128xf32>
    %cst_15 = arith.constant 0.000000e+00 : f32
    %15 = vector.broadcast %cst_15 : f32 to vector<128x128xf32>
    %16 = arith.maximumf %14, %15 : vector<128x128xf32>
    %c0_16 = arith.constant 0 : index
    %c0_17 = arith.constant 0 : index
    %17 = vector.load %arg8[%c0_16, %c0_17] : memref<128x128xf32, #tpu.memory_space<vmem>>, vector<128x128xf32>
    %cst_18 = arith.constant dense<0.000000e+00> : vector<128x128xf32>
    %18 = tpu.matmul %17, %16, %cst_18 {dimension_numbers = #tpu.dot_dimension_numbers<[1], [0], [0], [1], [0, 0, 1, 1], [], []>} : vector<128x128xf32>, vector<128x128xf32>, vector<128x128xf32> -> vector<128x128xf32>
    %c0_19 = arith.constant 0 : index
    %c0_20 = arith.constant 0 : index
    %19 = vector.load %arg9[%c0_19, %c0_20] : memref<128x1xf32, #tpu.memory_space<vmem>>, vector<128x1xf32>
    %20 = vector.broadcast %19 : vector<128x1xf32> to vector<128x128xf32>
    %21 = arith.addf %18, %20 : vector<128x128xf32>
    %c0_21 = arith.constant 0 : index
    %c0_22 = arith.constant 0 : index
    %22 = vector.load %arg15[%c0_21, %c0_22] : memref<128x128xf32, #tpu.memory_space<vmem>>, vector<128x128xf32>
    tpu.vector_store %arg15[%c0_21, %c0_22], %21 {strides = array<i32>} : memref<128x128xf32, #tpu.memory_space<vmem>>, vector<128x128xf32>,
    return
  }
  func.func @transform_0(%arg0: i32) -> (i32, i32) {
    %c0_i32 = arith.constant 0 : i32
    %c0_i32_0 = arith.constant 0 : i32
    return %c0_i32, %arg0 : i32, i32
  }
  func.func @transform_1(%arg0: i32) -> (i32, i32) {
    %c0_i32 = arith.constant 0 : i32
    %c0_i32_0 = arith.constant 0 : i32
    %c0_i32_1 = arith.constant 0 : i32
    return %c0_i32, %c0_i32_0 : i32, i32
  }
  func.func @transform_2(%arg0: i32) -> (i32, i32) {
    %c0_i32 = arith.constant 0 : i32
    %c0_i32_0 = arith.constant 0 : i32
    %c0_i32_1 = arith.constant 0 : i32
    return %c0_i32, %c0_i32_0 : i32, i32
  }
  func.func @transform_3(%arg0: i32) -> (i32, i32) {
    %c0_i32 = arith.constant 0 : i32
    %c0_i32_0 = arith.constant 0 : i32
    %c0_i32_1 = arith.constant 0 : i32
    return %c0_i32, %c0_i32_0 : i32, i32
  }
  func.func @transform_4(%arg0: i32) -> (i32, i32) {
    %c0_i32 = arith.constant 0 : i32
    %c0_i32_0 = arith.constant 0 : i32
    %c0_i32_1 = arith.constant 0 : i32
    return %c0_i32, %c0_i32_0 : i32, i32
  }
  func.func @transform_5(%arg0: i32) -> (i32, i32) {
    %c0_i32 = arith.constant 0 : i32
    %c0_i32_0 = arith.constant 0 : i32
    %c0_i32_1 = arith.constant 0 : i32
    return %c0_i32, %c0_i32_0 : i32, i32
  }
  func.func @transform_6(%arg0: i32) -> (i32, i32) {
    %c0_i32 = arith.constant 0 : i32
    %c0_i32_0 = arith.constant 0 : i32
    %c0_i32_1 = arith.constant 0 : i32
    return %c0_i32, %c0_i32_0 : i32, i32
  }
  func.func @transform_7(%arg0: i32) -> (i32, i32) {
    %c0_i32 = arith.constant 0 : i32
    %c0_i32_0 = arith.constant 0 : i32
    %c0_i32_1 = arith.constant 0 : i32
    return %c0_i32, %c0_i32_0 : i32, i32
  }
  func.func @transform_8(%arg0: i32) -> (i32, i32) {
    %c0_i32 = arith.constant 0 : i32
    %c0_i32_0 = arith.constant 0 : i32
    %c0_i32_1 = arith.constant 0 : i32
    return %c0_i32, %c0_i32_0 : i32, i32
  }
  func.func @transform_9(%arg0: i32) -> i32 {
    %c0_i32 = arith.constant 0 : i32
    %c0_i32_0 = arith.constant 0 : i32
    return %c0_i32 : i32
  }
  func.func @transform_10(%arg0: i32) -> i32 {
    %c0_i32 = arith.constant 0 : i32
    %c0_i32_0 = arith.constant 0 : i32
    return %c0_i32 : i32
  }
  func.func @transform_11(%arg0: i32) -> i32 {
    %c0_i32 = arith.constant 0 : i32
    %c0_i32_0 = arith.constant 0 : i32
    return %c0_i32 : i32
  }
  func.func @transform_12(%arg0: i32) -> i32 {
    %c0_i32 = arith.constant 0 : i32
    %c0_i32_0 = arith.constant 0 : i32
    return %c0_i32 : i32
  }
  func.func @transform_13(%arg0: i32) -> i32 {
    %c0_i32 = arith.constant 0 : i32
    %c0_i32_0 = arith.constant 0 : i32
    return %c0_i32 : i32
  }
  func.func @transform_14(%arg0: i32) -> (i32, i32) {
    %c0_i32 = arith.constant 0 : i32
    %c0_i32_0 = arith.constant 0 : i32
    return %c0_i32, %arg0 : i32, i32
  }
}

</mosaic_0001>

<bundles_post_ra>
// kernel: lenet5_forward.1
= control target key start
LH: loop header
LB: loop body
LE: loop exit
PB: predicated region body
PF: predicated region fallthrough
CT: control target
= control target key end

     0   :  { %19 = vsyncpa [#allocation6], 0  ;;  %s7113_s0 = inlined_call_operand.vmem [shape: f32[1056,128], index: 0, kind: input, shape index: {}]   ;;  %s7114_s1 = inlined_call_operand.vmem [shape: f32[208,896], index: 1, kind: input, shape index: {}]   ;;  %s7115_s2 = inlined_call_operand.vmem [shape: f32[32,144], index: 2, kind: input, shape index: {}]   ;;  %s7116_s3 = inlined_call_operand.vmem [shape: f32[128,512], index: 3, kind: input, shape index: {}]   ;;  %s7117_s4 = inlined_call_operand.vmem [shape: f32[128,1], index: 4, kind: input, shape index: {}]   ;;  %s7118_s5 = inlined_call_operand.vmem [shape: f32[128,128], index: 5, kind: input, shape index: {}]   ;;  %s7119_s6 = inlined_call_operand.vmem [shape: f32[128,1], index: 6, kind: input, shape index: {}]   ;;  %s7120_s7 = inlined_call_operand.vmem [shape: f32[128,128], index: 7, kind: input, shape index: {}]   ;;  %s7121_s8 = inlined_call_operand.vmem [shape: f32[128,1], index: 8, kind: input, shape index: {}]   ;;  %s7122_s9 = inlined_call_operand.vmem [shape: f32[150], index: 9, kind: input, shape index: {}]   ;;  %s7123_s10 = inlined_call_operand.vmem [shape: f32[6], index: 10, kind: input, shape index: {}]   ;;  %s7124_s11 = inlined_call_operand.vmem [shape: f32[2400], index: 11, kind: input, shape index: {}]   ;;  %s7125_s12 = inlined_call_operand.vmem [shape: f32[16], index: 12, kind: input, shape index: {}]   ;;  %s7126_s13 = inlined_call_operand.vmem [shape: s32[30], index: 13, kind: input, shape index: {}]   ;;  %s7127_s14 = inlined_call_operand.vmem [shape: f32[128,128], index: 14, kind: output, shape index: {}]  }
   0x1   :  { %20 = vsyncpa [#allocation8], 0  ;;  %s56_s15 = sshll.u32 %s7123_s10, 4  ;;  %s57_s15 = int_to_ptr.vmem [resolvable:$true] %s56_s15 }
   0x2   :  { %21 = vsyncpa [#allocation11], 0  ;;  %s76_s18 = sshll.u32 %s7125_s12, 4  ;;  %s4685_s19 = scalar_lea.vmem %s57_s15, 16  ;;  %s77_s18 = int_to_ptr.vmem [resolvable:$true] %s76_s18 }
   0x3   :  { %p4686_p0 = scmp.ne.s32.totalorder %s57_s15, %s4685_s19  ;;  %p4690_p1 = scmp.lt.s32.totalorder %s57_s15, %s57_s15 }
   0x4   :  { %p4691_p2 = scmp.lt.s32.totalorder %s4685_s19, %s4685_s19 }
   0x6   :  { %p4692_p3 = por %p4691_p2, %p4690_p1 }
   0x8   :  { %p4693_p4 = pnand %p4692_p3, %p4686_p0 }
   0xa   :  { %4696 = shalt.err (!%p4693_p4)
}
   0xb   :  { %s5063_s20 = smov [#allocation7]   ;;  %s4697_s21 = scalar_lea.vmem %s77_s18, 16 }
   0xc   :  { %59 = dma.vmem_to_smem %s57_s15, 16, %s5063_s20, [#allocation8]  }
   0xd   :  { %p4698_p5 = scmp.ne.s32.totalorder %s77_s18, %s4697_s21  ;;  %p4702_p6 = scmp.lt.s32.totalorder %s77_s18, %s77_s18 }
   0xe   :  { %p4703_p7 = scmp.lt.s32.totalorder %s4697_s21, %s4697_s21 }
  0x10   :  { %p4704_p8 = por %p4703_p7, %p4702_p6 }
  0x12   :  { %p4705_p9 = pnand %p4704_p8, %p4698_p5 }
  0x14   :  { %4708 = shalt.err (!%p4705_p9)
}
  0x15   :  { %s5064_s10 = smov [#allocation10]   ;;  %s46_s23 = sshll.u32 %s7122_s9, 4  ;;  %s47_s23 = int_to_ptr.vmem [resolvable:$true] %s46_s23 }
  0x16   :  { %79 = dma.vmem_to_smem %s77_s18, 16, %s5064_s10, [#allocation11]  }
  0x17   :  { %s66_s26 = sshll.u32 %s7124_s11, 4  ;;  %s4709_s27 = scalar_lea.vmem %s47_s23, 32  ;;  %s67_s26 = int_to_ptr.vmem [resolvable:$true] %s66_s26 }
  0x18   :  { %p4710_p10 = scmp.ne.s32.totalorder %s47_s23, %s4709_s27  ;;  %p4714_p11 = scmp.lt.s32.totalorder %s47_s23, %s47_s23 }
  0x19   :  { %p4715_p12 = scmp.lt.s32.totalorder %s4709_s27, %s4709_s27 }
  0x1b   :  { %p4716_p13 = por %p4715_p12, %p4714_p11 }
  0x1d   :  { %p4717_p0 = pnand %p4716_p13, %p4710_p10 }
  0x1f   :  { %4720 = shalt.err (!%p4717_p0)
}
  0x20   :  { %s5065_s28 = smov [#allocation5]   ;;  %s4721_s29 = scalar_lea.vmem %s67_s26, 304 }
  0x21   :  { %49 = dma.vmem_to_smem %s47_s23, 32, %s5065_s28, [#allocation6]  }
  0x22   :  { %p4722_p1 = scmp.ne.s32.totalorder %s67_s26, %s4721_s29  ;;  %s4725_s30 = scalar_lea.vmem %s67_s26, 384 }
  0x23   :  { %p4726_p2 = scmp.lt.s32.totalorder %s67_s26, %s67_s26  ;;  %p4727_p3 = scmp.lt.s32.totalorder %s4725_s30, %s4721_s29 }
  0x25   :  { %p4728_p4 = por %p4727_p3, %p4726_p2 }
  0x27   :  { %p4729_p5 = pnand %p4728_p4, %p4722_p1 }
  0x29   :  { %4732 = shalt.err (!%p4729_p5)
}
  0x2a   :  { %s5066_s9 = smov [#allocation9]   ;;  %s86_s16 = sshll.u32 %s7126_s13, 4  ;;  %s87_s16 = int_to_ptr.vmem [resolvable:$true] %s86_s16 }
  0x2b   :  { %69 = dma.vmem_to_smem %s67_s26, 304, %s5066_s9, [#allocation8]  }
  0x2c   :  { %s4733_s17 = scalar_lea.vmem %s87_s16, 16  ;;  %p4738_p7 = scmp.lt.s32.totalorder %s87_s16, %s87_s16 }
  0x2d   :  { %p4734_p6 = scmp.ne.s32.totalorder %s87_s16, %s4733_s17  ;;  %p4739_p8 = scmp.lt.s32.totalorder %s4733_s17, %s4733_s17 }
  0x2f   :  { %p4740_p9 = por %p4739_p8, %p4738_p7 }
  0x31   :  { %p4741_p10 = pnand %p4740_p9, %p4734_p6 }
  0x33   :  { %4744 = shalt.err (!%p4741_p10)
}
  0x34   :  { %s5067_s18 = smov [#allocation12]  }
  0x35   :  { %89 = dma.vmem_to_smem %s87_s16, 16, %s5067_s18, [#allocation11]  }
  0x36   :  { %4901 = dma.done.wait [#allocation6], 32  }
  0x37   :  { %4902 = vsyncadd [#allocation6], 4294967264 }
  0x38   :  { %4903 = dma.done.wait [#allocation8], 320  }
  0x39   :  { %4904 = vsyncadd [#allocation8], 4294966976 }
  0x3a   :  { %4905 = dma.done.wait [#allocation11], 32  }
  0x3b   :  { %4906 = vsyncadd [#allocation11], 4294967264 }
  0x3c   :  { %105 = sfence }
  0x3d   :  { %s5161_s19 = smov 0  }
  0x3e LB: > { %s5166_s13 = smov 0   ;;  %s4909_s19 = sphi %s5161_s19, %s111_s19  }
  0x3f LB: >> { %s3288_s20 = sshll.u32 %s4913_s13, 7  ;;  %v5172_v0 = vmov 0.0   ;;  %v5174_v1 = vmov 0.0   ;;  %v5176_v2 = vmov 0.0   ;;  %v5178_v3 = vmov 0.0   ;;  %s5204_s21 = smov 0   ;;  %s4913_s13 = sphi %s5166_s13, %s117_s13  }
  0x40   : >> { %v5180_v4 = vmov 0.0   ;;  %v5182_v5 = vmov 0.0   ;;  %v5184_v6 = vmov 0.0   ;;  %v5186_v7 = vmov 0.0  }
  0x41   : >> { %v5188_v8 = vmov 0.0   ;;  %v5190_v9 = vmov 0.0   ;;  %v5192_v10 = vmov 0.0   ;;  %v5194_v11 = vmov 0.0  }
  0x42   : >> { %v5196_v12 = vmov 0.0   ;;  %v5198_v13 = vmov 0.0   ;;  %v5200_v14 = vmov 0.0   ;;  %v5202_v15 = vmov 0.0  }
  0x43 LB: >>> { %s143_s10 = smul.u32 25, %s4909_s19  ;;  %s3289_s12 = sshll.u32 %s4981_s21, 5  ;;  %s4981_s21 = sphi %s5204_s21, %s124_s21   ;;  %v4977_v15 = vphi %v5202_v15, %v7144_v15   ;;  %v4973_v14 = vphi %v5200_v14, %v7143_v14   ;;  %v4969_v13 = vphi %v5198_v13, %v7142_v13   ;;  %v4965_v12 = vphi %v5196_v12, %v7141_v12   ;;  %v4961_v11 = vphi %v5194_v11, %v7140_v11   ;;  %v4957_v10 = vphi %v5192_v10, %v7139_v10   ;;  %v4953_v9 = vphi %v5190_v9, %v7138_v9   ;;  %v4949_v8 = vphi %v5188_v8, %v7137_v8   ;;  %v4945_v7 = vphi %v5186_v7, %v7136_v7   ;;  %v4941_v6 = vphi %v5184_v6, %v7135_v6   ;;  %v4937_v5 = vphi %v5182_v5, %v7134_v5   ;;  %v4933_v4 = vphi %v5180_v4, %v7133_v4   ;;  %v4929_v3 = vphi %v5178_v3, %v7132_v3   ;;  %v4925_v2 = vphi %v5176_v2, %v7131_v2   ;;  %v4921_v1 = vphi %v5174_v1, %v7130_v1   ;;  %v4917_v0 = vphi %v5172_v0, %v7129_v0  }
  0x44   : >>> { %s144_s22 = smul.u32 5, %s4981_s21  ;;  %s142_s23 = sadd.s32 %s3289_s12, %s3288_s20 }
  0x45   : >>> { %s5252_s28 = scalar_lea.vmem %s7113_s0, %s142_s23  ;;  %s124_s21 = sadd.s32 1, %s4981_s21  }
  0x46   : >>> { %s5246_s24 = sadd.s32 %s144_s22, %s143_s10  ;;  %v147_v16 = vld [vmem:[%s5252_s28] sm:$0xff]  ;;  %v148_v17 = vld [vmem:[%s5252_s28 + $0x8] sm:$0xff]  ;;  %v149_v18 = vld [vmem:[%s5252_s28 + $0x10] sm:$0xff]  ;;  %p5377_p11 = scmp.ge.s32.totalorder %s124_s21, 5  }
  0x47   : >>> { %s163_s25 = sld [smem:[#allocation5 + %s5246_s24]]  ;;  %s215_s29 = sadd.s32 1, %s5246_s24  ;;  %v150_v19 = vld [vmem:[%s5252_s28 + $0x18] sm:$0xff]  ;;  %v151_v20 = vld [vmem:[%s5252_s28 + $0x20] sm:$0xff]  ;;  %v152_v21 = vld [vmem:[%s5252_s28 + $0x28] sm:$0xff] }
  0x48   : >>> { %v153_v22 = vld [vmem:[%s5252_s28 + $0x30] sm:$0xff]  ;;  %v154_v24 = vld [vmem:[%s5252_s28 + $0x38] sm:$0xff]  ;;  %v155_v25 = vld [vmem:[%s5252_s28 + $0x40] sm:$0xff]  ;;  %s5265_s30 = sld [smem:[#allocation5 + %s215_s29]]  ;;  %s268_s9 = sadd.s32 2, %s5246_s24 }
  0x49   : >>> { %v156_v26 = vld [vmem:[%s5252_s28 + $0x48] sm:$0xff]  ;;  %v157_v27 = vld [vmem:[%s5252_s28 + $0x50] sm:$0xff]  ;;  %v158_v28 = vld [vmem:[%s5252_s28 + $0x58] sm:$0xff]  ;;  %s321_s11 = sadd.s32 3, %s5246_s24  ;;  %s5295_s15 = sld [smem:[#allocation5 + %s268_s9]] }
  0x4a   : >>> { %v159_v29 = vld [vmem:[%s5252_s28 + $0x60] sm:$0xff]  ;;  %v160_v30 = vld [vmem:[%s5252_s28 + $0x68] sm:$0xff]  ;;  %v161_v31 = vld [vmem:[%s5252_s28 + $0x70] sm:$0xff]  ;;  %s5301_s16 = sld [smem:[#allocation5 + %s321_s11]]  ;;  %s374_s17 = sadd.s32 4, %s5246_s24 }
  0x4b   : >>> { %v162_v32 = vld [vmem:[%s5252_s28 + $0x78] sm:$0xff]  ;;  %v3292_v53 = vld [vmem:[%s5252_s28 + $0x1] sm:$0xff]  ;;  %v3293_v54 = vld [vmem:[%s5252_s28 + $0x9] sm:$0xff]  ;;  %s5339_s18 = sld [smem:[#allocation5 + %s374_s17]]  ;;  %s5420_s21 = scalar_lea.vmem (%p5377_p11), [#allocation2], %s3288_s20 }
  0x4c   : >>> { %v3294_v55 = vld [vmem:[%s5252_s28 + $0x11] sm:$0xff]  ;;  %v3295_v60 = vld [vmem:[%s5252_s28 + $0x19] sm:$0xff]  ;;  %v3296_v61 = vld [vmem:[%s5252_s28 + $0x21] sm:$0xff]  ;;  %s409_s12 = sld [smem:[#allocation7 + %s4909_s19]] (%p5377_p11)  ;;  %s117_s13 = sadd.s32 (%p5377_p11), 1, %s4913_s13  }
  0x4d   : >>> { %v164_v23 = vstv %s163_s25  ;;  %v3297_v62 = vld [vmem:[%s5252_s28 + $0x29] sm:$0xff]  ;;  %p114_p12 = scmp.ge.s32.totalorder (%p5377_p11), %s117_s13, 7  }
  0x4e   : >>> { %v165_v33 = vmul.f32 %v164_v23, %v147_v16  ;;  %v166_v34 = vmul.f32 %v164_v23, %v148_v17  ;;  %v167_v35 = vmul.f32 %v164_v23, %v149_v18  ;;  %v168_v36 = vmul.f32 %v164_v23, %v150_v19  ;;  %v3301_v17 = vld [vmem:[%s5252_s28 + $0x49] sm:$0xff]  ;;  %v3302_v18 = vld [vmem:[%s5252_s28 + $0x51] sm:$0xff]  ;;  %v3304_v19 = vld [vmem:[%s5252_s28 + $0x61] sm:$0xff] }
  0x4f   : >>> { %v169_v37 = vmul.f32 %v164_v23, %v151_v20  ;;  %v170_v38 = vmul.f32 %v164_v23, %v152_v21  ;;  %v171_v39 = vmul.f32 %v164_v23, %v153_v22  ;;  %v172_v40 = vmul.f32 %v164_v23, %v154_v24  ;;  %v3305_v20 = vld [vmem:[%s5252_s28 + $0x69] sm:$0xff]  ;;  %v3306_v21 = vld [vmem:[%s5252_s28 + $0x71] sm:$0xff] }
  0x50   : >>> { %v173_v41 = vmul.f32 %v164_v23, %v155_v25  ;;  %v174_v42 = vmul.f32 %v164_v23, %v156_v26  ;;  %v175_v43 = vmul.f32 %v164_v23, %v157_v27  ;;  %v176_v44 = vmul.f32 %v164_v23, %v158_v28 }
  0x51   : >>> { %v177_v45 = vmul.f32 %v164_v23, %v159_v29  ;;  %v178_v46 = vmul.f32 %v164_v23, %v160_v30  ;;  %v179_v47 = vmul.f32 %v164_v23, %v161_v31  ;;  %v180_v48 = vmul.f32 %v164_v23, %v162_v32 }
  0x52   : >>> { %v181_v49 = vadd.f32 %v4977_v15, %v165_v33  ;;  %v182_v50 = vadd.f32 %v4973_v14, %v166_v34  ;;  %v183_v51 = vadd.f32 %v4969_v13, %v167_v35  ;;  %v184_v52 = vadd.f32 %v4965_v12, %v168_v36 }
  0x53   : >>> { %v185_v56 = vadd.f32 %v4961_v11, %v169_v37  ;;  %v186_v57 = vadd.f32 %v4957_v10, %v170_v38  ;;  %v187_v58 = vadd.f32 %v4953_v9, %v171_v39  ;;  %v188_v59 = vadd.f32 %v4949_v8, %v172_v40  ;;  %v3298_v11 = vld [vmem:[%s5252_s28 + $0x31] sm:$0xff]  ;;  %v3299_v10 = vld [vmem:[%s5252_s28 + $0x39] sm:$0xff]  ;;  %v3300_v9 = vld [vmem:[%s5252_s28 + $0x41] sm:$0xff] }
  0x54   : >>> { %v189_v63 = vadd.f32 %v4945_v7, %v173_v41  ;;  %v190_v12 = vadd.f32 %v4941_v6, %v174_v42  ;;  %v191_v13 = vadd.f32 %v4937_v5, %v175_v43  ;;  %v217_v8 = vstv %s5265_s30  ;;  %v3303_v6 = vld [vmem:[%s5252_s28 + $0x59] sm:$0xff]  ;;  %v3310_v37 = vld [vmem:[%s5252_s28 + $0x2] sm:$0xff]  ;;  %v3311_v42 = vld [vmem:[%s5252_s28 + $0xa] sm:$0xff] }
  0x55   : >>> { %v192_v14 = vadd.f32 %v4933_v4, %v176_v44  ;;  %v193_v15 = vadd.f32 %v4929_v3, %v177_v45  ;;  %v194_v16 = vadd.f32 %v4925_v2, %v178_v46  ;;  %v195_v7 = vadd.f32 %v4921_v1, %v179_v47  ;;  %v3307_v3 = vld [vmem:[%s5252_s28 + $0x79] sm:$0xff] }
  0x56   : >>> { %v196_v5 = vadd.f32 %v4917_v0, %v180_v48  ;;  %v218_v22 = vmul.f32 %v3292_v53, %v217_v8  ;;  %v219_v23 = vmul.f32 %v3293_v54, %v217_v8  ;;  %v220_v4 = vmul.f32 %v3294_v55, %v217_v8  ;;  %v3312_v43 = vld [vmem:[%s5252_s28 + $0x12] sm:$0xff]  ;;  %v3313_v44 = vld [vmem:[%s5252_s28 + $0x1a] sm:$0xff] }
  0x57   : >>> { %v221_v24 = vmul.f32 %v3295_v60, %v217_v8  ;;  %v222_v2 = vmul.f32 %v3296_v61, %v217_v8  ;;  %v223_v1 = vmul.f32 %v3297_v62, %v217_v8  ;;  %v224_v25 = vmul.f32 %v3298_v11, %v217_v8  ;;  %v3317_v55 = vld [vmem:[%s5252_s28 + $0x3a] sm:$0xff]  ;;  %v3320_v61 = vld [vmem:[%s5252_s28 + $0x52] sm:$0xff]  ;;  %v3323_v11 = vld [vmem:[%s5252_s28 + $0x6a] sm:$0xff] }
  0x58   : >>> { %v225_v26 = vmul.f32 %v3299_v10, %v217_v8  ;;  %v226_v27 = vmul.f32 %v3300_v9, %v217_v8  ;;  %v227_v28 = vmul.f32 %v3301_v17, %v217_v8  ;;  %v228_v0 = vmul.f32 %v3302_v18, %v217_v8  ;;  %v3321_v62 = vld [vmem:[%s5252_s28 + $0x5a] sm:$0xff]  ;;  %v3324_v10 = vld [vmem:[%s5252_s28 + $0x72] sm:$0xff] }
  0x59   : >>> { %v229_v29 = vmul.f32 %v3303_v6, %v217_v8  ;;  %v230_v30 = vmul.f32 %v3304_v19, %v217_v8  ;;  %v231_v31 = vmul.f32 %v3305_v20, %v217_v8  ;;  %v232_v32 = vmul.f32 %v3306_v21, %v217_v8  ;;  %v3325_v9 = vld [vmem:[%s5252_s28 + $0x7a] sm:$0xff] }
  0x5a   : >>> { %v233_v33 = vmul.f32 %v3307_v3, %v217_v8  ;;  %v234_v34 = vadd.f32 %v218_v22, %v181_v49  ;;  %v235_v35 = vadd.f32 %v219_v23, %v182_v50  ;;  %v236_v36 = vadd.f32 %v220_v4, %v183_v51  ;;  %v3314_v49 = vld [vmem:[%s5252_s28 + $0x22] sm:$0xff]  ;;  %v3315_v50 = vld [vmem:[%s5252_s28 + $0x2a] sm:$0xff]  ;;  %v3316_v51 = vld [vmem:[%s5252_s28 + $0x32] sm:$0xff] }
  0x5b   : >>> { %v237_v38 = vadd.f32 %v221_v24, %v184_v52  ;;  %v238_v39 = vadd.f32 %v222_v2, %v185_v56  ;;  %v239_v40 = vadd.f32 %v223_v1, %v186_v57  ;;  %v240_v41 = vadd.f32 %v224_v25, %v187_v58  ;;  %v3318_v56 = vld [vmem:[%s5252_s28 + $0x42] sm:$0xff]  ;;  %v3319_v57 = vld [vmem:[%s5252_s28 + $0x4a] sm:$0xff] }
  0x5c   : >>> { %v241_v45 = vadd.f32 %v225_v26, %v188_v59  ;;  %v242_v46 = vadd.f32 %v226_v27, %v189_v63  ;;  %v243_v47 = vadd.f32 %v227_v28, %v190_v12  ;;  %v244_v48 = vadd.f32 %v228_v0, %v191_v13  ;;  %v3322_v63 = vld [vmem:[%s5252_s28 + $0x62] sm:$0xff]  ;;  %v3329_v27 = vld [vmem:[%s5252_s28 + $0xb] sm:$0xff]  ;;  %v3330_v28 = vld [vmem:[%s5252_s28 + $0x13] sm:$0xff] }
  0x5d   : >>> { %v245_v52 = vadd.f32 %v229_v29, %v192_v14  ;;  %v246_v53 = vadd.f32 %v230_v30, %v193_v15  ;;  %v247_v54 = vadd.f32 %v231_v31, %v194_v16  ;;  %v270_v58 = vstv %s5295_s15  ;;  %v3328_v24 = vld [vmem:[%s5252_s28 + $0x3] sm:$0xff]  ;;  %v3331_v0 = vld [vmem:[%s5252_s28 + $0x1b] sm:$0xff] }
  0x5e   : >>> { %v248_v59 = vadd.f32 %v232_v32, %v195_v7  ;;  %v249_v60 = vadd.f32 %v233_v33, %v196_v5  ;;  %v271_v12 = vmul.f32 %v3310_v37, %v270_v58  ;;  %v5319_v13 = vstv %s5301_s16  ;;  %v3332_v33 = vld [vmem:[%s5252_s28 + $0x23] sm:$0xff] }
  0x5f   : >>> { %v272_v8 = vmul.f32 %v3311_v42, %v270_v58  ;;  %v273_v14 = vmul.f32 %v3312_v43, %v270_v58  ;;  %v274_v15 = vmul.f32 %v3313_v44, %v270_v58  ;;  %v275_v16 = vmul.f32 %v3314_v49, %v270_v58  ;;  %v3335_v42 = vld [vmem:[%s5252_s28 + $0x3b] sm:$0xff]  ;;  %v3336_v43 = vld [vmem:[%s5252_s28 + $0x43] sm:$0xff]  ;;  %v3337_v44 = vld [vmem:[%s5252_s28 + $0x4b] sm:$0xff] }
  0x60   : >>> { %v276_v17 = vmul.f32 %v3315_v50, %v270_v58  ;;  %v277_v18 = vmul.f32 %v3316_v51, %v270_v58  ;;  %v278_v6 = vmul.f32 %v3317_v55, %v270_v58  ;;  %v279_v7 = vmul.f32 %v3318_v56, %v270_v58  ;;  %v3339_v50 = vld [vmem:[%s5252_s28 + $0x5b] sm:$0xff]  ;;  %v3341_v55 = vld [vmem:[%s5252_s28 + $0x6b] sm:$0xff] }
  0x61   : >>> { %v280_v5 = vmul.f32 %v3319_v57, %v270_v58  ;;  %v281_v19 = vmul.f32 %v3320_v61, %v270_v58  ;;  %v282_v20 = vmul.f32 %v3321_v62, %v270_v58  ;;  %v283_v21 = vmul.f32 %v3322_v63, %v270_v58  ;;  %v3343_v56 = vld [vmem:[%s5252_s28 + $0x7b] sm:$0xff] }
  0x62   : >>> { %v284_v22 = vmul.f32 %v3323_v11, %v270_v58  ;;  %v285_v23 = vmul.f32 %v3324_v10, %v270_v58  ;;  %v286_v4 = vmul.f32 %v3325_v9, %v270_v58  ;;  %v287_v3 = vadd.f32 %v271_v12, %v234_v34  ;;  %v3333_v34 = vld [vmem:[%s5252_s28 + $0x2b] sm:$0xff] }
  0x63   : >>> { %v288_v2 = vadd.f32 %v272_v8, %v235_v35  ;;  %v289_v1 = vadd.f32 %v273_v14, %v236_v36  ;;  %v290_v25 = vadd.f32 %v274_v15, %v237_v38  ;;  %v291_v26 = vadd.f32 %v275_v16, %v238_v39  ;;  %v3334_v35 = vld [vmem:[%s5252_s28 + $0x33] sm:$0xff]  ;;  %v3346_v14 = vld [vmem:[%s5252_s28 + $0x4] sm:$0xff] }
  0x64   : >>> { %v292_v29 = vadd.f32 %v276_v17, %v239_v40  ;;  %v293_v30 = vadd.f32 %v277_v18, %v240_v41  ;;  %v294_v31 = vadd.f32 %v278_v6, %v241_v45  ;;  %v295_v32 = vadd.f32 %v279_v7, %v242_v46  ;;  %v3338_v45 = vld [vmem:[%s5252_s28 + $0x53] sm:$0xff]  ;;  %v3340_v46 = vld [vmem:[%s5252_s28 + $0x63] sm:$0xff] }
  0x65   : >>> { %v296_v36 = vadd.f32 %v280_v5, %v243_v47  ;;  %v297_v37 = vadd.f32 %v281_v19, %v244_v48  ;;  %v298_v38 = vadd.f32 %v282_v20, %v245_v52  ;;  %v299_v39 = vadd.f32 %v283_v21, %v246_v53  ;;  %v3342_v47 = vld [vmem:[%s5252_s28 + $0x73] sm:$0xff]  ;;  %v3349_v5 = vld [vmem:[%s5252_s28 + $0x1c] sm:$0xff] }
  0x66   : >>> { %v300_v40 = vadd.f32 %v284_v22, %v247_v54  ;;  %v301_v41 = vadd.f32 %v285_v23, %v248_v59  ;;  %v302_v49 = vadd.f32 %v286_v4, %v249_v60  ;;  %v324_v51 = vmul.f32 %v3328_v24, %v5319_v13  ;;  %v3347_v6 = vld [vmem:[%s5252_s28 + $0xc] sm:$0xff]  ;;  %v3348_v7 = vld [vmem:[%s5252_s28 + $0x14] sm:$0xff] }
  0x67   : >>> { %v325_v48 = vmul.f32 %v3329_v27, %v5319_v13  ;;  %v326_v52 = vmul.f32 %v3330_v28, %v5319_v13  ;;  %v327_v53 = vmul.f32 %v3331_v0, %v5319_v13  ;;  %v328_v54 = vmul.f32 %v3332_v33, %v5319_v13  ;;  %v3351_v23 = vld [vmem:[%s5252_s28 + $0x2c] sm:$0xff]  ;;  %v3352_v4 = vld [vmem:[%s5252_s28 + $0x34] sm:$0xff] }
  0x68   : >>> { %v329_v57 = vmul.f32 %v3333_v34, %v5319_v13  ;;  %v330_v58 = vmul.f32 %v3334_v35, %v5319_v13  ;;  %v331_v59 = vmul.f32 %v3335_v42, %v5319_v13  ;;  %v332_v60 = vmul.f32 %v3336_v43, %v5319_v13  ;;  %v3355_v27 = vld [vmem:[%s5252_s28 + $0x4c] sm:$0xff]  ;;  %v3360_v35 = vld [vmem:[%s5252_s28 + $0x74] sm:$0xff]  ;;  %v3361_v42 = vld [vmem:[%s5252_s28 + $0x7c] sm:$0xff] }
  0x69   : >>> { %v333_v61 = vmul.f32 %v3337_v44, %v5319_v13  ;;  %v334_v62 = vmul.f32 %v3338_v45, %v5319_v13  ;;  %v335_v63 = vmul.f32 %v3339_v50, %v5319_v13  ;;  %v336_v12 = vmul.f32 %v3340_v46, %v5319_v13  ;;  %v3359_v34 = vld [vmem:[%s5252_s28 + $0x6c] sm:$0xff] }
  0x6a   : >>> { %v337_v11 = vmul.f32 %v3341_v55, %v5319_v13  ;;  %v338_v10 = vmul.f32 %v3342_v47, %v5319_v13  ;;  %v339_v9 = vmul.f32 %v3343_v56, %v5319_v13  ;;  %v340_v8 = vadd.f32 %v324_v51, %v287_v3  ;;  %v3350_v13 = vld [vmem:[%s5252_s28 + $0x24] sm:$0xff] }
  0x6b   : >>> { %v341_v15 = vadd.f32 %v325_v48, %v288_v2  ;;  %v342_v16 = vadd.f32 %v326_v52, %v289_v1  ;;  %v343_v17 = vadd.f32 %v327_v53, %v290_v25  ;;  %v344_v18 = vadd.f32 %v328_v54, %v291_v26  ;;  %v3353_v25 = vld [vmem:[%s5252_s28 + $0x3c] sm:$0xff]  ;;  %v3354_v26 = vld [vmem:[%s5252_s28 + $0x44] sm:$0xff] }
  0x6c   : >>> { %v345_v19 = vadd.f32 %v329_v57, %v292_v29  ;;  %v346_v20 = vadd.f32 %v330_v58, %v293_v30  ;;  %v347_v21 = vadd.f32 %v331_v59, %v294_v31  ;;  %v348_v22 = vadd.f32 %v332_v60, %v295_v32  ;;  %v3356_v30 = vld [vmem:[%s5252_s28 + $0x54] sm:$0xff]  ;;  %v3357_v31 = vld [vmem:[%s5252_s28 + $0x5c] sm:$0xff]  ;;  %v3358_v32 = vld [vmem:[%s5252_s28 + $0x64] sm:$0xff] }
  0x6d   : >>> { %v349_v3 = vadd.f32 %v333_v61, %v296_v36  ;;  %v350_v24 = vadd.f32 %v334_v62, %v297_v37  ;;  %v351_v2 = vadd.f32 %v335_v63, %v298_v38  ;;  %v352_v1 = vadd.f32 %v336_v12, %v299_v39 }
  0x6e   : >>> { %v353_v28 = vadd.f32 %v337_v11, %v300_v40  ;;  %v354_v0 = vadd.f32 %v338_v10, %v301_v41  ;;  %v355_v29 = vadd.f32 %v339_v9, %v302_v49  ;;  %v376_v33 = vstv %s5339_s18 }
  0x6f   : >>> { %v377_v43 = vmul.f32 %v3346_v14, %v376_v33  ;;  %v378_v44 = vmul.f32 %v3347_v6, %v376_v33  ;;  %v379_v36 = vmul.f32 %v3348_v7, %v376_v33  ;;  %v380_v45 = vmul.f32 %v3349_v5, %v376_v33 }
  0x70   : >>> { %v381_v37 = vmul.f32 %v3350_v13, %v376_v33  ;;  %v382_v38 = vmul.f32 %v3351_v23, %v376_v33  ;;  %v383_v39 = vmul.f32 %v3352_v4, %v376_v33  ;;  %v384_v50 = vmul.f32 %v3353_v25, %v376_v33 }
  0x71   : >>> { %v385_v46 = vmul.f32 %v3354_v26, %v376_v33  ;;  %v386_v51 = vmul.f32 %v3355_v27, %v376_v33  ;;  %v387_v40 = vmul.f32 %v3356_v30, %v376_v33  ;;  %v388_v41 = vmul.f32 %v3357_v31, %v376_v33 }
  0x72   : >>> { %v389_v49 = vmul.f32 %v3358_v32, %v376_v33  ;;  %v390_v55 = vmul.f32 %v3359_v34, %v376_v33  ;;  %v391_v47 = vmul.f32 %v3360_v35, %v376_v33  ;;  %v392_v56 = vmul.f32 %v3361_v42, %v376_v33 }
  0x73   : >>> { %v393_v48 = vadd.f32 %v377_v43, %v340_v8   ;;  %v394_v52 = vadd.f32 %v378_v44, %v341_v15   ;;  %v395_v53 = vadd.f32 %v379_v36, %v342_v16   ;;  %v396_v54 = vadd.f32 %v380_v45, %v343_v17  }
  0x74   : >>> { %v397_v57 = vadd.f32 %v381_v37, %v344_v18   ;;  %v398_v58 = vadd.f32 %v382_v38, %v345_v19   ;;  %v399_v59 = vadd.f32 %v383_v39, %v346_v20   ;;  %v400_v60 = vadd.f32 %v384_v50, %v347_v21   ;;  %123 = sbr.rel (!%p5377_p11) target bundleno = 67 (0x43), region = 144 }
  0x75   : >>> { %v401_v61 = vadd.f32 %v385_v46, %v348_v22   ;;  %v402_v62 = vadd.f32 %v386_v51, %v349_v3   ;;  %v403_v63 = vadd.f32 %v387_v40, %v350_v24   ;;  %v404_v23 = vadd.f32 %v388_v41, %v351_v2  }
  0x76   : >>> { %v405_v25 = vadd.f32 %v389_v49, %v352_v1   ;;  %v406_v26 = vadd.f32 %v390_v55, %v353_v28   ;;  %v407_v27 = vadd.f32 %v391_v47, %v354_v0   ;;  %v408_v30 = vadd.f32 %v392_v56, %v355_v29  }
  0x77   : >>> { %v7133_v4 = vmov %v404_v23  ;;  %v7134_v5 = vmov %v403_v63  ;;  %v7135_v6 = vmov %v402_v62  ;;  %v7136_v7 = vmov %v401_v61 }
  0x78   : >>> { %v7129_v0 = vmov %v408_v30  ;;  %v7130_v1 = vmov %v407_v27  ;;  %v7131_v2 = vmov %v406_v26  ;;  %v7132_v3 = vmov %v405_v25 }
  0x79   : >>> { %v7137_v8 = vmov %v400_v60  ;;  %v7138_v9 = vmov %v399_v59  ;;  %v7139_v10 = vmov %v398_v58  ;;  %v7140_v11 = vmov %v397_v57 }
  0x7a   : >>> { %v7141_v12 = vmov %v396_v54  ;;  %v7142_v13 = vmov %v395_v53  ;;  %v7143_v14 = vmov %v394_v52  ;;  %v7144_v15 = vmov %v393_v48 }
  0x7b   : >> { %v410_v15 = vstv %s409_s12  ;;  %v5068_v37 = vmov (%p114_p12), 0.0|0.0   ;;  %s460_s24 = smul.u32 (%p114_p12), 208, %s4909_s19  ;;  %s111_s19 = sadd.s32 (%p114_p12), 1, %s4909_s19  }
  0x7c   : >> { %v411_v16 = vadd.f32 %v410_v15, %v393_v48  ;;  %v412_v17 = vadd.f32 %v410_v15, %v394_v52  ;;  %v413_v18 = vadd.f32 %v410_v15, %v395_v53  ;;  %v414_v19 = vadd.f32 %v410_v15, %v396_v54  ;;  %3888 = vmatprep.subr.bf16.mxu1 (%p114_p12), %v5068_v37  ;;  %p108_p13 = scmp.ge.s32.totalorder (%p114_p12), %s111_s19, 6  }
  0x7d   : >> { %v415_v20 = vadd.f32 %v410_v15, %v397_v57  ;;  %v416_v21 = vadd.f32 %v410_v15, %v398_v58  ;;  %v417_v22 = vadd.f32 %v410_v15, %v399_v59  ;;  %v418_v24 = vadd.f32 %v410_v15, %v400_v60  ;;  %3936 = vmatprep.subr.bf16.mxu0 (%p114_p12), %v5068_v37  ;;  %s6199_s25 = scalar_lea.vmem (%p114_p12), [#allocation3], %s460_s24 }
  0x7e   : >> { %v427_v28 = vmax.f32 %v411_v16, 0.0  ;;  %v428_v29 = vmax.f32 %v412_v17, 0.0  ;;  %v429_v31 = vmax.f32 %v413_v18, 0.0  ;;  %v430_v32 = vmax.f32 %v414_v19, 0.0 }
  0x7f   : >> { %v431_v33 = vmax.f32 %v415_v20, 0.0  ;;  %v432_v34 = vmax.f32 %v416_v21, 0.0  ;;  %v433_v35 = vmax.f32 %v417_v22, 0.0  ;;  %v434_v42 = vmax.f32 %v418_v24, 0.0 }
  0x80   : >> { %444 = vst [vmem:[%s5420_s21] sm:$0xff] %v427_v28  ;;  %445 = vst [vmem:[%s5420_s21 + $0x8] sm:$0xff] %v428_v29  ;;  %v419_v12 = vadd.f32 %v410_v15, %v401_v61  ;;  %v420_v11 = vadd.f32 %v410_v15, %v402_v62  ;;  %v421_v10 = vadd.f32 %v410_v15, %v403_v63  ;;  %v462_v29 = vld [vmem:[%s7114_s1 + $0x8] sm:$0xff] (%p114_p12) }
  0x81   : >> { %446 = vst [vmem:[%s5420_s21 + $0x10] sm:$0xff] %v429_v31  ;;  %447 = vst [vmem:[%s5420_s21 + $0x18] sm:$0xff] %v430_v32  ;;  %v422_v9 = vadd.f32 %v410_v15, %v404_v23  ;;  %v423_v8 = vadd.f32 %v410_v15, %v405_v25  ;;  %v424_v14 = vadd.f32 %v410_v15, %v406_v26  ;;  %116 = sbr.rel (!%p114_p12) target bundleno = 63 (0x3f), region = 155  ;;  %v464_v31 = vld [vmem:[%s7114_s1 + $0x18] sm:$0xff] (%p114_p12)  ;;  %819 = vmatprep.mubr.f32.mxu1 (%p114_p12), %v462_v29 }
  0x82   : >> { %448 = vst [vmem:[%s5420_s21 + $0x20] sm:$0xff] %v431_v33  ;;  %449 = vst [vmem:[%s5420_s21 + $0x28] sm:$0xff] %v432_v34  ;;  %v425_v6 = vadd.f32 %v410_v15, %v407_v27  ;;  %v426_v7 = vadd.f32 %v410_v15, %v408_v30  ;;  %v435_v5 = vmax.f32 %v419_v12, 0.0  ;;  %v436_v13 = vmax.f32 %v420_v11, 0.0  ;;  %1014 = vmatprep.mubr.f32.mxu0 (%p114_p12), %v464_v31 }
  0x83   : >> { %450 = vst [vmem:[%s5420_s21 + $0x30] sm:$0xff] %v433_v35  ;;  %451 = vst [vmem:[%s5420_s21 + $0x38] sm:$0xff] %v434_v42  ;;  %v437_v4 = vmax.f32 %v421_v10, 0.0  ;;  %v438_v3 = vmax.f32 %v422_v9, 0.0  ;;  %v439_v2 = vmax.f32 %v423_v8, 0.0  ;;  %v440_v1 = vmax.f32 %v424_v14, 0.0 }
  0x84   : >> { %v441_v0 = vmax.f32 %v425_v6, 0.0  ;;  %v442_v43 = vmax.f32 %v426_v7, 0.0  ;;  %452 = vst [vmem:[%s5420_s21 + $0x40] sm:$0xff] %v435_v5  ;;  %453 = vst [vmem:[%s5420_s21 + $0x48] sm:$0xff] %v436_v13 }
  0x85   : >> { %454 = vst [vmem:[%s5420_s21 + $0x50] sm:$0xff] %v437_v4  ;;  %455 = vst [vmem:[%s5420_s21 + $0x58] sm:$0xff] %v438_v3 }
  0x86   : >> { %456 = vst [vmem:[%s5420_s21 + $0x60] sm:$0xff] %v439_v2  ;;  %457 = vst [vmem:[%s5420_s21 + $0x68] sm:$0xff] %v440_v1 }
  0x87   : >> { %458 = vst [vmem:[%s5420_s21 + $0x70] sm:$0xff] %v441_v0  ;;  %459 = vst [vmem:[%s5420_s21 + $0x78] sm:$0xff] %v442_v43 }
  0x88   :  { %s6246_s26 = smov (%p108_p13), 0  }
  0x8e   : > { %v643_v44 = vld [vmem:[#allocation2] sm:$0xff]  ;;  %v644_v36 = vld [vmem:[#allocation2 + $0x8] sm:$0xff]  ;;  %v645_v50 = vld [vmem:[#allocation2 + $0x10] sm:$0xff] }
  0x8f   : > { %v675_v45 = vld [vmem:[#allocation2 + $0x100] sm:$0xff]  ;;  %v3889_v38 = vpack.c.bf16 %v644_v36, %v643_v44  ;;  %v676_v39 = vld [vmem:[#allocation2 + $0x108] sm:$0xff]  ;;  %v646_v46 = vld [vmem:[#allocation2 + $0x18] sm:$0xff] }
  0x90   : > { %v5443_v51 = vpack.c.bf16 %v676_v39, %v675_v45  ;;  %v677_v40 = vld [vmem:[#allocation2 + $0x110] sm:$0xff]  ;;  %v678_v41 = vld [vmem:[#allocation2 + $0x118] sm:$0xff]  ;;  %v3892_v49 = vpack.c.bf16 %v646_v46, %v645_v50  ;;  %v647_v47 = vld [vmem:[#allocation2 + $0x20] sm:$0xff] }
  0x91   : > { %3890 = vmatpush1.bf16.msra.mxu1 %v3889_v38  ;;  %v5447_v55 = vpack.c.bf16 %v678_v41, %v677_v40  ;;  %v648_v56 = vld [vmem:[#allocation2 + $0x28] sm:$0xff]  ;;  %v679_v48 = vld [vmem:[#allocation2 + $0x120] sm:$0xff]  ;;  %v649_v57 = vld [vmem:[#allocation2 + $0x30] sm:$0xff] }
  0x92   : > { %3938 = vmatpush1.bf16.msra.mxu0 %v5443_v51  ;;  %3891 = vmatprep.subr.bf16.mxu1 %v5068_v37  ;;  %v680_v52 = vld [vmem:[#allocation2 + $0x128] sm:$0xff]  ;;  %v3895_v53 = vpack.c.bf16 %v648_v56, %v647_v47  ;;  %v650_v58 = vld [vmem:[#allocation2 + $0x38] sm:$0xff]  ;;  %v681_v59 = vld [vmem:[#allocation2 + $0x130] sm:$0xff] }
  0x93   : > { %3939 = vmatprep.subr.bf16.mxu0 %v5068_v37  ;;  %v5452_v54 = vpack.c.bf16 %v680_v52, %v679_v48  ;;  %v682_v60 = vld [vmem:[#allocation2 + $0x138] sm:$0xff]  ;;  %v3898_v61 = vpack.c.bf16 %v650_v58, %v649_v57  ;;  %v651_v63 = vld [vmem:[#allocation2 + $0x40] sm:$0xff]  ;;  %v652_v23 = vld [vmem:[#allocation2 + $0x48] sm:$0xff] }
  0x94   : > { %v5457_v62 = vpack.c.bf16 %v682_v60, %v681_v59  ;;  %v683_v25 = vld [vmem:[#allocation2 + $0x140] sm:$0xff]  ;;  %v684_v26 = vld [vmem:[#allocation2 + $0x148] sm:$0xff]  ;;  %v3901_v27 = vpack.c.bf16 %v652_v23, %v651_v63  ;;  %v653_v15 = vld [vmem:[#allocation2 + $0x50] sm:$0xff] }
  0x95   : > { %3893 = vmatpush1.bf16.msra.mxu1 %v3892_v49  ;;  %v5462_v30 = vpack.c.bf16 %v684_v26, %v683_v25  ;;  %v654_v16 = vld [vmem:[#allocation2 + $0x58] sm:$0xff]  ;;  %v685_v17 = vld [vmem:[#allocation2 + $0x150] sm:$0xff]  ;;  %v655_v21 = vld [vmem:[#allocation2 + $0x60] sm:$0xff] }
  0x96   : > { %3941 = vmatpush1.bf16.msra.mxu0 %v5447_v55  ;;  %3894 = vmatprep.subr.bf16.mxu1 %v5068_v37  ;;  %v686_v18 = vld [vmem:[#allocation2 + $0x158] sm:$0xff]  ;;  %v3904_v19 = vpack.c.bf16 %v654_v16, %v653_v15  ;;  %v656_v22 = vld [vmem:[#allocation2 + $0x68] sm:$0xff]  ;;  %v687_v24 = vld [vmem:[#allocation2 + $0x160] sm:$0xff] }
  0x97   : > { %3942 = vmatprep.subr.bf16.mxu0 %v5068_v37  ;;  %v5467_v20 = vpack.c.bf16 %v686_v18, %v685_v17  ;;  %v688_v28 = vld [vmem:[#allocation2 + $0x168] sm:$0xff]  ;;  %v3907_v32 = vpack.c.bf16 %v656_v22, %v655_v21  ;;  %v657_v34 = vld [vmem:[#allocation2 + $0x70] sm:$0xff]  ;;  %v658_v35 = vld [vmem:[#allocation2 + $0x78] sm:$0xff] }
  0x98   : > { %v5478_v33 = vpack.c.bf16 %v688_v28, %v687_v24  ;;  %v689_v42 = vld [vmem:[#allocation2 + $0x170] sm:$0xff]  ;;  %v690_v12 = vld [vmem:[#allocation2 + $0x178] sm:$0xff]  ;;  %v3910_v11 = vpack.c.bf16 %v658_v35, %v657_v34  ;;  %v659_v9 = vld [vmem:[#allocation2 + $0x80] sm:$0xff] }
  0x99   : > { %3896 = vmatpush1.bf16.msra.mxu1 %v3895_v53  ;;  %v5483_v10 = vpack.c.bf16 %v690_v12, %v689_v42  ;;  %v660_v8 = vld [vmem:[#allocation2 + $0x88] sm:$0xff]  ;;  %v691_v14 = vld [vmem:[#allocation2 + $0x180] sm:$0xff]  ;;  %v661_v13 = vld [vmem:[#allocation2 + $0x90] sm:$0xff] }
  0x9a   : > { %3944 = vmatpush1.bf16.msra.mxu0 %v5452_v54  ;;  %3897 = vmatprep.subr.bf16.mxu1 %v5068_v37  ;;  %v692_v6 = vld [vmem:[#allocation2 + $0x188] sm:$0xff]  ;;  %v3913_v7 = vpack.c.bf16 %v660_v8, %v659_v9  ;;  %v662_v4 = vld [vmem:[#allocation2 + $0x98] sm:$0xff]  ;;  %v693_v3 = vld [vmem:[#allocation2 + $0x190] sm:$0xff] }
  0x9b   : > { %3945 = vmatprep.subr.bf16.mxu0 %v5068_v37  ;;  %v5488_v5 = vpack.c.bf16 %v692_v6, %v691_v14  ;;  %v694_v2 = vld [vmem:[#allocation2 + $0x198] sm:$0xff]  ;;  %v3916_v1 = vpack.c.bf16 %v662_v4, %v661_v13  ;;  %v663_v43 = vld [vmem:[#allocation2 + $0xa0] sm:$0xff]  ;;  %v664_v44 = vld [vmem:[#allocation2 + $0xa8] sm:$0xff] }
  0x9c   : > { %v5493_v0 = vpack.c.bf16 %v694_v2, %v693_v3  ;;  %v695_v36 = vld [vmem:[#allocation2 + $0x1a0] sm:$0xff]  ;;  %v696_v45 = vld [vmem:[#allocation2 + $0x1a8] sm:$0xff]  ;;  %v3919_v38 = vpack.c.bf16 %v664_v44, %v663_v43  ;;  %v665_v50 = vld [vmem:[#allocation2 + $0xb0] sm:$0xff] }
  0x9d   : > { %3899 = vmatpush1.bf16.msra.mxu1 %v3898_v61  ;;  %v5498_v39 = vpack.c.bf16 %v696_v45, %v695_v36  ;;  %v666_v46 = vld [vmem:[#allocation2 + $0xb8] sm:$0xff]  ;;  %v697_v40 = vld [vmem:[#allocation2 + $0x1b0] sm:$0xff]  ;;  %v667_v56 = vld [vmem:[#allocation2 + $0xc0] sm:$0xff] }
  0x9e   : > { %3947 = vmatpush1.bf16.msra.mxu0 %v5457_v62  ;;  %3900 = vmatprep.subr.bf16.mxu1 %v5068_v37  ;;  %v698_v41 = vld [vmem:[#allocation2 + $0x1b8] sm:$0xff]  ;;  %v3922_v49 = vpack.c.bf16 %v666_v46, %v665_v50  ;;  %v668_v48 = vld [vmem:[#allocation2 + $0xc8] sm:$0xff]  ;;  %v699_v52 = vld [vmem:[#allocation2 + $0x1c0] sm:$0xff] }
  0x9f   : > { %3948 = vmatprep.subr.bf16.mxu0 %v5068_v37  ;;  %v5503_v47 = vpack.c.bf16 %v698_v41, %v697_v40  ;;  %v700_v53 = vld [vmem:[#allocation2 + $0x1c8] sm:$0xff]  ;;  %v3925_v57 = vpack.c.bf16 %v668_v48, %v667_v56  ;;  %v669_v59 = vld [vmem:[#allocation2 + $0xd0] sm:$0xff]  ;;  %v670_v60 = vld [vmem:[#allocation2 + $0xd8] sm:$0xff] }
  0xa0   : > { %v5508_v58 = vpack.c.bf16 %v700_v53, %v699_v52  ;;  %v701_v61 = vld [vmem:[#allocation2 + $0x1d0] sm:$0xff]  ;;  %v702_v63 = vld [vmem:[#allocation2 + $0x1d8] sm:$0xff]  ;;  %v3928_v23 = vpack.c.bf16 %v670_v60, %v669_v59  ;;  %v671_v26 = vld [vmem:[#allocation2 + $0xe0] sm:$0xff] }
  0xa1   : > { %3902 = vmatpush1.bf16.msra.mxu1 %v3901_v27  ;;  %v5513_v25 = vpack.c.bf16 %v702_v63, %v701_v61  ;;  %v672_v27 = vld [vmem:[#allocation2 + $0xe8] sm:$0xff]  ;;  %v703_v15 = vld [vmem:[#allocation2 + $0x1e0] sm:$0xff]  ;;  %v674_v21 = vld [vmem:[#allocation2 + $0xf8] sm:$0xff] }
  0xa2   : > { %3950 = vmatpush1.bf16.msra.mxu0 %v5462_v30  ;;  %3903 = vmatprep.subr.bf16.mxu1 %v5068_v37  ;;  %v704_v16 = vld [vmem:[#allocation2 + $0x1e8] sm:$0xff]  ;;  %v3931_v17 = vpack.c.bf16 %v672_v27, %v671_v26  ;;  %v705_v22 = vld [vmem:[#allocation2 + $0x1f0] sm:$0xff]  ;;  %v706_v24 = vld [vmem:[#allocation2 + $0x1f8] sm:$0xff] }
  0xa3   : > { %3951 = vmatprep.subr.bf16.mxu0 %v5068_v37  ;;  %v5518_v18 = vpack.c.bf16 %v704_v16, %v703_v15  ;;  %v5523_v29 = vpack.c.bf16 %v706_v24, %v705_v22  ;;  %v707_v31 = vld [vmem:[#allocation2 + $0x200] sm:$0xff]  ;;  %v463_v35 = vld [vmem:[%s7114_s1 + $0x10] sm:$0xff]  ;;  %v710_v9 = vld [vmem:[#allocation2 + $0x218] sm:$0xff] }
  0xa4   : > { %v461_v34 = vld [vmem:[%s7114_s1] sm:$0xff]  ;;  %v471_v8 = vld [vmem:[%s7114_s1 + $0x50] sm:$0xff]  ;;  %v468_v14 = vld [vmem:[%s7114_s1 + $0x38] sm:$0xff] }
  0xa5   : > { %3905 = vmatpush1.bf16.msra.mxu1 %v3904_v19  ;;  %v673_v19 = vld [vmem:[#allocation2 + $0xf0] sm:$0xff]  ;;  %v469_v12 = vld [vmem:[%s7114_s1 + $0x40] sm:$0xff]  ;;  %v470_v6 = vld [vmem:[%s7114_s1 + $0x48] sm:$0xff] }
  0xa6   : > { %3953 = vmatpush1.bf16.msra.mxu0 %v5467_v20  ;;  %3906 = vmatprep.subr.bf16.mxu1 %v5068_v37  ;;  %v3934_v28 = vpack.c.bf16 %v674_v21, %v673_v19  ;;  %v476_v13 = vld [vmem:[%s7114_s1 + $0x78] sm:$0xff]  ;;  %v711_v4 = vld [vmem:[#allocation2 + $0x220] sm:$0xff]  ;;  %v712_v3 = vld [vmem:[#allocation2 + $0x228] sm:$0xff] }
  0xa7   : > { %3954 = vmatprep.subr.bf16.mxu0 %v5068_v37  ;;  %v475_v2 = vld [vmem:[%s7114_s1 + $0x70] sm:$0xff]  ;;  %v3991_v43 = vpack.c.bf16 %v712_v3, %v711_v4  ;;  %v485_v36 = vld [vmem:[%s7114_s1 + $0xc0] sm:$0xff]  ;;  %v482_v50 = vld [vmem:[%s7114_s1 + $0xa8] sm:$0xff] }
  0xa8   : > { %v483_v44 = vld [vmem:[%s7114_s1 + $0xb0] sm:$0xff]  ;;  %v490_v40 = vld [vmem:[%s7114_s1 + $0xe8] sm:$0xff]  ;;  %v492_v41 = vld [vmem:[%s7114_s1 + $0xf8] sm:$0xff] }
  0xa9   : > { %3908 = vmatpush1.bf16.msra.mxu1 %v3907_v32  ;;  %v708_v32 = vld [vmem:[#allocation2 + $0x208] sm:$0xff]  ;;  %v713_v45 = vld [vmem:[#allocation2 + $0x230] sm:$0xff]  ;;  %v489_v48 = vld [vmem:[%s7114_s1 + $0xe0] sm:$0xff] }
  0xaa   : > { %3956 = vmatpush1.bf16.msra.mxu0 %v5478_v33  ;;  %3909 = vmatprep.subr.bf16.mxu1 %v5068_v37  ;;  %v3985_v42 = vpack.c.bf16 %v708_v32, %v707_v31  ;;  %v716_v56 = vld [vmem:[#allocation2 + $0x248] sm:$0xff]  ;;  %v497_v53 = vld [vmem:[%s7114_s1 + $0x120] sm:$0xff]  ;;  %v717_v59 = vld [vmem:[#allocation2 + $0x250] sm:$0xff] }
  0xab   : > { %3957 = vmatprep.subr.bf16.mxu0 %v5068_v37  ;;  %v718_v60 = vld [vmem:[#allocation2 + $0x258] sm:$0xff]  ;;  %v498_v63 = vld [vmem:[%s7114_s1 + $0x128] sm:$0xff]  ;;  %v719_v27 = vld [vmem:[#allocation2 + $0x260] sm:$0xff] }
  0xac   : > { %v496_v61 = vld [vmem:[%s7114_s1 + $0x118] sm:$0xff]  ;;  %v506_v26 = vld [vmem:[%s7114_s1 + $0x168] sm:$0xff]  ;;  %v503_v16 = vld [vmem:[%s7114_s1 + $0x150] sm:$0xff] }
  0xad   : > { %3911 = vmatpush1.bf16.msra.mxu1 %v3910_v11  ;;  %v709_v11 = vld [vmem:[#allocation2 + $0x210] sm:$0xff]  ;;  %v720_v15 = vld [vmem:[#allocation2 + $0x268] sm:$0xff]  ;;  %v513_v21 = vld [vmem:[%s7114_s1 + $0x1a0] sm:$0xff] }
  0xae   : > { %3959 = vmatpush1.bf16.msra.mxu0 %v5483_v10  ;;  %3912 = vmatprep.subr.bf16.mxu1 %v5068_v37  ;;  %v4003_v19 = vpack.c.bf16 %v720_v15, %v719_v27  ;;  %v721_v22 = vld [vmem:[#allocation2 + $0x270] sm:$0xff]  ;;  %v722_v24 = vld [vmem:[#allocation2 + $0x278] sm:$0xff]  ;;  %v534_v4 = vld [vmem:[%s7114_s1 + $0x248] sm:$0xff] }
  0xaf   : > { %3960 = vmatprep.subr.bf16.mxu0 %v5068_v37  ;;  %v512_v31 = vld [vmem:[%s7114_s1 + $0x198] sm:$0xff]  ;;  %v4006_v32 = vpack.c.bf16 %v722_v24, %v721_v22  ;;  %v727_v3 = vld [vmem:[#allocation2 + $0x2a0] sm:$0xff]  ;;  %v740_v22 = vld [vmem:[#allocation2 + $0x308] sm:$0xff] }
  0xb0   : > { %v561_v27 = vld [vmem:[%s7114_s1 + $0x320] sm:$0xff]  ;;  %v568_v24 = vld [vmem:[%s7114_s1 + $0x358] sm:$0xff] }
  0xb1   : > { %3914 = vmatpush1.bf16.msra.mxu1 %v3913_v7  ;;  %v3988_v7 = vpack.c.bf16 %v710_v9, %v709_v11  ;;  %v519_v11 = vld [vmem:[%s7114_s1 + $0x1d0] sm:$0xff] }
  0xb2   : > { %3962 = vmatpush1.bf16.msra.mxu0 %v5488_v5  ;;  %3915 = vmatprep.subr.bf16.mxu1 %v5068_v37 }
  0xb3   : > { %3963 = vmatprep.subr.bf16.mxu0 %v5068_v37 }
  0xb5   : > { %3917 = vmatpush1.bf16.msra.mxu1 %v3916_v1  ;;  %v477_v1 = vld [vmem:[%s7114_s1 + $0x80] sm:$0xff] }
  0xb6   : > { %3965 = vmatpush1.bf16.msra.mxu0 %v5493_v0  ;;  %3918 = vmatprep.subr.bf16.mxu1 %v5068_v37 }
  0xb7   : > { %3966 = vmatprep.subr.bf16.mxu0 %v5068_v37 }
  0xb9   : > { %3920 = vmatpush1.bf16.msra.mxu1 %v3919_v38  ;;  %v714_v38 = vld [vmem:[#allocation2 + $0x238] sm:$0xff] }
  0xba   : > { %3968 = vmatpush1.bf16.msra.mxu0 %v5498_v39  ;;  %3921 = vmatprep.subr.bf16.mxu1 %v5068_v37  ;;  %v3994_v46 = vpack.c.bf16 %v714_v38, %v713_v45  ;;  %v729_v45 = vld [vmem:[#allocation2 + $0x2b0] sm:$0xff]  ;;  %v730_v38 = vld [vmem:[#allocation2 + $0x2b8] sm:$0xff] }
  0xbb   : > { %3969 = vmatprep.subr.bf16.mxu0 %v5068_v37 }
  0xbd   : > { %3923 = vmatpush1.bf16.msra.mxu1 %v3922_v49  ;;  %v715_v49 = vld [vmem:[#allocation2 + $0x240] sm:$0xff] }
  0xbe   : > { %3971 = vmatpush1.bf16.msra.mxu0 %v5503_v47  ;;  %3924 = vmatprep.subr.bf16.mxu1 %v5068_v37  ;;  %v3997_v52 = vpack.c.bf16 %v716_v56, %v715_v49  ;;  %v732_v49 = vld [vmem:[#allocation2 + $0x2c8] sm:$0xff]  ;;  %v545_v56 = vld [vmem:[%s7114_s1 + $0x2a0] sm:$0xff] }
  0xbf   : > { %3972 = vmatprep.subr.bf16.mxu0 %v5068_v37 }
  0xc1   : > { %3926 = vmatpush1.bf16.msra.mxu1 %v3925_v57  ;;  %v499_v57 = vld [vmem:[%s7114_s1 + $0x130] sm:$0xff] }
  0xc2   : > { %3974 = vmatpush1.bf16.msra.mxu0 %v5508_v58  ;;  %3927 = vmatprep.subr.bf16.mxu1 %v5068_v37 }
  0xc3   : > { %3975 = vmatprep.subr.bf16.mxu0 %v5068_v37 }
  0xc5   : > { %3929 = vmatpush1.bf16.msra.mxu1 %v3928_v23  ;;  %v4000_v23 = vpack.c.bf16 %v718_v60, %v717_v59  ;;  %v552_v59 = vld [vmem:[%s7114_s1 + $0x2d8] sm:$0xff]  ;;  %v554_v60 = vld [vmem:[%s7114_s1 + $0x2e8] sm:$0xff] }
  0xc6   : > { %3977 = vmatpush1.bf16.msra.mxu0 %v5513_v25  ;;  %3930 = vmatprep.subr.bf16.mxu1 %v5068_v37 }
  0xc7   : > { %3978 = vmatprep.subr.bf16.mxu0 %v5068_v37 }
  0xc9   : > { %3932 = vmatpush1.bf16.msra.mxu1 %v3931_v17  ;;  %v505_v17 = vld [vmem:[%s7114_s1 + $0x160] sm:$0xff] }
  0xca   : > { %3980 = vmatpush1.bf16.msra.mxu0 %v5518_v18  ;;  %3933 = vmatprep.subr.bf16.mxu1 %v5068_v37 }
  0xcb   : > { %3981 = vmatprep.subr.bf16.mxu0 %v5068_v37 }
  0xcd   : > { %3935 = vmatpush1.bf16.msra.mxu1 %v3934_v28  ;;  %v510_v28 = vld [vmem:[%s7114_s1 + $0x188] sm:$0xff] }
  0xce   : > { %3983 = vmatpush1.bf16.msra.mxu0 %v5523_v29  ;;  %4219 = vmatprep.subr.bf16.mxu1 %v5068_v37 }
  0xcf   : > { %3984 = vmatprep.subr.bf16.mxu0 %v5068_v37 }
  0xd0   : > { %820 = vmatmul.mubr.f32.vlgmr.msra.gmra.mrb[0].mxu1 %v461_v34  ;;  %v520_v34 = vld [vmem:[%s7114_s1 + $0x1d8] sm:$0xff] }
  0xd1   : > { %1015 = vmatmul.mubr.f32.vlgmr.msra.gmra.mrb[0].mxu0 %v463_v35  ;;  %4235 = vmatpush1.bf16.msra.mxu1 %v5443_v51  ;;  %v478_v51 = vld [vmem:[%s7114_s1 + $0x88] sm:$0xff]  ;;  %v723_v35 = vld [vmem:[#allocation2 + $0x280] sm:$0xff] }
  0xd2   : > { %3986 = vmatpush1.bf16.msra.mxu0 %v3985_v42  ;;  %824 = vmatprep.mubr.f32.mxu1 %v469_v12  ;;  %v724_v42 = vld [vmem:[#allocation2 + $0x288] sm:$0xff]  ;;  %v517_v12 = vld [vmem:[%s7114_s1 + $0x1c0] sm:$0xff] }
  0xd3   : > { %1019 = vmatprep.mubr.f32.mxu0 %v471_v8  ;;  %3987 = vmatprep.subr.bf16.mxu0 %v5068_v37  ;;  %v4009_v9 = vpack.c.bf16 %v724_v42, %v723_v35  ;;  %v527_v8 = vld [vmem:[%s7114_s1 + $0x210] sm:$0xff]  ;;  %v742_v42 = vld [vmem:[#allocation2 + $0x318] sm:$0xff] }
  0xd4   : > { %825 = vmatmul.mubr.f32.gmra.mrb[2].mxu1 %v468_v14  ;;  %4220 = vmatprep.subr.bf16.mxu1 %v5068_v37  ;;  %v725_v14 = vld [vmem:[#allocation2 + $0x290] sm:$0xff] }
  0xd5   : > { %1020 = vmatmul.mubr.f32.gmra.mrb[2].mxu0 %v470_v6  ;;  %829 = vmatprep.mubr.f32.mxu1 %v476_v13  ;;  %v726_v6 = vld [vmem:[#allocation2 + $0x298] sm:$0xff]  ;;  %v526_v13 = vld [vmem:[%s7114_s1 + $0x208] sm:$0xff]  ;;  %v741_v35 = vld [vmem:[#allocation2 + $0x310] sm:$0xff] }
  0xd6   : > { %3989 = vmatpush1.bf16.msra.mxu0 %v3988_v7  ;;  %1024 = vmatprep.mubr.f32.mxu0 %v478_v51  ;;  %v524_v7 = vld [vmem:[%s7114_s1 + $0x1f8] sm:$0xff]  ;;  %v4012_v51 = vpack.c.bf16 %v726_v6, %v725_v14  ;;  %v587_v6 = vld [vmem:[%s7114_s1 + $0x3f0] sm:$0xff] }
  0xd7   : > { %4236 = vmatpush1.bf16.msra.mxu1 %v5447_v55  ;;  %3990 = vmatprep.subr.bf16.mxu0 %v5068_v37  ;;  %v484_v55 = vld [vmem:[%s7114_s1 + $0xb8] sm:$0xff] }
  0xd8   : > { %830 = vmatmul.mubr.f32.gmra.mrb[4].mxu1 %v475_v2  ;;  %4221 = vmatprep.subr.bf16.mxu1 %v5068_v37  ;;  %v728_v2 = vld [vmem:[#allocation2 + $0x2a8] sm:$0xff]  ;;  %v480_v14 = vld [vmem:[%s7114_s1 + $0x98] sm:$0xff] }
  0xd9   : > { %1025 = vmatmul.mubr.f32.gmra.mrb[4].mxu0 %v477_v1  ;;  %834 = vmatprep.mubr.f32.mxu1 %v483_v44  ;;  %v531_v1 = vld [vmem:[%s7114_s1 + $0x230] sm:$0xff]  ;;  %v4015_v44 = vpack.c.bf16 %v728_v2, %v727_v3  ;;  %v594_v2 = vld [vmem:[%s7114_s1 + $0x428] sm:$0xff] }
  0xda   : > { %3992 = vmatpush1.bf16.msra.mxu0 %v3991_v43  ;;  %1029 = vmatprep.mubr.f32.mxu0 %v485_v36  ;;  %v533_v43 = vld [vmem:[%s7114_s1 + $0x240] sm:$0xff]  ;;  %v487_v3 = vld [vmem:[%s7114_s1 + $0xd0] sm:$0xff] }
  0xdb   : > { %3993 = vmatprep.subr.bf16.mxu0 %v5068_v37  ;;  %4237 = vmatpush1.bf16.msra.mxu1 %v5452_v54  ;;  %v491_v54 = vld [vmem:[%s7114_s1 + $0xf0] sm:$0xff]  ;;  %v541_v36 = vld [vmem:[%s7114_s1 + $0x280] sm:$0xff] }
  0xdc   : > { %835 = vmatmul.mubr.f32.gmra.mrb[6].mxu1 %v482_v50  ;;  %4222 = vmatprep.subr.bf16.mxu1 %v5068_v37  ;;  %v538_v50 = vld [vmem:[%s7114_s1 + $0x268] sm:$0xff] }
  0xdd   : > { %1030 = vmatmul.mubr.f32.gmra.mrb[6].mxu0 %v484_v55  ;;  %839 = vmatprep.mubr.f32.mxu1 %v490_v40  ;;  %v540_v55 = vld [vmem:[%s7114_s1 + $0x278] sm:$0xff] }
  0xde   : > { %3995 = vmatpush1.bf16.msra.mxu0 %v3994_v46  ;;  %1034 = vmatprep.mubr.f32.mxu0 %v492_v41  ;;  %v4018_v46 = vpack.c.bf16 %v730_v38, %v729_v45  ;;  %v548_v40 = vld [vmem:[%s7114_s1 + $0x2b8] sm:$0xff]  ;;  %v731_v41 = vld [vmem:[#allocation2 + $0x2c0] sm:$0xff]  ;;  %v494_v45 = vld [vmem:[%s7114_s1 + $0x108] sm:$0xff] }
  0xdf   : > { %3996 = vmatprep.subr.bf16.mxu0 %v5068_v37  ;;  %4238 = vmatpush1.bf16.msra.mxu1 %v5457_v62  ;;  %v504_v62 = vld [vmem:[%s7114_s1 + $0x158] sm:$0xff]  ;;  %v601_v38 = vld [vmem:[%s7114_s1 + $0x460] sm:$0xff] }
  0xe0   : > { %840 = vmatmul.mubr.f32.gmra.mrb[8].mxu1 %v489_v48  ;;  %4223 = vmatprep.subr.bf16.mxu1 %v5068_v37  ;;  %v547_v48 = vld [vmem:[%s7114_s1 + $0x2b0] sm:$0xff] }
  0xe1   : > { %1035 = vmatmul.mubr.f32.gmra.mrb[8].mxu0 %v491_v54  ;;  %844 = vmatprep.mubr.f32.mxu1 %v497_v53  ;;  %v4021_v54 = vpack.c.bf16 %v732_v49, %v731_v41  ;;  %v733_v53 = vld [vmem:[#allocation2 + $0x2d0] sm:$0xff]  ;;  %v501_v41 = vld [vmem:[%s7114_s1 + $0x140] sm:$0xff]  ;;  %v608_v49 = vld [vmem:[%s7114_s1 + $0x498] sm:$0xff] }
  0xe2   : > { %3998 = vmatpush1.bf16.msra.mxu0 %v3997_v52  ;;  %1039 = vmatprep.mubr.f32.mxu0 %v499_v57  ;;  %v555_v52 = vld [vmem:[%s7114_s1 + $0x2f0] sm:$0xff]  ;;  %v734_v57 = vld [vmem:[#allocation2 + $0x2d8] sm:$0xff] }
  0xe3   : > { %3999 = vmatprep.subr.bf16.mxu0 %v5068_v37  ;;  %4239 = vmatpush1.bf16.msra.mxu1 %v5462_v30  ;;  %v511_v30 = vld [vmem:[%s7114_s1 + $0x190] sm:$0xff] }
  0xe4   : > { %845 = vmatmul.mubr.f32.gmra.mrb[10].mxu1 %v496_v61  ;;  %4224 = vmatprep.subr.bf16.mxu1 %v5068_v37  ;;  %v4024_v61 = vpack.c.bf16 %v734_v57, %v733_v53  ;;  %v508_v53 = vld [vmem:[%s7114_s1 + $0x178] sm:$0xff]  ;;  %v615_v57 = vld [vmem:[%s7114_s1 + $0x4d0] sm:$0xff] }
  0xe5   : > { %1040 = vmatmul.mubr.f32.gmra.mrb[10].mxu0 %v498_v63  ;;  %849 = vmatprep.mubr.f32.mxu1 %v504_v62  ;;  %v562_v63 = vld [vmem:[%s7114_s1 + $0x328] sm:$0xff] }
  0xe6   : > { %4001 = vmatpush1.bf16.msra.mxu0 %v4000_v23  ;;  %1044 = vmatprep.mubr.f32.mxu0 %v506_v26  ;;  %v735_v23 = vld [vmem:[#allocation2 + $0x2e0] sm:$0xff]  ;;  %v736_v62 = vld [vmem:[#allocation2 + $0x2e8] sm:$0xff]  ;;  %v559_v26 = vld [vmem:[%s7114_s1 + $0x310] sm:$0xff] }
  0xe7   : > { %4002 = vmatprep.subr.bf16.mxu0 %v5068_v37  ;;  %4240 = vmatpush1.bf16.msra.mxu1 %v5467_v20  ;;  %v518_v20 = vld [vmem:[%s7114_s1 + $0x1c8] sm:$0xff]  ;;  %v4027_v15 = vpack.c.bf16 %v736_v62, %v735_v23  ;;  %v515_v23 = vld [vmem:[%s7114_s1 + $0x1b0] sm:$0xff] }
  0xe8   : > { %850 = vmatmul.mubr.f32.gmra.mrb[12].mxu1 %v503_v16  ;;  %4225 = vmatprep.subr.bf16.mxu1 %v5068_v37  ;;  %v569_v16 = vld [vmem:[%s7114_s1 + $0x360] sm:$0xff]  ;;  %v622_v62 = vld [vmem:[%s7114_s1 + $0x508] sm:$0xff] }
  0xe9   : > { %1045 = vmatmul.mubr.f32.gmra.mrb[12].mxu0 %v505_v17  ;;  %854 = vmatprep.mubr.f32.mxu1 %v511_v30  ;;  %v737_v17 = vld [vmem:[#allocation2 + $0x2f0] sm:$0xff]  ;;  %v566_v30 = vld [vmem:[%s7114_s1 + $0x348] sm:$0xff] }
  0xea   : > { %4004 = vmatpush1.bf16.msra.mxu0 %v4003_v19  ;;  %1049 = vmatprep.mubr.f32.mxu0 %v513_v21  ;;  %v738_v19 = vld [vmem:[#allocation2 + $0x2f8] sm:$0xff]  ;;  %v739_v21 = vld [vmem:[#allocation2 + $0x300] sm:$0xff] }
  0xeb   : > { %4005 = vmatprep.subr.bf16.mxu0 %v5068_v37  ;;  %4241 = vmatpush1.bf16.msra.mxu1 %v5478_v33  ;;  %v525_v33 = vld [vmem:[%s7114_s1 + $0x200] sm:$0xff] }
  0xec   : > { %855 = vmatmul.mubr.f32.gmra.mrb[14].mxu1 %v510_v28  ;;  %4226 = vmatprep.subr.bf16.mxu1 %v5068_v37  ;;  %v4030_v28 = vpack.c.bf16 %v738_v19, %v737_v17  ;;  %v521_v17 = vld [vmem:[%s7114_s1 + $0x1e0] sm:$0xff] }
  0xed   : > { %1050 = vmatmul.mubr.f32.gmra.mrb[14].mxu0 %v512_v31  ;;  %859 = vmatprep.mubr.f32.mxu1 %v518_v20  ;;  %v466_v31 = vld [vmem:[%s7114_s1 + $0x28] sm:$0xff]  ;;  %v573_v20 = vld [vmem:[%s7114_s1 + $0x380] sm:$0xff] }
  0xee   : > { %4007 = vmatpush1.bf16.msra.mxu0 %v4006_v32  ;;  %1054 = vmatprep.mubr.f32.mxu0 %v520_v34  ;;  %v5765_v32 = vpack.c.bf16 %v740_v22, %v739_v21  ;;  %v465_v34 = vld [vmem:[%s7114_s1 + $0x20] sm:$0xff]  ;;  %v636_v21 = vld [vmem:[%s7114_s1 + $0x578] sm:$0xff] }
  0xef   : > { %4008 = vmatprep.subr.bf16.mxu0 %v5068_v37  ;;  %4242 = vmatpush1.bf16.msra.mxu1 %v5483_v10  ;;  %v532_v10 = vld [vmem:[%s7114_s1 + $0x238] sm:$0xff]  ;;  %v637_v19 = vld [vmem:[%s7114_s1 + $0x580] sm:$0xff] }
  0xf0   : > { %860 = vmatmul.mubr.f32.gmra.mrb[16].mxu1 %v517_v12  ;;  %4227 = vmatprep.subr.bf16.mxu1 %v5068_v37  ;;  %v580_v12 = vld [vmem:[%s7114_s1 + $0x3b8] sm:$0xff] }
  0xf1   : > { %1055 = vmatmul.mubr.f32.gmra.mrb[16].mxu0 %v519_v11  ;;  %864 = vmatprep.mubr.f32.mxu1 %v525_v33  ;;  %v472_v11 = vld [vmem:[%s7114_s1 + $0x58] sm:$0xff]  ;;  %v743_v33 = vld [vmem:[#allocation2 + $0x320] sm:$0xff] }
  0xf2   : > { %4010 = vmatpush1.bf16.msra.mxu0 %v4009_v9  ;;  %1059 = vmatprep.mubr.f32.mxu0 %v527_v8  ;;  %v5789_v9 = vpack.c.bf16 %v742_v42, %v741_v35  ;;  %v744_v8 = vld [vmem:[#allocation2 + $0x328] sm:$0xff]  ;;  %v528_v22 = vld [vmem:[%s7114_s1 + $0x218] sm:$0xff] }
  0xf3   : > { %4011 = vmatprep.subr.bf16.mxu0 %v5068_v37  ;;  %4243 = vmatpush1.bf16.msra.mxu1 %v5488_v5  ;;  %v539_v5 = vld [vmem:[%s7114_s1 + $0x270] sm:$0xff]  ;;  %v542_v35 = vld [vmem:[%s7114_s1 + $0x288] sm:$0xff] }
  0xf4   : > { %865 = vmatmul.mubr.f32.gmra.mrb[18].mxu1 %v524_v7  ;;  %4228 = vmatprep.subr.bf16.mxu1 %v5068_v37  ;;  %v479_v7 = vld [vmem:[%s7114_s1 + $0x90] sm:$0xff]  ;;  %v590_v42 = vld [vmem:[%s7114_s1 + $0x408] sm:$0xff] }
  0xf5   : > { %1060 = vmatmul.mubr.f32.gmra.mrb[18].mxu0 %v526_v13  ;;  %869 = vmatprep.mubr.f32.mxu1 %v532_v10  ;;  %v5805_v13 = vpack.c.bf16 %v744_v8, %v743_v33  ;;  %v745_v10 = vld [vmem:[#allocation2 + $0x330] sm:$0xff]  ;;  %v556_v33 = vld [vmem:[%s7114_s1 + $0x2f8] sm:$0xff] }
  0xf6   : > { %4013 = vmatpush1.bf16.msra.mxu0 %v4012_v51  ;;  %1064 = vmatprep.mubr.f32.mxu0 %v534_v4  ;;  %v595_v51 = vld [vmem:[%s7114_s1 + $0x430] sm:$0xff]  ;;  %v746_v4 = vld [vmem:[#allocation2 + $0x338] sm:$0xff] }
  0xf7   : > { %4014 = vmatprep.subr.bf16.mxu0 %v5068_v37  ;;  %4244 = vmatpush1.bf16.msra.mxu1 %v5493_v0  ;;  %v546_v0 = vld [vmem:[%s7114_s1 + $0x2a8] sm:$0xff]  ;;  %v604_v8 = vld [vmem:[%s7114_s1 + $0x478] sm:$0xff] }
  0xf8   : > { %870 = vmatmul.mubr.f32.gmra.mrb[20].mxu1 %v531_v1  ;;  %4229 = vmatprep.subr.bf16.mxu1 %v5068_v37  ;;  %v486_v1 = vld [vmem:[%s7114_s1 + $0xc8] sm:$0xff] }
  0xf9   : > { %1065 = vmatmul.mubr.f32.gmra.mrb[20].mxu0 %v533_v43  ;;  %874 = vmatprep.mubr.f32.mxu1 %v539_v5  ;;  %v5821_v43 = vpack.c.bf16 %v746_v4, %v745_v10  ;;  %v747_v5 = vld [vmem:[#allocation2 + $0x340] sm:$0xff]  ;;  %v610_v10 = vld [vmem:[%s7114_s1 + $0x4a8] sm:$0xff] }
  0xfa   : > { %4016 = vmatpush1.bf16.msra.mxu0 %v4015_v44  ;;  %1069 = vmatprep.mubr.f32.mxu0 %v541_v36  ;;  %v602_v44 = vld [vmem:[%s7114_s1 + $0x468] sm:$0xff] }
  0xfb   : > { %4017 = vmatprep.subr.bf16.mxu0 %v5068_v37  ;;  %4245 = vmatpush1.bf16.msra.mxu1 %v5498_v39  ;;  %v553_v39 = vld [vmem:[%s7114_s1 + $0x2e0] sm:$0xff]  ;;  %v748_v36 = vld [vmem:[#allocation2 + $0x348] sm:$0xff] }
  0xfc   : > { %875 = vmatmul.mubr.f32.gmra.mrb[22].mxu1 %v538_v50  ;;  %4230 = vmatprep.subr.bf16.mxu1 %v5068_v37  ;;  %v493_v50 = vld [vmem:[%s7114_s1 + $0x100] sm:$0xff]  ;;  %v570_v4 = vld [vmem:[%s7114_s1 + $0x368] sm:$0xff] }
  0xfd   : > { %1070 = vmatmul.mubr.f32.gmra.mrb[22].mxu0 %v540_v55  ;;  %879 = vmatprep.mubr.f32.mxu1 %v546_v0  ;;  %v5837_v55 = vpack.c.bf16 %v748_v36, %v747_v5  ;;  %v749_v0 = vld [vmem:[#allocation2 + $0x350] sm:$0xff]  ;;  %v585_v5 = vld [vmem:[%s7114_s1 + $0x3e0] sm:$0xff]  ;;  %v624_v36 = vld [vmem:[%s7114_s1 + $0x518] sm:$0xff] }
  0xfe   : > { %4019 = vmatpush1.bf16.msra.mxu0 %v4018_v46  ;;  %1074 = vmatprep.mubr.f32.mxu0 %v548_v40  ;;  %v609_v46 = vld [vmem:[%s7114_s1 + $0x4a0] sm:$0xff]  ;;  %v750_v40 = vld [vmem:[#allocation2 + $0x358] sm:$0xff] }
  0xff   : > { %4020 = vmatprep.subr.bf16.mxu0 %v5068_v37  ;;  %4246 = vmatpush1.bf16.msra.mxu1 %v5503_v47  ;;  %v560_v47 = vld [vmem:[%s7114_s1 + $0x318] sm:$0xff] }
 0x100   : > { %880 = vmatmul.mubr.f32.gmra.mrb[24].mxu1 %v545_v56  ;;  %4231 = vmatprep.subr.bf16.mxu1 %v5068_v37  ;;  %v500_v56 = vld [vmem:[%s7114_s1 + $0x138] sm:$0xff] }
 0x101   : > { %1075 = vmatmul.mubr.f32.gmra.mrb[24].mxu0 %v547_v48  ;;  %884 = vmatprep.mubr.f32.mxu1 %v553_v39  ;;  %v5853_v48 = vpack.c.bf16 %v750_v40, %v749_v0  ;;  %v751_v39 = vld [vmem:[#allocation2 + $0x360] sm:$0xff]  ;;  %v639_v0 = vld [vmem:[%s7114_s1 + $0x590] sm:$0xff] }
 0x102   : > { %4022 = vmatpush1.bf16.msra.mxu0 %v4021_v54  ;;  %1079 = vmatprep.mubr.f32.mxu0 %v555_v52  ;;  %v616_v54 = vld [vmem:[%s7114_s1 + $0x4d8] sm:$0xff]  ;;  %v752_v52 = vld [vmem:[#allocation2 + $0x368] sm:$0xff]  ;;  %v599_v40 = vld [vmem:[%s7114_s1 + $0x450] sm:$0xff] }
 0x103   : > { %4023 = vmatprep.subr.bf16.mxu0 %v5068_v37  ;;  %4247 = vmatpush1.bf16.msra.mxu1 %v5508_v58  ;;  %v567_v58 = vld [vmem:[%s7114_s1 + $0x350] sm:$0xff] }
 0x104   : > { %885 = vmatmul.mubr.f32.gmra.mrb[26].mxu1 %v552_v59  ;;  %4232 = vmatprep.subr.bf16.mxu1 %v5068_v37  ;;  %v507_v59 = vld [vmem:[%s7114_s1 + $0x170] sm:$0xff] }
 0x105   : > { %1080 = vmatmul.mubr.f32.gmra.mrb[26].mxu0 %v554_v60  ;;  %889 = vmatprep.mubr.f32.mxu1 %v560_v47  ;;  %v5869_v60 = vpack.c.bf16 %v752_v52, %v751_v39  ;;  %v753_v47 = vld [vmem:[#allocation2 + $0x370] sm:$0xff]  ;;  %v605_v39 = vld [vmem:[%s7114_s1 + $0x480] sm:$0xff] }
 0x106   : > { %4025 = vmatpush1.bf16.msra.mxu0 %v4024_v61  ;;  %1084 = vmatprep.mubr.f32.mxu0 %v562_v63  ;;  %v623_v61 = vld [vmem:[%s7114_s1 + $0x510] sm:$0xff]  ;;  %v754_v63 = vld [vmem:[#allocation2 + $0x378] sm:$0xff] }
 0x107   : > { %4026 = vmatprep.subr.bf16.mxu0 %v5068_v37  ;;  %4248 = vmatpush1.bf16.msra.mxu1 %v5513_v25  ;;  %v574_v25 = vld [vmem:[%s7114_s1 + $0x388] sm:$0xff]  ;;  %v523_v52 = vld [vmem:[%s7114_s1 + $0x1f0] sm:$0xff] }
 0x108   : > { %890 = vmatmul.mubr.f32.gmra.mrb[28].mxu1 %v559_v26  ;;  %4233 = vmatprep.subr.bf16.mxu1 %v5068_v37  ;;  %v5882_v26 = vpack.c.bf16 %v754_v63, %v753_v47  ;;  %v544_v47 = vld [vmem:[%s7114_s1 + $0x298] sm:$0xff]  ;;  %v619_v63 = vld [vmem:[%s7114_s1 + $0x4f0] sm:$0xff] }
 0x109   : > { %1085 = vmatmul.mubr.f32.gmra.mrb[28].mxu0 %v561_v27  ;;  %894 = vmatprep.mubr.f32.mxu1 %v567_v58  ;;  %v514_v27 = vld [vmem:[%s7114_s1 + $0x1a8] sm:$0xff] }
 0x10a   : > { %4028 = vmatpush1.bf16.msra.mxu0 %v4027_v15  ;;  %1089 = vmatprep.mubr.f32.mxu0 %v569_v16  ;;  %v630_v15 = vld [vmem:[%s7114_s1 + $0x548] sm:$0xff]  ;;  %v629_v16 = vld [vmem:[%s7114_s1 + $0x540] sm:$0xff] }
 0x10b   : > { %4029 = vmatprep.subr.bf16.mxu0 %v5068_v37  ;;  %4249 = vmatpush1.bf16.msra.mxu1 %v5518_v18  ;;  %v581_v18 = vld [vmem:[%s7114_s1 + $0x3c0] sm:$0xff]  ;;  %v522_v58 = vld [vmem:[%s7114_s1 + $0x1e8] sm:$0xff] }
 0x10c   : > { %895 = vmatmul.mubr.f32.gmra.mrb[30].mxu1 %v566_v30  ;;  %4234 = vmatprep.subr.bf16.mxu1 %v5068_v37  ;;  %v473_v37 = vld [vmem:[%s7114_s1 + $0x60] sm:$0xff] }
 0x10d   : > { %1090 = vmatmul.mubr.f32.gmra.mrb[30].mxu0 %v568_v24  ;;  %899 = vmatprep.mubr.f32.mxu1 %v574_v25  ;;  %v529_v30 = vld [vmem:[%s7114_s1 + $0x220] sm:$0xff]  ;;  %v576_v24 = vld [vmem:[%s7114_s1 + $0x398] sm:$0xff]  ;;  %v575_v25 = vld [vmem:[%s7114_s1 + $0x390] sm:$0xff] }
 0x10e   : > { %4031 = vmatpush1.bf16.msra.mxu0 %v4030_v28  ;;  %1209 = vmatprep.mubr.f32.mxu0 %v466_v31  ;;  %v536_v28 = vld [vmem:[%s7114_s1 + $0x258] sm:$0xff]  ;;  %v535_v31 = vld [vmem:[%s7114_s1 + $0x250] sm:$0xff] }
 0x10f   : > { %4033 = vmatprep.subr.bf16.mxu0 %v5765_v32  ;;  %4250 = vmatpush1.bf16.msra.mxu1 %v5523_v29  ;;  %v588_v29 = vld [vmem:[%s7114_s1 + $0x3f8] sm:$0xff] }
 0x110   : > { %900 = vmatmul.mubr.f32.gmra.mrb[32].mxu1 %v573_v20  ;;  %4251 = vmatprep.subr.bf16.mxu1 %v5765_v32  ;;  %v583_v20 = vld [vmem:[%s7114_s1 + $0x3d0] sm:$0xff] }
 0x111   : > { %1210 = vmatmul.mubr.f32.vlgmr.msra.gmra.mrb[0].mxu0 %v465_v34  ;;  %904 = vmatprep.mubr.f32.mxu1 %v581_v18  ;;  %v543_v34 = vld [vmem:[%s7114_s1 + $0x290] sm:$0xff]  ;;  %v582_v18 = vld [vmem:[%s7114_s1 + $0x3c8] sm:$0xff] }
 0x112   : > { %1214 = vmatprep.mubr.f32.mxu0 %v473_v37  ;;  %4035 = vmatpush3.bf16.msra.mxu0 %v5765_v32  ;;  %v589_v37 = vld [vmem:[%s7114_s1 + $0x400] sm:$0xff] }
 0x113   : > { %4037 = vmatprep.subr.bf16.mxu0 %v5789_v9 }
 0x114   : > { %905 = vmatmul.mubr.f32.gmra.mrb[34].mxu1 %v580_v12  ;;  %v549_v12 = vld [vmem:[%s7114_s1 + $0x2c0] sm:$0xff] }
 0x115   : > { %1215 = vmatmul.mubr.f32.gmra.mrb[2].mxu0 %v472_v11  ;;  %909 = vmatprep.mubr.f32.mxu1 %v588_v29  ;;  %v597_v11 = vld [vmem:[%s7114_s1 + $0x440] sm:$0xff]  ;;  %v596_v29 = vld [vmem:[%s7114_s1 + $0x438] sm:$0xff] }
 0x116   : > { %1219 = vmatprep.mubr.f32.mxu0 %v480_v14  ;;  %4039 = vmatpush3.bf16.msra.mxu0 %v5789_v9  ;;  %v564_v14 = vld [vmem:[%s7114_s1 + $0x338] sm:$0xff] }
 0x117   : > { %4041 = vmatprep.subr.bf16.mxu0 %v5805_v13 }
 0x118   : > { %910 = vmatmul.mubr.f32.gmra.mrb[36].mxu1 %v587_v6  ;;  %v603_v6 = vld [vmem:[%s7114_s1 + $0x470] sm:$0xff] }
 0x119   : > { %1220 = vmatmul.mubr.f32.gmra.mrb[4].mxu0 %v479_v7  ;;  %914 = vmatprep.mubr.f32.mxu1 %v595_v51  ;;  %v563_v7 = vld [vmem:[%s7114_s1 + $0x330] sm:$0xff] }
 0x11a   : > { %1224 = vmatprep.mubr.f32.mxu0 %v487_v3  ;;  %4043 = vmatpush3.bf16.msra.mxu0 %v5805_v13  ;;  %v571_v51 = vld [vmem:[%s7114_s1 + $0x370] sm:$0xff]  ;;  %v618_v3 = vld [vmem:[%s7114_s1 + $0x4e8] sm:$0xff] }
 0x11b   : > { %4045 = vmatprep.subr.bf16.mxu0 %v5821_v43 }
 0x11c   : > { %915 = vmatmul.mubr.f32.gmra.mrb[38].mxu1 %v594_v2  ;;  %v578_v2 = vld [vmem:[%s7114_s1 + $0x3a8] sm:$0xff] }
 0x11d   : > { %1225 = vmatmul.mubr.f32.gmra.mrb[6].mxu0 %v486_v1  ;;  %919 = vmatprep.mubr.f32.mxu1 %v602_v44  ;;  %v617_v1 = vld [vmem:[%s7114_s1 + $0x4e0] sm:$0xff] }
 0x11e   : > { %1229 = vmatprep.mubr.f32.mxu0 %v494_v45  ;;  %4047 = vmatpush3.bf16.msra.mxu0 %v5821_v43  ;;  %v625_v44 = vld [vmem:[%s7114_s1 + $0x520] sm:$0xff]  ;;  %v584_v45 = vld [vmem:[%s7114_s1 + $0x3d8] sm:$0xff] }
 0x11f   : > { %4049 = vmatprep.subr.bf16.mxu0 %v5837_v55 }
 0x120   : > { %920 = vmatmul.mubr.f32.gmra.mrb[40].mxu1 %v601_v38  ;;  %v632_v38 = vld [vmem:[%s7114_s1 + $0x558] sm:$0xff] }
 0x121   : > { %1230 = vmatmul.mubr.f32.gmra.mrb[8].mxu0 %v493_v50  ;;  %924 = vmatprep.mubr.f32.mxu1 %v609_v46  ;;  %v592_v50 = vld [vmem:[%s7114_s1 + $0x418] sm:$0xff]  ;;  %v591_v46 = vld [vmem:[%s7114_s1 + $0x410] sm:$0xff] }
 0x122   : > { %1234 = vmatprep.mubr.f32.mxu0 %v501_v41  ;;  %4051 = vmatpush3.bf16.msra.mxu0 %v5837_v55  ;;  %v638_v41 = vld [vmem:[%s7114_s1 + $0x588] sm:$0xff] }
 0x123   : > { %4053 = vmatprep.subr.bf16.mxu0 %v5853_v48 }
 0x124   : > { %925 = vmatmul.mubr.f32.gmra.mrb[42].mxu1 %v608_v49  ;;  %v598_v49 = vld [vmem:[%s7114_s1 + $0x448] sm:$0xff] }
 0x125   : > { %1235 = vmatmul.mubr.f32.gmra.mrb[10].mxu0 %v500_v56  ;;  %929 = vmatprep.mubr.f32.mxu1 %v616_v54  ;;  %v509_v56 = vld [vmem:[%s7114_s1 + $0x180] sm:$0xff]  ;;  %v516_v54 = vld [vmem:[%s7114_s1 + $0x1b8] sm:$0xff] }
 0x126   : > { %1239 = vmatprep.mubr.f32.mxu0 %v508_v53  ;;  %4055 = vmatpush3.bf16.msra.mxu0 %v5853_v48  ;;  %v613_v53 = vld [vmem:[%s7114_s1 + $0x4c0] sm:$0xff] }
 0x127   : > { %4057 = vmatprep.subr.bf16.mxu0 %v5869_v60 }
 0x128   : > { %930 = vmatmul.mubr.f32.gmra.mrb[44].mxu1 %v615_v57  ;;  %v530_v57 = vld [vmem:[%s7114_s1 + $0x228] sm:$0xff] }
 0x129   : > { %1240 = vmatmul.mubr.f32.gmra.mrb[12].mxu0 %v507_v59  ;;  %934 = vmatprep.mubr.f32.mxu1 %v623_v61  ;;  %v612_v59 = vld [vmem:[%s7114_s1 + $0x4b8] sm:$0xff] }
 0x12a   : > { %1244 = vmatprep.mubr.f32.mxu0 %v515_v23  ;;  %4059 = vmatpush3.bf16.msra.mxu0 %v5869_v60  ;;  %v620_v61 = vld [vmem:[%s7114_s1 + $0x4f8] sm:$0xff]  ;;  %v551_v23 = vld [vmem:[%s7114_s1 + $0x2d0] sm:$0xff] }
 0x12b   : > { %4061 = vmatprep.subr.bf16.mxu0 %v5882_v26 }
 0x12c   : > { %935 = vmatmul.mubr.f32.gmra.mrb[46].mxu1 %v622_v62  ;;  %v627_v62 = vld [vmem:[%s7114_s1 + $0x530] sm:$0xff] }
 0x12d   : > { %1245 = vmatmul.mubr.f32.gmra.mrb[14].mxu0 %v514_v27  ;;  %939 = vmatprep.mubr.f32.mxu1 %v630_v15  ;;  %v626_v27 = vld [vmem:[%s7114_s1 + $0x528] sm:$0xff]  ;;  %v565_v15 = vld [vmem:[%s7114_s1 + $0x340] sm:$0xff] }
 0x12e   : > { %1249 = vmatprep.mubr.f32.mxu0 %v522_v58  ;;  %4063 = vmatpush3.bf16.msra.mxu0 %v5882_v26  ;;  %v634_v58 = vld [vmem:[%s7114_s1 + $0x568] sm:$0xff] }
 0x130   : > { %940 = vmatmul.mubr.f32.gmra.mrb[48].mxu1 %v629_v16  ;;  %v572_v16 = vld [vmem:[%s7114_s1 + $0x378] sm:$0xff] }
 0x131   : > { %1250 = vmatmul.mubr.f32.gmra.mrb[16].mxu0 %v521_v17  ;;  %944 = vmatprep.mubr.f32.mxu1 %v637_v19  ;;  %v633_v17 = vld [vmem:[%s7114_s1 + $0x560] sm:$0xff]  ;;  %v579_v19 = vld [vmem:[%s7114_s1 + $0x3b0] sm:$0xff] }
 0x132   : > { %1254 = vmatprep.mubr.f32.mxu0 %v529_v30  ;;  %v641_v30 = vld [vmem:[%s7114_s1 + $0x5a0] sm:$0xff] }
 0x134   : > { %945 = vmatmul.mubr.f32.gmra.mrb[50].mxu1 %v636_v21  ;;  %v586_v21 = vld [vmem:[%s7114_s1 + $0x3e8] sm:$0xff] }
 0x135   : > { %1255 = vmatmul.mubr.f32.gmra.mrb[18].mxu0 %v528_v22  ;;  %1094 = vmatprep.mubr.f32.mxu1 %v576_v24  ;;  %v640_v22 = vld [vmem:[%s7114_s1 + $0x598] sm:$0xff]  ;;  %v593_v24 = vld [vmem:[%s7114_s1 + $0x420] sm:$0xff] }
 0x136   : > { %1259 = vmatprep.mubr.f32.mxu0 %v536_v28  ;;  %v467_v28 = vld [vmem:[%s7114_s1 + $0x30] sm:$0xff] }
 0x138   : > { %1095 = vmatmul.mubr.f32.vlgmr.msra.gmra.mrb[32].mxu1 %v575_v25  ;;  %v600_v25 = vld [vmem:[%s7114_s1 + $0x458] sm:$0xff] }
 0x139   : > { %1260 = vmatmul.mubr.f32.gmra.mrb[20].mxu0 %v535_v31  ;;  %4259 = vmatpush3.bf16.msra.mxu1 %v5765_v32  ;;  %v550_v32 = vld [vmem:[%s7114_s1 + $0x2c8] sm:$0xff] }
 0x13a   : > { %1099 = vmatprep.mubr.f32.mxu1 %v583_v20  ;;  %1264 = vmatprep.mubr.f32.mxu0 %v543_v34  ;;  %v474_v31 = vld [vmem:[%s7114_s1 + $0x68] sm:$0xff]  ;;  %v607_v20 = vld [vmem:[%s7114_s1 + $0x490] sm:$0xff]  ;;  %v481_v34 = vld [vmem:[%s7114_s1 + $0xa0] sm:$0xff] }
 0x13b   : > { %4252 = vmatprep.subr.bf16.mxu1 %v5789_v9 }
 0x13c   : > { %1100 = vmatmul.mubr.f32.gmra.mrb[34].mxu1 %v582_v18  ;;  %v614_v18 = vld [vmem:[%s7114_s1 + $0x4c8] sm:$0xff] }
 0x13d   : > { %1265 = vmatmul.mubr.f32.gmra.mrb[22].mxu0 %v542_v35  ;;  %4260 = vmatpush3.bf16.msra.mxu1 %v5789_v9  ;;  %v557_v9 = vld [vmem:[%s7114_s1 + $0x300] sm:$0xff]  ;;  %v488_v35 = vld [vmem:[%s7114_s1 + $0xd8] sm:$0xff] }
 0x13e   : > { %1104 = vmatprep.mubr.f32.mxu1 %v590_v42  ;;  %1269 = vmatprep.mubr.f32.mxu0 %v550_v32  ;;  %v621_v42 = vld [vmem:[%s7114_s1 + $0x500] sm:$0xff]  ;;  %v495_v32 = vld [vmem:[%s7114_s1 + $0x110] sm:$0xff] }
 0x13f   : > { %4253 = vmatprep.subr.bf16.mxu1 %v5805_v13 }
 0x140   : > { %1105 = vmatmul.mubr.f32.gmra.mrb[36].mxu1 %v589_v37  ;;  %v628_v37 = vld [vmem:[%s7114_s1 + $0x538] sm:$0xff] }
 0x141   : > { %1270 = vmatmul.mubr.f32.gmra.mrb[24].mxu0 %v549_v12  ;;  %1109 = vmatprep.mubr.f32.mxu1 %v597_v11  ;;  %v502_v12 = vld [vmem:[%s7114_s1 + $0x148] sm:$0xff]  ;;  %v635_v11 = vld [vmem:[%s7114_s1 + $0x570] sm:$0xff] }
 0x142   : > { %1274 = vmatprep.mubr.f32.mxu0 %v557_v9  ;;  %4261 = vmatpush3.bf16.msra.mxu1 %v5805_v13  ;;  %v611_v13 = vld [vmem:[%s7114_s1 + $0x4b0] sm:$0xff]  ;;  %v642_v9 = vld [vmem:[%s7114_s1 + $0x5a8] sm:$0xff] }
 0x143   : > { %4254 = vmatprep.subr.bf16.mxu1 %v5821_v43 }
 0x144   : > { %1110 = vmatmul.mubr.f32.gmra.mrb[38].mxu1 %v596_v29 }
 0x145   : > { %1275 = vmatmul.mubr.f32.gmra.mrb[26].mxu0 %v556_v33  ;;  %1114 = vmatprep.mubr.f32.mxu1 %v604_v8 }
 0x146   : > { %1279 = vmatprep.mubr.f32.mxu0 %v564_v14  ;;  %4262 = vmatpush3.bf16.msra.mxu1 %v5821_v43  ;;  %v577_v43 = vld [vmem:[%s7114_s1 + $0x3a0] sm:$0xff] }
 0x147   : > { %4255 = vmatprep.subr.bf16.mxu1 %v5837_v55 }
 0x148   : > { %1115 = vmatmul.mubr.f32.gmra.mrb[40].mxu1 %v603_v6 }
 0x149   : > { %1280 = vmatmul.mubr.f32.gmra.mrb[28].mxu0 %v563_v7  ;;  %1119 = vmatprep.mubr.f32.mxu1 %v611_v13 }
 0x14a   : > { %1284 = vmatprep.mubr.f32.mxu0 %v571_v51  ;;  %4263 = vmatpush3.bf16.msra.mxu1 %v5837_v55  ;;  %v631_v55 = vld [vmem:[%s7114_s1 + $0x550] sm:$0xff] }
 0x14b   : > { %4256 = vmatprep.subr.bf16.mxu1 %v5853_v48 }
 0x14c   : > { %1120 = vmatmul.mubr.f32.gmra.mrb[42].mxu1 %v610_v10 }
 0x14d   : > { %1285 = vmatmul.mubr.f32.gmra.mrb[30].mxu0 %v570_v4  ;;  %1124 = vmatprep.mubr.f32.mxu1 %v618_v3 }
 0x14e   : > { %1289 = vmatprep.mubr.f32.mxu0 %v578_v2  ;;  %4264 = vmatpush3.bf16.msra.mxu1 %v5853_v48  ;;  %v606_v48 = vld [vmem:[%s7114_s1 + $0x488] sm:$0xff] }
 0x14f   : > { %4257 = vmatprep.subr.bf16.mxu1 %v5869_v60 }
 0x150   : > { %1125 = vmatmul.mubr.f32.gmra.mrb[44].mxu1 %v617_v1 }
 0x151   : > { %1290 = vmatmul.mubr.f32.gmra.mrb[32].mxu0 %v577_v43  ;;  %1129 = vmatprep.mubr.f32.mxu1 %v625_v44 }
 0x152   : > { %1294 = vmatprep.mubr.f32.mxu0 %v585_v5  ;;  %4265 = vmatpush3.bf16.msra.mxu1 %v5869_v60  ;;  %v537_v60 = vld [vmem:[%s7114_s1 + $0x260] sm:$0xff] }
 0x153   : > { %4258 = vmatprep.subr.bf16.mxu1 %v5882_v26 }
 0x154   : > { %1130 = vmatmul.mubr.f32.gmra.mrb[46].mxu1 %v624_v36 }
 0x155   : > { %1295 = vmatmul.mubr.f32.gmra.mrb[34].mxu0 %v584_v45  ;;  %1134 = vmatprep.mubr.f32.mxu1 %v632_v38 }
 0x156   : > { %1299 = vmatprep.mubr.f32.mxu0 %v592_v50  ;;  %4266 = vmatpush3.bf16.msra.mxu1 %v5882_v26  ;;  %v558_v26 = vld [vmem:[%s7114_s1 + $0x308] sm:$0xff] }
 0x158   : > { %1135 = vmatmul.mubr.f32.gmra.mrb[48].mxu1 %v631_v55 }
 0x159   : > { %1300 = vmatmul.mubr.f32.gmra.mrb[36].mxu0 %v591_v46  ;;  %1139 = vmatprep.mubr.f32.mxu1 %v639_v0 }
 0x15a   : > { %1304 = vmatprep.mubr.f32.mxu0 %v599_v40 }
 0x15c   : > { %1140 = vmatmul.mubr.f32.gmra.mrb[50].mxu1 %v638_v41 }
 0x15d   : > { %1305 = vmatmul.mubr.f32.gmra.mrb[38].mxu0 %v598_v49  ;;  %3746 = vmatprep.mubr.f32.mxu1 %v509_v56 }
 0x15e   : > { %1309 = vmatprep.mubr.f32.mxu0 %v606_v48 }
 0x160   : > { %3747 = vmatmul.mubr.f32.vlgmr.msra.gmra.mrb[52].mxu1 %v516_v54 }
 0x161   : > { %1310 = vmatmul.mubr.f32.gmra.mrb[40].mxu0 %v605_v39  ;;  %3749 = vmatprep.mubr.f32.mxu1 %v523_v52 }
 0x162   : > { %1314 = vmatprep.mubr.f32.mxu0 %v613_v53 }
 0x164   : > { %3750 = vmatmul.mubr.f32.gmra.mrb[54].mxu1 %v530_v57 }
 0x165   : > { %1315 = vmatmul.mubr.f32.gmra.mrb[42].mxu0 %v612_v59  ;;  %3752 = vmatprep.mubr.f32.mxu1 %v537_v60 }
 0x166   : > { %1319 = vmatprep.mubr.f32.mxu0 %v620_v61 }
 0x168   : > { %3753 = vmatmul.mubr.f32.gmra.mrb[56].mxu1 %v544_v47 }
 0x169   : > { %1320 = vmatmul.mubr.f32.gmra.mrb[44].mxu0 %v619_v63  ;;  %3755 = vmatprep.mubr.f32.mxu1 %v551_v23 }
 0x16a   : > { %1324 = vmatprep.mubr.f32.mxu0 %v627_v62 }
 0x16c   : > { %3756 = vmatmul.mubr.f32.gmra.mrb[58].mxu1 %v558_v26 }
 0x16d   : > { %1325 = vmatmul.mubr.f32.gmra.mrb[46].mxu0 %v626_v27  ;;  %3758 = vmatprep.mubr.f32.mxu1 %v565_v15 }
 0x16e   : > { %1329 = vmatprep.mubr.f32.mxu0 %v634_v58 }
 0x170   : > { %3759 = vmatmul.mubr.f32.gmra.mrb[60].mxu1 %v572_v16 }
 0x171   : > { %1330 = vmatmul.mubr.f32.gmra.mrb[48].mxu0 %v633_v17  ;;  %3761 = vmatprep.mubr.f32.mxu1 %v579_v19 }
 0x172   : > { %1334 = vmatprep.mubr.f32.mxu0 %v641_v30 }
 0x174   : > { %3762 = vmatmul.mubr.f32.gmra.mrb[62].mxu1 %v586_v21 }
 0x175   : > { %1335 = vmatmul.mubr.f32.gmra.mrb[50].mxu0 %v640_v22  ;;  %3764 = vmatprep.mubr.f32.mxu1 %v593_v24 }
 0x176   : > { %3737 = vmatprep.mubr.f32.mxu0 %v467_v28 }
 0x178   : > { %3765 = vmatmul.mubr.f32.gmra.mrb[64].mxu1 %v600_v25 }
 0x179   : > { %3738 = vmatmul.mubr.f32.vlgmr.msra.gmra.mrb[52].mxu0 %v474_v31  ;;  %3767 = vmatprep.mubr.f32.mxu1 %v607_v20 }
 0x17a   : > { %3740 = vmatprep.mubr.f32.mxu0 %v481_v34 }
 0x17c   : > { %3768 = vmatmul.mubr.f32.gmra.mrb[66].mxu1 %v614_v18 }
 0x17d   : > { %3741 = vmatmul.mubr.f32.gmra.mrb[54].mxu0 %v488_v35  ;;  %3770 = vmatprep.mubr.f32.mxu1 %v621_v42 }
 0x17e   : > { %3743 = vmatprep.mubr.f32.mxu0 %v495_v32 }
 0x180   : > { %3771 = vmatmul.mubr.f32.gmra.mrb[68].mxu1 %v628_v37 }
 0x181   : > { %3744 = vmatmul.mubr.f32.gmra.mrb[56].mxu0 %v502_v12  ;;  %3773 = vmatprep.mubr.f32.mxu1 %v635_v11 }
 0x184   : > { %3774 = vmatmul.mubr.f32.gmra.mrb[70].mxu1 %v642_v9 }
 0x1a3   : > { %v821_v29 = vpop.f32.mrb[0].mxu1 }
 0x1a4   : > { %v823_v33 = vpop.f32.mrb[1].mxu1 }
 0x1a7   : > { %v826_v8 = vpop.f32.mrb[2].mxu1 }
 0x1a8   : > { %v828_v14 = vpop.f32.mrb[3].mxu1 }
 0x1ab   : > { %v831_v6 = vpop.f32.mrb[4].mxu1 }
 0x1ac   : > { %v833_v7 = vpop.f32.mrb[5].mxu1 }
 0x1af   : > { %v836_v13 = vpop.f32.mrb[6].mxu1 }
 0x1b0   : > { %v838_v51 = vpop.f32.mrb[7].mxu1 }
 0x1b3   : > { %v841_v10 = vpop.f32.mrb[8].mxu1 }
 0x1b4   : > { %v843_v4 = vpop.f32.mrb[9].mxu1 }
 0x1b7   : > { %v846_v3 = vpop.f32.mrb[10].mxu1 }
 0x1b8   : > { %v848_v2 = vpop.f32.mrb[11].mxu1 }
 0x1bb   : > { %v851_v1 = vpop.f32.mrb[12].mxu1 }
 0x1bc   : > { %v853_v43 = vpop.f32.mrb[13].mxu1 }
 0x1bf   : > { %v856_v44 = vpop.f32.mrb[14].mxu1 }
 0x1c0   : > { %v858_v5 = vpop.f32.mrb[15].mxu1 }
 0x1c3   : > { %v861_v36 = vpop.f32.mrb[16].mxu1 }
 0x1c4   : > { %v863_v45 = vpop.f32.mrb[17].mxu1 }
 0x1c7   : > { %v866_v38 = vpop.f32.mrb[18].mxu1 }
 0x1c8   : > { %v868_v50 = vpop.f32.mrb[19].mxu1 }
 0x1cb   : > { %v871_v55 = vpop.f32.mrb[20].mxu1 }
 0x1cc   : > { %v873_v46 = vpop.f32.mrb[21].mxu1 }
 0x1cf   : > { %v876_v0 = vpop.f32.mrb[22].mxu1 }
 0x1d0   : > { %v878_v40 = vpop.f32.mrb[23].mxu1 }
 0x1d3   : > { %v881_v41 = vpop.f32.mrb[24].mxu1 }
 0x1d4   : > { %v883_v49 = vpop.f32.mrb[25].mxu1 }
 0x1d7   : > { %v886_v56 = vpop.f32.mrb[26].mxu1 }
 0x1d8   : > { %v888_v48 = vpop.f32.mrb[27].mxu1 }
 0x1db   : > { %v891_v54 = vpop.f32.mrb[28].mxu1 }
 0x1dc   : > { %v893_v39 = vpop.f32.mrb[29].mxu1 }
 0x1df   : > { %v896_v52 = vpop.f32.mrb[30].mxu1 }
 0x1e0   : > { %v898_v53 = vpop.f32.mrb[31].mxu1 }
 0x1e4   : > { %v1211_v57 = vpop.f32.mrb[0].mxu0 }
 0x1e5   : > { %v6163_v59 = vadd.f32 %v1211_v57, %v821_v29  ;;  %v1213_v60 = vpop.f32.mrb[1].mxu0 }
 0x1e8   : > { %v1216_v61 = vpop.f32.mrb[2].mxu0 }
 0x1e9   : > { %v6165_v47 = vadd.f32 %v1216_v61, %v826_v8  ;;  %v1218_v63 = vpop.f32.mrb[3].mxu0 }
 0x1ec   : > { %v1221_v23 = vpop.f32.mrb[4].mxu0 }
 0x1ed   : > { %v6167_v62 = vadd.f32 %v1221_v23, %v831_v6  ;;  %v1223_v26 = vpop.f32.mrb[5].mxu0 }
 0x1f0   : > { %v1226_v27 = vpop.f32.mrb[6].mxu0 }
 0x1f1   : > { %v6169_v15 = vadd.f32 %v1226_v27, %v836_v13  ;;  %v1228_v58 = vpop.f32.mrb[7].mxu0 }
 0x1f4   : > { %v1231_v16 = vpop.f32.mrb[8].mxu0 }
 0x1f5   : > { %v6171_v17 = vadd.f32 %v1231_v16, %v841_v10  ;;  %v1233_v19 = vpop.f32.mrb[9].mxu0 }
 0x1f8   : > { %v1236_v30 = vpop.f32.mrb[10].mxu0 }
 0x1f9   : > { %v6173_v21 = vadd.f32 %v1236_v30, %v846_v3  ;;  %v1238_v22 = vpop.f32.mrb[11].mxu0 }
 0x1fc   : > { %v1241_v24 = vpop.f32.mrb[12].mxu0 }
 0x1fd   : > { %v6175_v28 = vadd.f32 %v1241_v24, %v851_v1  ;;  %v1243_v25 = vpop.f32.mrb[13].mxu0 }
 0x200   : > { %v1246_v31 = vpop.f32.mrb[14].mxu0 }
 0x201   : > { %v4274_v20 = vadd.f32 %v1246_v31, %v856_v44  ;;  %v1248_v34 = vpop.f32.mrb[15].mxu0 }
 0x204   : > { %v1251_v18 = vpop.f32.mrb[16].mxu0 }
 0x205   : > { %v6177_v35 = vadd.f32 %v1251_v18, %v861_v36  ;;  %v1253_v42 = vpop.f32.mrb[17].mxu0 }
 0x208   : > { %v1256_v32 = vpop.f32.mrb[18].mxu0 }
 0x209   : > { %v6179_v37 = vadd.f32 %v1256_v32, %v866_v38  ;;  %v1258_v12 = vpop.f32.mrb[19].mxu0 }
 0x20b   : > { %v1096_v11 = vpop.f32.mrb[32].mxu1 }
 0x20c   : > { %v1261_v9 = vpop.f32.mrb[20].mxu0  ;;  %v1098_v29 = vpop.f32.mrb[33].mxu1 }
 0x20d   : > { %v6181_v33 = vadd.f32 %v1261_v9, %v871_v55  ;;  %v1263_v8 = vpop.f32.mrb[21].mxu0 }
 0x20f   : > { %v1101_v14 = vpop.f32.mrb[34].mxu1 }
 0x210   : > { %v1266_v6 = vpop.f32.mrb[22].mxu0  ;;  %v1103_v7 = vpop.f32.mrb[35].mxu1 }
 0x211   : > { %v6183_v13 = vadd.f32 %v1266_v6, %v876_v0  ;;  %v1268_v51 = vpop.f32.mrb[23].mxu0 }
 0x213   : > { %v1106_v10 = vpop.f32.mrb[36].mxu1 }
 0x214   : > { %v1271_v4 = vpop.f32.mrb[24].mxu0  ;;  %v1108_v3 = vpop.f32.mrb[37].mxu1 }
 0x215   : > { %v6185_v2 = vadd.f32 %v1271_v4, %v881_v41  ;;  %v1273_v1 = vpop.f32.mrb[25].mxu0 }
 0x217   : > { %v1111_v43 = vpop.f32.mrb[38].mxu1 }
 0x218   : > { %v1276_v44 = vpop.f32.mrb[26].mxu0  ;;  %v1113_v5 = vpop.f32.mrb[39].mxu1 }
 0x219   : > { %v6187_v36 = vadd.f32 %v1276_v44, %v886_v56  ;;  %v1278_v45 = vpop.f32.mrb[27].mxu0 }
 0x21b   : > { %v1116_v38 = vpop.f32.mrb[40].mxu1 }
 0x21c   : > { %v1281_v50 = vpop.f32.mrb[28].mxu0  ;;  %v1118_v55 = vpop.f32.mrb[41].mxu1 }
 0x21d   : > { %v6189_v46 = vadd.f32 %v1281_v50, %v891_v54  ;;  %v1283_v0 = vpop.f32.mrb[29].mxu0 }
 0x21f   : > { %v1121_v40 = vpop.f32.mrb[42].mxu1 }
 0x220   : > { %v1286_v49 = vpop.f32.mrb[30].mxu0  ;;  %v1123_v48 = vpop.f32.mrb[43].mxu1 }
 0x221   : > { %v4282_v39 = vadd.f32 %v1286_v49, %v896_v52  ;;  %v1288_v53 = vpop.f32.mrb[31].mxu0 }
 0x223   : > { %v1126_v41 = vpop.f32.mrb[44].mxu1 }
 0x224   : > { %v1291_v57 = vpop.f32.mrb[32].mxu0  ;;  %v1128_v60 = vpop.f32.mrb[45].mxu1 }
 0x225   : > { %v6191_v61 = vadd.f32 %v1291_v57, %v1096_v11  ;;  %v1293_v56 = vpop.f32.mrb[33].mxu0 }
 0x227   : > { %v1131_v63 = vpop.f32.mrb[46].mxu1 }
 0x228   : > { %v1296_v23 = vpop.f32.mrb[34].mxu0  ;;  %v1133_v26 = vpop.f32.mrb[47].mxu1 }
 0x229   : > { %v4284_v27 = vadd.f32 %v1296_v23, %v1101_v14  ;;  %v1298_v58 = vpop.f32.mrb[35].mxu0 }
 0x22b   : > { %v1136_v54 = vpop.f32.mrb[48].mxu1 }
 0x22c   : > { %v1301_v16 = vpop.f32.mrb[36].mxu0  ;;  %v1138_v19 = vpop.f32.mrb[49].mxu1 }
 0x22d   : > { %v6193_v30 = vadd.f32 %v1301_v16, %v1106_v10  ;;  %v1303_v22 = vpop.f32.mrb[37].mxu0 }
 0x22f   : > { %v1141_v52 = vpop.f32.mrb[50].mxu1 }
 0x230   : > { %v1306_v24 = vpop.f32.mrb[38].mxu0  ;;  %v1143_v25 = vpop.f32.mrb[51].mxu1 }
 0x231   : > { %v4286_v31 = vadd.f32 %v1306_v24, %v1111_v43  ;;  %v1308_v34 = vpop.f32.mrb[39].mxu0 }
 0x233   : > { %v3748_v18 = vpop.f32.mrb[52].mxu1 }
 0x234   : > { %v1311_v42 = vpop.f32.mrb[40].mxu0  ;;  %v1442_v32 = vadd.f32 %v4274_v20, %v3748_v18  ;;  %v1436_v12 = vpop.f32.mrb[53].mxu1 }
 0x235   : > { %v6196_v11 = vadd.f32 %v1311_v42, %v1116_v38  ;;  %v1437_v9 = vadd.f32 %v6175_v28, %v1436_v12  ;;  %v1313_v29 = vpop.f32.mrb[41].mxu0 }
 0x236   : > { %1543 = vst [vmem:[%s6199_s25 + $0x38] sm:$0xff] %v1442_v32 }
 0x237   : > { %1542 = vst [vmem:[%s6199_s25 + $0x30] sm:$0xff] %v1437_v9  ;;  %v3751_v8 = vpop.f32.mrb[54].mxu1 }
 0x238   : > { %v1316_v14 = vpop.f32.mrb[42].mxu0  ;;  %v1452_v20 = vadd.f32 %v6179_v37, %v3751_v8  ;;  %v1446_v6 = vpop.f32.mrb[55].mxu1 }
 0x239   : > { %v4288_v7 = vadd.f32 %v1316_v14, %v1121_v40  ;;  %v1447_v51 = vadd.f32 %v6177_v35, %v1446_v6  ;;  %v1318_v28 = vpop.f32.mrb[43].mxu0 }
 0x23a   : > { %1545 = vst [vmem:[%s6199_s25 + $0x48] sm:$0xff] %v1452_v20 }
 0x23b   : > { %1544 = vst [vmem:[%s6199_s25 + $0x40] sm:$0xff] %v1447_v51  ;;  %v3754_v10 = vpop.f32.mrb[56].mxu1 }
 0x23c   : > { %v1321_v4 = vpop.f32.mrb[44].mxu0  ;;  %v1462_v3 = vadd.f32 %v6183_v13, %v3754_v10  ;;  %v1456_v1 = vpop.f32.mrb[57].mxu1 }
 0x23d   : > { %v4289_v43 = vadd.f32 %v1321_v4, %v1126_v41  ;;  %v1457_v44 = vadd.f32 %v6181_v33, %v1456_v1  ;;  %v1323_v5 = vpop.f32.mrb[45].mxu0 }
 0x23e   : > { %1547 = vst [vmem:[%s6199_s25 + $0x58] sm:$0xff] %v1462_v3 }
 0x23f   : > { %1546 = vst [vmem:[%s6199_s25 + $0x50] sm:$0xff] %v1457_v44  ;;  %v3757_v37 = vpop.f32.mrb[58].mxu1 }
 0x240   : > { %v1326_v45 = vpop.f32.mrb[46].mxu0  ;;  %v1472_v35 = vadd.f32 %v6187_v36, %v3757_v37  ;;  %v1466_v38 = vpop.f32.mrb[59].mxu1 }
 0x241   : > { %v4290_v50 = vadd.f32 %v1326_v45, %v1131_v63  ;;  %v1467_v55 = vadd.f32 %v6185_v2, %v1466_v38  ;;  %v1328_v0 = vpop.f32.mrb[47].mxu0 }
 0x242   : > { %1549 = vst [vmem:[%s6199_s25 + $0x68] sm:$0xff] %v1472_v35 }
 0x243   : > { %1548 = vst [vmem:[%s6199_s25 + $0x60] sm:$0xff] %v1467_v55  ;;  %v3760_v13 = vpop.f32.mrb[60].mxu1 }
 0x244   : > { %v1331_v40 = vpop.f32.mrb[48].mxu0  ;;  %v1482_v33 = vadd.f32 %v4282_v39, %v3760_v13  ;;  %v1476_v49 = vpop.f32.mrb[61].mxu1 }
 0x245   : > { %v4291_v48 = vadd.f32 %v1331_v40, %v1136_v54  ;;  %v1477_v53 = vadd.f32 %v6189_v46, %v1476_v49  ;;  %v1333_v41 = vpop.f32.mrb[49].mxu0 }
 0x246   : > { %1551 = vst [vmem:[%s6199_s25 + $0x78] sm:$0xff] %v1482_v33 }
 0x247   : > { %1550 = vst [vmem:[%s6199_s25 + $0x70] sm:$0xff] %v1477_v53  ;;  %v3763_v36 = vpop.f32.mrb[62].mxu1 }
 0x248   : > { %v1336_v57 = vpop.f32.mrb[50].mxu0  ;;  %v1492_v60 = vadd.f32 %v4284_v27, %v3763_v36  ;;  %v1486_v2 = vpop.f32.mrb[63].mxu1 }
 0x249   : > { %v4292_v56 = vadd.f32 %v1336_v57, %v1141_v52  ;;  %v1487_v63 = vadd.f32 %v6191_v61, %v1486_v2  ;;  %v1338_v23 = vpop.f32.mrb[51].mxu0 }
 0x24a   : > { %1553 = vst [vmem:[%s6199_s25 + $0x88] sm:$0xff] %v1492_v60 }
 0x24b   : > { %1552 = vst [vmem:[%s6199_s25 + $0x80] sm:$0xff] %v1487_v63  ;;  %v3766_v39 = vpop.f32.mrb[64].mxu1 }
 0x24c   : > { %v3739_v26 = vpop.f32.mrb[52].mxu0  ;;  %v1502_v46 = vadd.f32 %v4286_v31, %v3766_v39  ;;  %v1496_v58 = vpop.f32.mrb[65].mxu1 }
 0x24d   : > { %v1412_v54 = vadd.f32 %v6165_v47, %v3739_v26  ;;  %v1406_v16 = vpop.f32.mrb[53].mxu0  ;;  %v1497_v27 = vadd.f32 %v6193_v30, %v1496_v58 }
 0x24e   : > { %1555 = vst [vmem:[%s6199_s25 + $0x98] sm:$0xff] %v1502_v46  ;;  %v1407_v19 = vadd.f32 %v6163_v59, %v1406_v16 }
 0x24f   : > { %1537 = vst [vmem:[%s6199_s25 + $0x8] sm:$0xff] %v1412_v54  ;;  %1554 = vst [vmem:[%s6199_s25 + $0x90] sm:$0xff] %v1497_v27  ;;  %v3769_v61 = vpop.f32.mrb[66].mxu1 }
 0x250   : > { %1536 = vst [vmem:[%s6199_s25] sm:$0xff] %v1407_v19  ;;  %v3742_v22 = vpop.f32.mrb[54].mxu0  ;;  %v1512_v52 = vadd.f32 %v4288_v7, %v3769_v61  ;;  %v1506_v24 = vpop.f32.mrb[67].mxu1 }
 0x251   : > { %v1422_v25 = vadd.f32 %v6169_v15, %v3742_v22  ;;  %v1416_v47 = vpop.f32.mrb[55].mxu0  ;;  %v1507_v31 = vadd.f32 %v6196_v11, %v1506_v24 }
 0x252   : > { %1557 = vst [vmem:[%s6199_s25 + $0xa8] sm:$0xff] %v1512_v52  ;;  %v1417_v30 = vadd.f32 %v6167_v62, %v1416_v47 }
 0x253   : > { %1539 = vst [vmem:[%s6199_s25 + $0x18] sm:$0xff] %v1422_v25  ;;  %1556 = vst [vmem:[%s6199_s25 + $0xa0] sm:$0xff] %v1507_v31  ;;  %v3772_v59 = vpop.f32.mrb[68].mxu1 }
 0x254   : > { %1538 = vst [vmem:[%s6199_s25 + $0x10] sm:$0xff] %v1417_v30  ;;  %v3745_v34 = vpop.f32.mrb[56].mxu0  ;;  %v1522_v18 = vadd.f32 %v4290_v50, %v3772_v59  ;;  %v1516_v42 = vpop.f32.mrb[69].mxu1 }
 0x255   : > { %v1432_v15 = vadd.f32 %v6173_v21, %v3745_v34  ;;  %v1426_v32 = vpop.f32.mrb[57].mxu0  ;;  %v1517_v12 = vadd.f32 %v4289_v43, %v1516_v42  ;;  %110 = sbr.rel (!%p108_p13) target bundleno = 62 (0x3e), region = 166 }
 0x256   : > { %1559 = vst [vmem:[%s6199_s25 + $0xb8] sm:$0xff] %v1522_v18  ;;  %v1427_v11 = vadd.f32 %v6171_v17, %v1426_v32 }
 0x257   : > { %1541 = vst [vmem:[%s6199_s25 + $0x28] sm:$0xff] %v1432_v15  ;;  %1558 = vst [vmem:[%s6199_s25 + $0xb0] sm:$0xff] %v1517_v12  ;;  %v3775_v62 = vpop.f32.mrb[70].mxu1 }
 0x258   : > { %1540 = vst [vmem:[%s6199_s25 + $0x20] sm:$0xff] %v1427_v11  ;;  %v1532_v9 = vadd.f32 %v4292_v56, %v3775_v62  ;;  %v1526_v29 = vpop.f32.mrb[71].mxu1 }
 0x259   : > { %v1527_v8 = vadd.f32 %v4291_v48, %v1526_v29 }
 0x25a   : > { %1561 = vst [vmem:[%s6199_s25 + $0xc8] sm:$0xff] %v1532_v9 }
 0x25b   : > { %1560 = vst [vmem:[%s6199_s25 + $0xc0] sm:$0xff] %v1527_v8 }
 0x25c LB: > { %v6251_v17 = vmov 0.0   ;;  %v6253_v21 = vmov 0.0   ;;  %v6255_v14 = vmov 0.0   ;;  %v6257_v20 = vmov 0.0   ;;  %s6287_s0 = smov 0   ;;  %s4985_s26 = sphi %s6246_s26, %s1567_s26  }
 0x25d   : > { %v6259_v6 = vmov 0.0   ;;  %v6261_v7 = vmov 0.0   ;;  %v6263_v51 = vmov 0.0   ;;  %v6265_v28 = vmov 0.0  }
 0x25e   : > { %v6267_v10 = vmov 0.0   ;;  %v6269_v4 = vmov 0.0   ;;  %v6271_v3 = vmov 0.0   ;;  %v6273_v1 = vmov 0.0  }
 0x25f   : > { %v6275_v43 = vmov 0.0   ;;  %v6277_v44 = vmov 0.0   ;;  %v6279_v5 = vmov 0.0   ;;  %v6281_v37 = vmov 0.0  }
 0x260   : > { %v6283_v45 = vmov 0.0   ;;  %v6285_v35 = vmov 0.0  }
 0x261 LB: >> { %s1593_s1 = smul.u32 150, %s4985_s26  ;;  %s1592_s19 = sld [smem:[#allocation12 + %s5061_s0]]  ;;  %s5061_s0 = sphi %s6287_s0, %s1573_s0   ;;  %v5057_v35 = vphi %v6285_v35, %v7173_v35   ;;  %v5053_v45 = vphi %v6283_v45, %v7172_v45   ;;  %v5049_v37 = vphi %v6281_v37, %v7171_v37   ;;  %v5045_v5 = vphi %v6279_v5, %v7170_v5   ;;  %v5041_v44 = vphi %v6277_v44, %v7169_v44   ;;  %v5037_v43 = vphi %v6275_v43, %v7168_v43   ;;  %v5033_v1 = vphi %v6273_v1, %v7167_v1   ;;  %v5029_v3 = vphi %v6271_v3, %v7166_v3   ;;  %v5025_v4 = vphi %v6269_v4, %v7165_v4   ;;  %v5021_v10 = vphi %v6267_v10, %v7164_v10   ;;  %v5017_v28 = vphi %v6265_v28, %v7163_v28   ;;  %v5013_v51 = vphi %v6263_v51, %v7162_v51   ;;  %v5009_v7 = vphi %v6261_v7, %v7161_v7   ;;  %v5005_v6 = vphi %v6259_v6, %v7160_v6   ;;  %v5001_v20 = vphi %v6257_v20, %v7159_v20   ;;  %v4997_v14 = vphi %v6255_v14, %v7158_v14   ;;  %v4993_v21 = vphi %v6253_v21, %v7157_v21   ;;  %v4989_v17 = vphi %v6251_v17, %v7156_v17  }
 0x262   : >> { %s1594_s27 = smul.u32 5, %s5061_s0  ;;  %s1573_s0 = sadd.s32 1, %s5061_s0  }
 0x263   : >> { %p6498_p0 = scmp.ge.s32.totalorder %s1573_s0, 30  }
 0x264   : >> { %s6335_s28 = sadd.s32 %s1594_s27, %s1593_s1  ;;  %s1889_s13 = sld [smem:[#allocation10 + %s4985_s26]] (%p6498_p0)  ;;  %vm1936_vm0 = vcmask (%p6498_p0), 130048  }
 0x265   : >> { %s1615_s29 = sld [smem:[#allocation9 + %s6335_s28]]  ;;  %s1673_s9 = sadd.s32 1, %s6335_s28 }
 0x266   : >> { %s6354_s11 = sld [smem:[#allocation9 + %s1673_s9]]  ;;  %s1732_s15 = sadd.s32 2, %s6335_s28 }
 0x267   : >> { %s6338_s30 = scalar_lea.vmem [#allocation3], %s1592_s19  ;;  %s6389_s16 = sld [smem:[#allocation9 + %s1732_s15]] }
 0x268   : >> { %v1597_v38 = vld [vmem:[%s6338_s30] sm:$0xff]  ;;  %v1598_v50 = vld [vmem:[%s6338_s30 + $0x8] sm:$0xff]  ;;  %v1599_v55 = vld [vmem:[%s6338_s30 + $0x10] sm:$0xff]  ;;  %s1791_s17 = sadd.s32 3, %s6335_s28  ;;  %s1850_s18 = sadd.s32 4, %s6335_s28 }
 0x269   : >> { %v1600_v0 = vld [vmem:[%s6338_s30 + $0x18] sm:$0xff]  ;;  %v1601_v13 = vld [vmem:[%s6338_s30 + $0x20] sm:$0xff]  ;;  %v1602_v40 = vld [vmem:[%s6338_s30 + $0x28] sm:$0xff]  ;;  %s6415_s10 = sld [smem:[#allocation9 + %s1791_s17]]  ;;  %s3434_s17 = sshll.u32 (%p6498_p0), %s4985_s26, 5 }
 0x26a   : >> { %v1603_v33 = vld [vmem:[%s6338_s30 + $0x30] sm:$0xff]  ;;  %v1604_v48 = vld [vmem:[%s6338_s30 + $0x38] sm:$0xff]  ;;  %v1605_v53 = vld [vmem:[%s6338_s30 + $0x40] sm:$0xff]  ;;  %s6417_s12 = sld [smem:[#allocation9 + %s1850_s18]]  ;;  %s2034_s18 = scalar_lea.vmem (%p6498_p0), [#allocation4], %s3434_s17 }
 0x26b   : >> { %v1616_v49 = vstv %s1615_s29  ;;  %v1606_v41 = vld [vmem:[%s6338_s30 + $0x48] sm:$0xff]  ;;  %v1607_v36 = vld [vmem:[%s6338_s30 + $0x50] sm:$0xff]  ;;  %v1608_v57 = vld [vmem:[%s6338_s30 + $0x58] sm:$0xff]  ;;  %s1567_s26 = sadd.s32 (%p6498_p0), 1, %s4985_s26  }
 0x26c   : >> { %v1609_v60 = vld [vmem:[%s6338_s30 + $0x60] sm:$0xff]  ;;  %v1610_v2 = vld [vmem:[%s6338_s30 + $0x68] sm:$0xff]  ;;  %v1611_v56 = vld [vmem:[%s6338_s30 + $0x70] sm:$0xff]  ;;  %v1617_v23 = vmul.f32 %v1616_v49, %v1597_v38  ;;  %v1618_v39 = vmul.f32 %v1616_v49, %v1598_v50  ;;  %v1619_v26 = vmul.f32 %v1616_v49, %v1599_v55  ;;  %v1620_v46 = vmul.f32 %v1616_v49, %v1600_v0  ;;  %p1564_p1 = scmp.ge.s32.totalorder (%p6498_p0), %s1567_s26, 16  }
 0x26d   : >> { %v1612_v63 = vld [vmem:[%s6338_s30 + $0x78] sm:$0xff]  ;;  %v1613_v58 = vld [vmem:[%s6338_s30 + $0x80] sm:$0xff]  ;;  %v1614_v54 = vld [vmem:[%s6338_s30 + $0x88] sm:$0xff]  ;;  %v1621_v16 = vmul.f32 %v1616_v49, %v1601_v13  ;;  %v1622_v27 = vmul.f32 %v1616_v49, %v1602_v40  ;;  %v1623_v19 = vmul.f32 %v1616_v49, %v1603_v33  ;;  %v1624_v61 = vmul.f32 %v1616_v49, %v1604_v48 }
 0x26e   : >> { %v1625_v22 = vmul.f32 %v1616_v49, %v1605_v53  ;;  %v1626_v52 = vmul.f32 %v1616_v49, %v1606_v41  ;;  %v1627_v24 = vmul.f32 %v1616_v49, %v1607_v36  ;;  %v1628_v25 = vmul.f32 %v1616_v49, %v1608_v57  ;;  %v3362_v9 = vld [vmem:[%s6338_s30 + $0x1] sm:$0xff]  ;;  %v3363_v29 = vld [vmem:[%s6338_s30 + $0x9] sm:$0xff]  ;;  %v3364_v8 = vld [vmem:[%s6338_s30 + $0x11] sm:$0xff] }
 0x26f   : >> { %v1629_v47 = vmul.f32 %v1616_v49, %v1609_v60  ;;  %v1630_v31 = vmul.f32 %v1616_v49, %v1610_v2  ;;  %v1631_v30 = vmul.f32 %v1616_v49, %v1611_v56  ;;  %v1632_v59 = vmul.f32 %v1616_v49, %v1612_v63  ;;  %v3370_v0 = vld [vmem:[%s6338_s30 + $0x41] sm:$0xff]  ;;  %v3373_v48 = vld [vmem:[%s6338_s30 + $0x59] sm:$0xff]  ;;  %v3375_v41 = vld [vmem:[%s6338_s30 + $0x69] sm:$0xff] }
 0x270   : >> { %v1633_v34 = vmul.f32 %v1616_v49, %v1613_v58  ;;  %v1634_v18 = vmul.f32 %v1616_v49, %v1614_v54  ;;  %v1635_v42 = vadd.f32 %v5057_v35, %v1617_v23  ;;  %v1636_v15 = vadd.f32 %v5053_v45, %v1618_v39  ;;  %v3365_v45 = vld [vmem:[%s6338_s30 + $0x19] sm:$0xff]  ;;  %v3371_v49 = vld [vmem:[%s6338_s30 + $0x49] sm:$0xff]  ;;  %v3374_v53 = vld [vmem:[%s6338_s30 + $0x61] sm:$0xff] }
 0x271   : >> { %v1637_v32 = vadd.f32 %v5049_v37, %v1619_v26  ;;  %v1638_v12 = vadd.f32 %v5045_v5, %v1620_v46  ;;  %v1639_v11 = vadd.f32 %v5041_v44, %v1621_v16  ;;  %v1640_v62 = vadd.f32 %v5037_v43, %v1622_v27  ;;  %v3366_v5 = vld [vmem:[%s6338_s30 + $0x21] sm:$0xff]  ;;  %v3367_v44 = vld [vmem:[%s6338_s30 + $0x29] sm:$0xff]  ;;  %v3376_v36 = vld [vmem:[%s6338_s30 + $0x71] sm:$0xff] }
 0x272   : >> { %v1641_v38 = vadd.f32 %v5033_v1, %v1623_v19  ;;  %v1642_v50 = vadd.f32 %v5029_v3, %v1624_v61  ;;  %v1643_v55 = vadd.f32 %v5025_v4, %v1625_v22  ;;  %v1644_v35 = vadd.f32 %v5021_v10, %v1626_v52  ;;  %v3368_v1 = vld [vmem:[%s6338_s30 + $0x31] sm:$0xff]  ;;  %v3369_v4 = vld [vmem:[%s6338_s30 + $0x39] sm:$0xff]  ;;  %v3379_v56 = vld [vmem:[%s6338_s30 + $0x89] sm:$0xff] }
 0x273   : >> { %v1645_v43 = vadd.f32 %v5017_v28, %v1627_v24  ;;  %v1646_v37 = vadd.f32 %v5013_v51, %v1628_v25  ;;  %v1647_v3 = vadd.f32 %v5009_v7, %v1629_v47  ;;  %v1675_v10 = vstv %s6354_s11  ;;  %v3372_v51 = vld [vmem:[%s6338_s30 + $0x51] sm:$0xff] }
 0x274   : >> { %v1648_v13 = vadd.f32 %v5005_v6, %v1630_v31  ;;  %v1649_v40 = vadd.f32 %v5001_v20, %v1631_v30  ;;  %v1650_v33 = vadd.f32 %v4997_v14, %v1632_v59  ;;  %v1651_v28 = vadd.f32 %v4993_v21, %v1633_v34  ;;  %v3377_v6 = vld [vmem:[%s6338_s30 + $0x79] sm:$0xff]  ;;  %v3378_v20 = vld [vmem:[%s6338_s30 + $0x81] sm:$0xff]  ;;  %v3381_v59 = vld [vmem:[%s6338_s30 + $0xa] sm:$0xff] }
 0x275   : >> { %v1652_v7 = vadd.f32 %v4989_v17, %v1634_v18  ;;  %v1676_v57 = vmul.f32 %v3362_v9, %v1675_v10  ;;  %v1677_v60 = vmul.f32 %v3363_v29, %v1675_v10  ;;  %v1678_v2 = vmul.f32 %v3364_v8, %v1675_v10  ;;  %v3380_v30 = vld [vmem:[%s6338_s30 + $0x2] sm:$0xff]  ;;  %v3382_v34 = vld [vmem:[%s6338_s30 + $0x12] sm:$0xff] }
 0x276   : >> { %v1679_v63 = vmul.f32 %v3365_v45, %v1675_v10  ;;  %v1680_v14 = vmul.f32 %v3366_v5, %v1675_v10  ;;  %v1681_v23 = vmul.f32 %v3367_v44, %v1675_v10  ;;  %v1682_v21 = vmul.f32 %v3368_v1, %v1675_v10  ;;  %v3383_v45 = vld [vmem:[%s6338_s30 + $0x1a] sm:$0xff]  ;;  %v3386_v44 = vld [vmem:[%s6338_s30 + $0x32] sm:$0xff] }
 0x277   : >> { %v1683_v39 = vmul.f32 %v3369_v4, %v1675_v10  ;;  %v1684_v26 = vmul.f32 %v3370_v0, %v1675_v10  ;;  %v1685_v17 = vmul.f32 %v3371_v49, %v1675_v10  ;;  %v1686_v46 = vmul.f32 %v3372_v51, %v1675_v10  ;;  %v3387_v1 = vld [vmem:[%s6338_s30 + $0x3a] sm:$0xff]  ;;  %v3389_v4 = vld [vmem:[%s6338_s30 + $0x4a] sm:$0xff]  ;;  %v3390_v0 = vld [vmem:[%s6338_s30 + $0x52] sm:$0xff] }
 0x278   : >> { %v1687_v58 = vmul.f32 %v3373_v48, %v1675_v10  ;;  %v1688_v54 = vmul.f32 %v3374_v53, %v1675_v10  ;;  %v1689_v16 = vmul.f32 %v3375_v41, %v1675_v10  ;;  %v1690_v27 = vmul.f32 %v3376_v36, %v1675_v10  ;;  %v3393_v49 = vld [vmem:[%s6338_s30 + $0x6a] sm:$0xff]  ;;  %v3394_v51 = vld [vmem:[%s6338_s30 + $0x72] sm:$0xff]  ;;  %v3395_v41 = vld [vmem:[%s6338_s30 + $0x7a] sm:$0xff] }
 0x279   : >> { %v1691_v19 = vmul.f32 %v3377_v6, %v1675_v10  ;;  %v1692_v61 = vmul.f32 %v3378_v20, %v1675_v10  ;;  %v1693_v22 = vmul.f32 %v3379_v56, %v1675_v10  ;;  %v1694_v52 = vadd.f32 %v1676_v57, %v1635_v42  ;;  %v3384_v42 = vld [vmem:[%s6338_s30 + $0x22] sm:$0xff]  ;;  %v3397_v57 = vld [vmem:[%s6338_s30 + $0x8a] sm:$0xff] }
 0x27a   : >> { %v1695_v24 = vadd.f32 %v1677_v60, %v1636_v15  ;;  %v1696_v25 = vadd.f32 %v1678_v2, %v1637_v32  ;;  %v1697_v47 = vadd.f32 %v1679_v63, %v1638_v12  ;;  %v1698_v31 = vadd.f32 %v1680_v14, %v1639_v11  ;;  %v3385_v15 = vld [vmem:[%s6338_s30 + $0x2a] sm:$0xff]  ;;  %v3396_v36 = vld [vmem:[%s6338_s30 + $0x82] sm:$0xff] }
 0x27b   : >> { %v1699_v18 = vadd.f32 %v1681_v23, %v1640_v62  ;;  %v1700_v9 = vadd.f32 %v1682_v21, %v1641_v38  ;;  %v1701_v29 = vadd.f32 %v1683_v39, %v1642_v50  ;;  %v1702_v8 = vadd.f32 %v1684_v26, %v1643_v55  ;;  %v3388_v62 = vld [vmem:[%s6338_s30 + $0x42] sm:$0xff] }
 0x27c   : >> { %v1703_v32 = vadd.f32 %v1685_v17, %v1644_v35  ;;  %v1704_v12 = vadd.f32 %v1686_v46, %v1645_v43  ;;  %v1705_v11 = vadd.f32 %v1687_v58, %v1646_v37  ;;  %v1706_v5 = vadd.f32 %v1688_v54, %v1647_v3  ;;  %v3391_v35 = vld [vmem:[%s6338_s30 + $0x5a] sm:$0xff]  ;;  %v3392_v3 = vld [vmem:[%s6338_s30 + $0x62] sm:$0xff] }
 0x27d   : >> { %v1707_v38 = vadd.f32 %v1689_v16, %v1648_v13  ;;  %v1708_v50 = vadd.f32 %v1690_v27, %v1649_v40  ;;  %v1709_v55 = vadd.f32 %v1691_v19, %v1650_v33  ;;  %v1734_v43 = vstv %s6389_s16  ;;  %v3398_v16 = vld [vmem:[%s6338_s30 + $0x3] sm:$0xff]  ;;  %v3399_v27 = vld [vmem:[%s6338_s30 + $0xb] sm:$0xff] }
 0x27e   : >> { %v1710_v37 = vadd.f32 %v1692_v61, %v1651_v28  ;;  %v1711_v10 = vadd.f32 %v1693_v22, %v1652_v7  ;;  %v1735_v48 = vmul.f32 %v3380_v30, %v1734_v43  ;;  %v1736_v53 = vmul.f32 %v3381_v59, %v1734_v43  ;;  %v3400_v59 = vld [vmem:[%s6338_s30 + $0x13] sm:$0xff] }
 0x27f   : >> { %v1737_v60 = vmul.f32 %v3382_v34, %v1734_v43  ;;  %v1738_v2 = vmul.f32 %v3383_v45, %v1734_v43  ;;  %v1739_v13 = vmul.f32 %v3384_v42, %v1734_v43  ;;  %v1740_v6 = vmul.f32 %v3385_v15, %v1734_v43  ;;  %v3401_v34 = vld [vmem:[%s6338_s30 + $0x1b] sm:$0xff]  ;;  %v3402_v45 = vld [vmem:[%s6338_s30 + $0x23] sm:$0xff] }
 0x280   : >> { %v1741_v40 = vmul.f32 %v3386_v44, %v1734_v43  ;;  %v1742_v33 = vmul.f32 %v3387_v1, %v1734_v43  ;;  %v1743_v28 = vmul.f32 %v3388_v62, %v1734_v43  ;;  %v1744_v7 = vmul.f32 %v3389_v4, %v1734_v43  ;;  %v3406_v1 = vld [vmem:[%s6338_s30 + $0x43] sm:$0xff]  ;;  %v3409_v4 = vld [vmem:[%s6338_s30 + $0x5b] sm:$0xff] }
 0x281   : >> { %v1745_v20 = vmul.f32 %v3390_v0, %v1734_v43  ;;  %v1746_v56 = vmul.f32 %v3391_v35, %v1734_v43  ;;  %v1747_v63 = vmul.f32 %v3392_v3, %v1734_v43  ;;  %v1748_v14 = vmul.f32 %v3393_v49, %v1734_v43  ;;  %v3412_v3 = vld [vmem:[%s6338_s30 + $0x73] sm:$0xff]  ;;  %v3413_v49 = vld [vmem:[%s6338_s30 + $0x7b] sm:$0xff] }
 0x282   : >> { %v1749_v23 = vmul.f32 %v3394_v51, %v1734_v43  ;;  %v1750_v21 = vmul.f32 %v3395_v41, %v1734_v43  ;;  %v1751_v39 = vmul.f32 %v3396_v36, %v1734_v43  ;;  %v1752_v26 = vmul.f32 %v3397_v57, %v1734_v43  ;;  %v3411_v43 = vld [vmem:[%s6338_s30 + $0x6b] sm:$0xff] }
 0x283   : >> { %v1753_v17 = vadd.f32 %v1735_v48, %v1694_v52  ;;  %v1754_v46 = vadd.f32 %v1736_v53, %v1695_v24  ;;  %v1755_v58 = vadd.f32 %v1737_v60, %v1696_v25  ;;  %v1756_v54 = vadd.f32 %v1738_v2, %v1697_v47  ;;  %v3403_v47 = vld [vmem:[%s6338_s30 + $0x2b] sm:$0xff] }
 0x284   : >> { %v1757_v19 = vadd.f32 %v1739_v13, %v1698_v31  ;;  %v1758_v61 = vadd.f32 %v1740_v6, %v1699_v18  ;;  %v1759_v22 = vadd.f32 %v1741_v40, %v1700_v9  ;;  %v1760_v30 = vadd.f32 %v1742_v33, %v1701_v29  ;;  %v3404_v31 = vld [vmem:[%s6338_s30 + $0x33] sm:$0xff]  ;;  %v3405_v18 = vld [vmem:[%s6338_s30 + $0x3b] sm:$0xff]  ;;  %v3415_v48 = vld [vmem:[%s6338_s30 + $0x8b] sm:$0xff] }
 0x285   : >> { %v1761_v42 = vadd.f32 %v1743_v28, %v1702_v8  ;;  %v1762_v52 = vadd.f32 %v1744_v7, %v1703_v32  ;;  %v1763_v24 = vadd.f32 %v1745_v20, %v1704_v12  ;;  %v1764_v25 = vadd.f32 %v1746_v56, %v1705_v11  ;;  %v3407_v8 = vld [vmem:[%s6338_s30 + $0x4b] sm:$0xff]  ;;  %v3408_v32 = vld [vmem:[%s6338_s30 + $0x53] sm:$0xff]  ;;  %v3410_v11 = vld [vmem:[%s6338_s30 + $0x63] sm:$0xff] }
 0x286   : >> { %v1765_v9 = vadd.f32 %v1747_v63, %v1706_v5  ;;  %v1766_v29 = vadd.f32 %v1748_v14, %v1707_v38  ;;  %v1767_v15 = vadd.f32 %v1749_v23, %v1708_v50  ;;  %v1768_v44 = vadd.f32 %v1750_v21, %v1709_v55  ;;  %v3414_v55 = vld [vmem:[%s6338_s30 + $0x83] sm:$0xff] }
 0x287   : >> { %v1769_v62 = vadd.f32 %v1751_v39, %v1710_v37  ;;  %v1770_v12 = vadd.f32 %v1752_v26, %v1711_v10  ;;  %v1793_v0 = vstv %s6415_s10  ;;  %v6434_v35 = vstv %s6417_s12  ;;  %v3416_v63 = vld [vmem:[%s6338_s30 + $0x4] sm:$0xff]  ;;  %v3417_v26 = vld [vmem:[%s6338_s30 + $0xc] sm:$0xff] }
 0x288   : >> { %v1794_v51 = vmul.f32 %v3398_v16, %v1793_v0  ;;  %v1795_v5 = vmul.f32 %v3399_v27, %v1793_v0  ;;  %v1796_v38 = vmul.f32 %v3400_v59, %v1793_v0  ;;  %v1797_v50 = vmul.f32 %v3401_v34, %v1793_v0  ;;  %v3418_v16 = vld [vmem:[%s6338_s30 + $0x14] sm:$0xff]  ;;  %v3419_v27 = vld [vmem:[%s6338_s30 + $0x1c] sm:$0xff] }
 0x289   : >> { %v1798_v53 = vmul.f32 %v3402_v45, %v1793_v0  ;;  %v1799_v41 = vmul.f32 %v3403_v47, %v1793_v0  ;;  %v1800_v36 = vmul.f32 %v3404_v31, %v1793_v0  ;;  %v1801_v37 = vmul.f32 %v3405_v18, %v1793_v0  ;;  %v3423_v18 = vld [vmem:[%s6338_s30 + $0x3c] sm:$0xff] }
 0x28a   : >> { %v1802_v10 = vmul.f32 %v3406_v1, %v1793_v0  ;;  %v1803_v57 = vmul.f32 %v3407_v8, %v1793_v0  ;;  %v1804_v60 = vmul.f32 %v3408_v32, %v1793_v0  ;;  %v1805_v2 = vmul.f32 %v3409_v4, %v1793_v0  ;;  %v3424_v1 = vld [vmem:[%s6338_s30 + $0x44] sm:$0xff]  ;;  %v3426_v32 = vld [vmem:[%s6338_s30 + $0x54] sm:$0xff]  ;;  %v3427_v4 = vld [vmem:[%s6338_s30 + $0x5c] sm:$0xff] }
 0x28b   : >> { %v1806_v13 = vmul.f32 %v3410_v11, %v1793_v0  ;;  %v1807_v6 = vmul.f32 %v3411_v43, %v1793_v0  ;;  %v1808_v40 = vmul.f32 %v3412_v3, %v1793_v0  ;;  %v1809_v33 = vmul.f32 %v3413_v49, %v1793_v0  ;;  %v3428_v11 = vld [vmem:[%s6338_s30 + $0x64] sm:$0xff]  ;;  %v3430_v43 = vld [vmem:[%s6338_s30 + $0x74] sm:$0xff]  ;;  %v3431_v3 = vld [vmem:[%s6338_s30 + $0x7c] sm:$0xff] }
 0x28c   : >> { %v1810_v28 = vmul.f32 %v3414_v55, %v1793_v0  ;;  %v1811_v7 = vmul.f32 %v3415_v48, %v1793_v0  ;;  %v1812_v20 = vadd.f32 %v1794_v51, %v1753_v17  ;;  %v1813_v56 = vadd.f32 %v1795_v5, %v1754_v46  ;;  %v3420_v17 = vld [vmem:[%s6338_s30 + $0x24] sm:$0xff]  ;;  %v3421_v46 = vld [vmem:[%s6338_s30 + $0x2c] sm:$0xff] }
 0x28d   : >> { %v1814_v14 = vadd.f32 %v1796_v38, %v1755_v58  ;;  %v1815_v23 = vadd.f32 %v1797_v50, %v1756_v54  ;;  %v1816_v21 = vadd.f32 %v1798_v53, %v1757_v19  ;;  %v1817_v39 = vadd.f32 %v1799_v41, %v1758_v61  ;;  %v3422_v58 = vld [vmem:[%s6338_s30 + $0x34] sm:$0xff]  ;;  %v3429_v0 = vld [vmem:[%s6338_s30 + $0x6c] sm:$0xff]  ;;  %v3432_v49 = vld [vmem:[%s6338_s30 + $0x84] sm:$0xff] }
 0x28e   : >> { %v1818_v59 = vadd.f32 %v1800_v36, %v1759_v22  ;;  %v1819_v34 = vadd.f32 %v1801_v37, %v1760_v30  ;;  %v1820_v45 = vadd.f32 %v1802_v10, %v1761_v42  ;;  %v1821_v47 = vadd.f32 %v1803_v57, %v1762_v52  ;;  %v3425_v22 = vld [vmem:[%s6338_s30 + $0x4c] sm:$0xff] }
 0x28f   : >> { %v1822_v54 = vadd.f32 %v1804_v60, %v1763_v24  ;;  %v1823_v19 = vadd.f32 %v1805_v2, %v1764_v25  ;;  %v1824_v61 = vadd.f32 %v1806_v13, %v1765_v9  ;;  %v1825_v31 = vadd.f32 %v1807_v6, %v1766_v29  ;;  %v3433_v51 = vld [vmem:[%s6338_s30 + $0x8c] sm:$0xff] }
 0x290   : >> { %v1826_v30 = vadd.f32 %v1808_v40, %v1767_v15  ;;  %v1827_v42 = vadd.f32 %v1809_v33, %v1768_v44  ;;  %v1828_v52 = vadd.f32 %v1810_v28, %v1769_v62  ;;  %v1829_v8 = vadd.f32 %v1811_v7, %v1770_v12 }
 0x291   : >> { %v1853_v24 = vmul.f32 %v3416_v63, %v6434_v35  ;;  %v1854_v25 = vmul.f32 %v3417_v26, %v6434_v35  ;;  %v1855_v9 = vmul.f32 %v3418_v16, %v6434_v35  ;;  %v1856_v29 = vmul.f32 %v3419_v27, %v6434_v35 }
 0x292   : >> { %v1857_v15 = vmul.f32 %v3420_v17, %v6434_v35  ;;  %v1858_v44 = vmul.f32 %v3421_v46, %v6434_v35  ;;  %v1859_v62 = vmul.f32 %v3422_v58, %v6434_v35  ;;  %v1860_v12 = vmul.f32 %v3423_v18, %v6434_v35 }
 0x293   : >> { %v1861_v5 = vmul.f32 %v3424_v1, %v6434_v35  ;;  %v1862_v38 = vmul.f32 %v3425_v22, %v6434_v35  ;;  %v1863_v50 = vmul.f32 %v3426_v32, %v6434_v35  ;;  %v1864_v55 = vmul.f32 %v3427_v4, %v6434_v35 }
 0x294   : >> { %v1865_v48 = vmul.f32 %v3428_v11, %v6434_v35  ;;  %v1866_v53 = vmul.f32 %v3429_v0, %v6434_v35  ;;  %v1867_v41 = vmul.f32 %v3430_v43, %v6434_v35  ;;  %v1868_v36 = vmul.f32 %v3431_v3, %v6434_v35 }
 0x295   : >> { %v1869_v37 = vmul.f32 %v3432_v49, %v6434_v35  ;;  %v1870_v10 = vmul.f32 %v3433_v51, %v6434_v35  ;;  %v1871_v57 = vadd.f32 %v1853_v24, %v1812_v20   ;;  %v1872_v60 = vadd.f32 %v1854_v25, %v1813_v56  }
 0x296   : >> { %v1873_v2 = vadd.f32 %v1855_v9, %v1814_v14   ;;  %v1874_v13 = vadd.f32 %v1856_v29, %v1815_v23   ;;  %v1875_v40 = vadd.f32 %v1857_v15, %v1816_v21   ;;  %v1876_v33 = vadd.f32 %v1858_v44, %v1817_v39  }
 0x297   : >> { %v1877_v63 = vadd.f32 %v1859_v62, %v1818_v59   ;;  %v1878_v26 = vadd.f32 %v1860_v12, %v1819_v34   ;;  %v6477_v4 = vadd.f32 %v1861_v5, %v1820_v45   ;;  %v6479_v6 = vadd.f32 %v1862_v38, %v1821_v47   ;;  %v1933_v34 = vld [vmem:[%s7115_s2 + $0x28] sm:$0xff] (%p6498_p0) }
 0x298   : >> { %v6481_v28 = vadd.f32 %v1863_v50, %v1822_v54   ;;  %v6483_v51 = vadd.f32 %v1864_v55, %v1823_v19   ;;  %v6485_v7 = vadd.f32 %v1865_v48, %v1824_v61   ;;  %v6489_v20 = vadd.f32 %v1867_v41, %v1826_v30   ;;  %3437 = vmatprep.mubr.msk.f32.mxu1 (%p6498_p0), %vm1936_vm0, %v1933_v34 }
 0x299   : >> { %v7145_v16 = vmov %v6477_v4  ;;  %v7146_v27 = vmov %v6479_v6  ;;  %v6487_v6 = vadd.f32 %v1866_v53, %v1825_v31   ;;  %v6491_v14 = vadd.f32 %v1868_v36, %v1827_v42  }
 0x29a   : >> { %v7147_v46 = vmov %v6481_v28  ;;  %v7148_v58 = vmov %v6483_v51  ;;  %v7149_v18 = vmov %v6485_v7  ;;  %v7151_v56 = vmov %v6489_v20  ;;  %1572 = sbr.rel (!%p6498_p0) target bundleno = 609 (0x261), region = 177 }
 0x29b   : >> { %v7150_v22 = vmov %v6487_v6  ;;  %v7152_v23 = vmov %v6491_v14  ;;  %v6493_v21 = vadd.f32 %v1869_v37, %v1828_v52   ;;  %v6495_v17 = vadd.f32 %v1870_v10, %v1829_v8  }
 0x29c   : >> { %v7158_v14 = vmov %v7152_v23  ;;  %v7159_v20 = vmov %v7151_v56  ;;  %v7160_v6 = vmov %v7150_v22  ;;  %v7161_v7 = vmov %v7149_v18 }
 0x29d   : >> { %v7153_v39 = vmov %v6493_v21  ;;  %v7154_v59 = vmov %v6495_v17  ;;  %v7162_v51 = vmov %v7148_v58  ;;  %v7163_v28 = vmov %v7147_v46  ;;  %v1934_v6 = vld [vmem:[%s7115_s2 + $0x30] sm:$0xff] (%p6498_p0) }
 0x29e   : >> { %v7156_v17 = vmov %v7154_v59  ;;  %v7157_v21 = vmov %v7153_v39  ;;  %v7164_v10 = vmov %v7146_v27  ;;  %v7165_v4 = vmov %v7145_v16 }
 0x29f   : >> { %v7166_v3 = vmov %v1878_v26  ;;  %v7167_v1 = vmov %v1877_v63  ;;  %v7168_v43 = vmov %v1876_v33  ;;  %v7169_v44 = vmov %v1875_v40 }
 0x2a0   : >> { %v7170_v5 = vmov %v1874_v13  ;;  %v7171_v37 = vmov %v1873_v2  ;;  %v7172_v45 = vmov %v1872_v60  ;;  %v7173_v35 = vmov %v1871_v57 }
 0x2a1   : > { %v1929_v35 = vld [vmem:[%s7115_s2 + $0x8] sm:$0xff]  ;;  %v5069_v47 = vmov 0.0|0.0   ;;  %v6563_v28 = vstv %s1889_s13 }
 0x2a2   : > { %4064 = vmatprep.subr.bf16.mxu0 %v5069_v47  ;;  %4345 = vmatprep.subr.bf16.mxu1 %v5069_v47  ;;  %v1891_v7 = vadd.f32 %v6563_v28, %v1871_v57  ;;  %v1892_v20 = vadd.f32 %v6563_v28, %v1872_v60  ;;  %v1893_v14 = vadd.f32 %v6563_v28, %v1873_v2 }
 0x2a3   : > { %3435 = vmatprep.mubr.msk.f32.mxu0 %vm1936_vm0, %v1929_v35  ;;  %v1894_v21 = vadd.f32 %v6563_v28, %v1874_v13  ;;  %v1895_v45 = vadd.f32 %v6563_v28, %v1875_v40  ;;  %v1896_v17 = vadd.f32 %v6563_v28, %v1876_v33  ;;  %v1897_v30 = vadd.f32 %v6563_v28, %v1877_v63  ;;  %v1928_v40 = vld [vmem:[%s7115_s2] sm:$0xff]  ;;  %v1931_v63 = vld [vmem:[%s7115_s2 + $0x18] sm:$0xff] }
 0x2a4   : > { %v1909_v54 = vmax.f32 %v1891_v7, 0.0  ;;  %v1910_v19 = vmax.f32 %v1892_v20, 0.0  ;;  %v1911_v61 = vmax.f32 %v1893_v14, 0.0  ;;  %v1898_v42 = vadd.f32 %v6563_v28, %v1878_v26  ;;  %v1932_v33 = vld [vmem:[%s7115_s2 + $0x20] sm:$0xff]  ;;  %v1935_v26 = vld [vmem:[%s7115_s2 + $0x38] sm:$0xff] }
 0x2a5   : > { %v1912_v31 = vmax.f32 %v1894_v21, 0.0  ;;  %v1913_v8 = vmax.f32 %v1895_v45, 0.0  ;;  %v1914_v32 = vmax.f32 %v1896_v17, 0.0  ;;  %v1915_v4 = vmax.f32 %v1897_v30, 0.0 }
 0x2a6   : > { %v4065_v1 = vpack.c.bf16 %v1910_v19, %v1909_v54  ;;  %v1916_v11 = vmax.f32 %v1898_v42, 0.0  ;;  %v1899_v43 = vadd.f32 %v6563_v28, %v7145_v16  ;;  %v1900_v3 = vadd.f32 %v6563_v28, %v7146_v27  ;;  %v1930_v16 = vld [vmem:[%s7115_s2 + $0x10] sm:$0xff] }
 0x2a7   : > { %v4068_v52 = vpack.c.bf16 %v1912_v31, %v1911_v61  ;;  %v4071_v0 = vpack.c.bf16 %v1914_v32, %v1913_v8  ;;  %v1901_v29 = vadd.f32 %v6563_v28, %v7147_v46  ;;  %v1902_v49 = vadd.f32 %v6563_v28, %v7148_v58 }
 0x2a8   : > { %4066 = vmatpush1.bf16.msra.mxu0 %v4065_v1  ;;  %4354 = vmatpush1.bf16.msra.mxu1 %v4065_v1  ;;  %v4074_v24 = vpack.c.bf16 %v1916_v11, %v1915_v4  ;;  %v1917_v25 = vmax.f32 %v1899_v43, 0.0  ;;  %v1918_v9 = vmax.f32 %v1900_v3, 0.0  ;;  %v1903_v51 = vadd.f32 %v6563_v28, %v7149_v18 }
 0x2a9   : > { %4067 = vmatprep.subr.bf16.mxu0 %v5069_v47  ;;  %4346 = vmatprep.subr.bf16.mxu1 %v5069_v47  ;;  %v1919_v44 = vmax.f32 %v1901_v29, 0.0  ;;  %v1920_v62 = vmax.f32 %v1902_v49, 0.0  ;;  %v1904_v12 = vadd.f32 %v6563_v28, %v7150_v22  ;;  %v1905_v5 = vadd.f32 %v6563_v28, %v7151_v56 }
 0x2aa   : > { %v4077_v15 = vpack.c.bf16 %v1918_v9, %v1917_v25  ;;  %v1921_v50 = vmax.f32 %v1903_v51, 0.0  ;;  %v1906_v48 = vadd.f32 %v6563_v28, %v7152_v23  ;;  %v1907_v53 = vadd.f32 %v6563_v28, %v7153_v39 }
 0x2ab   : > { %v4080_v38 = vpack.c.bf16 %v1920_v62, %v1919_v44  ;;  %v1922_v55 = vmax.f32 %v1904_v12, 0.0  ;;  %v1923_v36 = vmax.f32 %v1905_v5, 0.0  ;;  %v1908_v10 = vadd.f32 %v6563_v28, %v7154_v59 }
 0x2ac   : > { %4069 = vmatpush1.bf16.msra.mxu0 %v4068_v52  ;;  %4355 = vmatpush1.bf16.msra.mxu1 %v4068_v52  ;;  %v1924_v37 = vmax.f32 %v1906_v48, 0.0  ;;  %v1925_v60 = vmax.f32 %v1907_v53, 0.0  ;;  %v5070_v14 = vmov (%p1564_p1), 0  }
 0x2ad   : > { %4070 = vmatprep.subr.bf16.mxu0 %v5069_v47  ;;  %4347 = vmatprep.subr.bf16.mxu1 %v5069_v47  ;;  %v4083_v41 = vpack.c.bf16 %v1922_v55, %v1921_v50  ;;  %v1926_v2 = vmax.f32 %v1908_v10, 0.0 }
 0x2ae   : > { %v4086_v57 = vpack.c.bf16 %v1924_v37, %v1923_v36  ;;  %4683 = vset.pattern.permute.xlu0 (%p1564_p1), %v5070_v14  ;;  %4684 = vset.pattern.permute.xlu1 (%p1564_p1), %v5070_v14 }
 0x2af   : > { %v4089_v13 = vpack.c.bf16 %v1926_v2, %v1925_v60 }
 0x2b0   : > { %4072 = vmatpush1.bf16.msra.mxu0 %v4071_v0  ;;  %4356 = vmatpush1.bf16.msra.mxu1 %v4071_v0 }
 0x2b1   : > { %4073 = vmatprep.subr.bf16.mxu0 %v5069_v47  ;;  %4348 = vmatprep.subr.bf16.mxu1 %v5069_v47 }
 0x2b4   : > { %4075 = vmatpush1.bf16.msra.mxu0 %v4074_v24  ;;  %4357 = vmatpush1.bf16.msra.mxu1 %v4074_v24 }
 0x2b5   : > { %4076 = vmatprep.subr.bf16.mxu0 %v5069_v47  ;;  %4349 = vmatprep.subr.bf16.mxu1 %v5069_v47 }
 0x2b8   : > { %4078 = vmatpush1.bf16.msra.mxu0 %v4077_v15  ;;  %4358 = vmatpush1.bf16.msra.mxu1 %v4077_v15 }
 0x2b9   : > { %4079 = vmatprep.subr.bf16.mxu0 %v5069_v47  ;;  %4350 = vmatprep.subr.bf16.mxu1 %v5069_v47 }
 0x2bc   : > { %4081 = vmatpush1.bf16.msra.mxu0 %v4080_v38  ;;  %4359 = vmatpush1.bf16.msra.mxu1 %v4080_v38 }
 0x2bd   : > { %4082 = vmatprep.subr.bf16.mxu0 %v5069_v47  ;;  %4351 = vmatprep.subr.bf16.mxu1 %v5069_v47 }
 0x2c0   : > { %4084 = vmatpush1.bf16.msra.mxu0 %v4083_v41  ;;  %4360 = vmatpush1.bf16.msra.mxu1 %v4083_v41 }
 0x2c1   : > { %4085 = vmatprep.subr.bf16.mxu0 %v5069_v47  ;;  %4352 = vmatprep.subr.bf16.mxu1 %v5069_v47 }
 0x2c4   : > { %4087 = vmatpush1.bf16.msra.mxu0 %v4086_v57  ;;  %4361 = vmatpush1.bf16.msra.mxu1 %v4086_v57 }
 0x2c5   : > { %4088 = vmatprep.subr.bf16.mxu0 %v5069_v47  ;;  %4353 = vmatprep.subr.bf16.mxu1 %v5069_v47 }
 0x2c8   : > { %4090 = vmatpush1.bf16.msra.mxu0 %v4089_v13  ;;  %4362 = vmatpush1.bf16.msra.mxu1 %v4089_v13 }
 0x2cb   : > { %2014 = vmatmul.mubr.f32.vlgmr.msra.gmra.mrb[0].mxu0 %v1928_v40  ;;  %2024 = vmatmul.mubr.f32.vlgmr.msra.gmra.mrb[0].mxu1 %v1932_v33 }
 0x2cc   : > { %3436 = vmatprep.mubr.msk.f32.mxu0 %vm1936_vm0, %v1931_v63  ;;  %3438 = vmatprep.mubr.msk.f32.mxu1 %vm1936_vm0, %v1935_v26 }
 0x2cf   : > { %2019 = vmatmul.mubr.f32.gmra.mrb[2].mxu0 %v1930_v16  ;;  %2029 = vmatmul.mubr.f32.gmra.mrb[2].mxu1 %v1934_v6 }
 0x39d   :  { %1566 = sbr.rel (!%p1564_p1) target bundleno = 604 (0x25c), region = 188 }
 0x39e   : > { %v2015_v27 = vpop.f32.mrb[0].mxu0  ;;  %v2025_v46 = vpop.f32.mrb[0].mxu1 }
 0x39f   : > { %2035 = vst [vmem:[%s2034_s18] sm:$0xff] %v2015_v27  ;;  %2037 = vst [vmem:[%s2034_s18 + $0x10] sm:$0xff] %v2025_v46  ;;  %v2017_v58 = vpop.f32.mrb[1].mxu0  ;;  %v2027_v18 = vpop.f32.mrb[1].mxu1 }
 0x3a2   : > { %v2020_v22 = vpop.f32.mrb[2].mxu0  ;;  %v2030_v56 = vpop.f32.mrb[2].mxu1 }
 0x3a3   : > { %2036 = vst [vmem:[%s2034_s18 + $0x8] sm:$0xff] %v2020_v22  ;;  %2038 = vst [vmem:[%s2034_s18 + $0x18] sm:$0xff] %v2030_v56  ;;  %v2022_v23 = vpop.f32.mrb[3].mxu0  ;;  %v2032_v39 = vpop.f32.mrb[3].mxu1 }
 0x3aa   :  { %v2119_v59 = vld [vmem:[#allocation4 + $0x80] sm:$0xff]  ;;  %v2120_v35 = vld [vmem:[#allocation4 + $0x88] sm:$0xff]  ;;  %v2121_v19 = vld [vmem:[#allocation4 + $0x90] sm:$0xff] }
 0x3ab   :  { %v2103_v34 = vld [vmem:[#allocation4] sm:$0xff]  ;;  %v4091_v47 = vpack.c.bf16 %v2120_v35, %v2119_v59  ;;  %v2104_v28 = vld [vmem:[#allocation4 + $0x8] sm:$0xff]  ;;  %v2122_v31 = vld [vmem:[#allocation4 + $0x98] sm:$0xff] }
 0x3ac   :  { %v2151_v7 = vld [vmem:[#allocation4 + $0x180] sm:$0xff]  ;;  %v2152_v20 = vld [vmem:[#allocation4 + $0x188] sm:$0xff]  ;;  %v4093_v21 = vpack.c.bf16 %v2104_v28, %v2103_v34  ;;  %v2105_v1 = vld [vmem:[#allocation4 + $0x10] sm:$0xff]  ;;  %v4095_v42 = vpack.c.bf16 %v2122_v31, %v2121_v19 }
 0x3ad   :  { %v4123_v45 = vpack.c.bf16 %v2152_v20, %v2151_v7  ;;  %v2135_v17 = vld [vmem:[#allocation4 + $0x100] sm:$0xff]  ;;  %v2136_v54 = vld [vmem:[#allocation4 + $0x108] sm:$0xff]  ;;  %4092 = vmatprep.subr.bf16.mxu0 %v4091_v47  ;;  %v2106_v30 = vld [vmem:[#allocation4 + $0x18] sm:$0xff] }
 0x3ae   :  { %v4125_v61 = vpack.c.bf16 %v2136_v54, %v2135_v17  ;;  %4094 = vmatpush3.bf16.msra.mxu0 %v4093_v21  ;;  %v4097_v52 = vpack.c.bf16 %v2106_v30, %v2105_v1  ;;  %v2153_v8 = vld [vmem:[#allocation4 + $0x190] sm:$0xff]  ;;  %v2154_v32 = vld [vmem:[#allocation4 + $0x198] sm:$0xff]  ;;  %v2123_v43 = vld [vmem:[#allocation4 + $0xa0] sm:$0xff] }
 0x3af   :  { %4124 = vmatprep.subr.bf16.mxu1 %v4123_v45  ;;  %v2137_v4 = vld [vmem:[#allocation4 + $0x110] sm:$0xff]  ;;  %v4127_v11 = vpack.c.bf16 %v2154_v32, %v2153_v8  ;;  %v2138_v0 = vld [vmem:[#allocation4 + $0x118] sm:$0xff]  ;;  %v2124_v3 = vld [vmem:[#allocation4 + $0xa8] sm:$0xff]  ;;  %4096 = vmatprep.subr.bf16.mxu0 %v4095_v42 }
 0x3b0   :  { %4126 = vmatpush3.bf16.msra.mxu1 %v4125_v61  ;;  %v4129_v24 = vpack.c.bf16 %v2138_v0, %v2137_v4  ;;  %v4099_v25 = vpack.c.bf16 %v2124_v3, %v2123_v43  ;;  %v2107_v9 = vld [vmem:[#allocation4 + $0x20] sm:$0xff]  ;;  %v2108_v29 = vld [vmem:[#allocation4 + $0x28] sm:$0xff]  ;;  %v2125_v5 = vld [vmem:[#allocation4 + $0xb0] sm:$0xff] }
 0x3b1   :  { %v2155_v49 = vld [vmem:[#allocation4 + $0x1a0] sm:$0xff]  ;;  %4128 = vmatprep.subr.bf16.mxu1 %v4127_v11  ;;  %v2156_v51 = vld [vmem:[#allocation4 + $0x1a8] sm:$0xff]  ;;  %v4101_v62 = vpack.c.bf16 %v2108_v29, %v2107_v9  ;;  %v2126_v38 = vld [vmem:[#allocation4 + $0xb8] sm:$0xff] }
 0x3b2   :  { %v2139_v15 = vld [vmem:[#allocation4 + $0x120] sm:$0xff]  ;;  %v2140_v44 = vld [vmem:[#allocation4 + $0x128] sm:$0xff]  ;;  %4098 = vmatpush3.bf16.msra.mxu0 %v4097_v52  ;;  %v4131_v12 = vpack.c.bf16 %v2156_v51, %v2155_v49  ;;  %v2109_v50 = vld [vmem:[#allocation4 + $0x30] sm:$0xff]  ;;  %v4103_v48 = vpack.c.bf16 %v2126_v38, %v2125_v5 }
 0x3b3   :  { %4100 = vmatprep.subr.bf16.mxu0 %v4099_v25  ;;  %v4133_v55 = vpack.c.bf16 %v2140_v44, %v2139_v15  ;;  %v2110_v53 = vld [vmem:[#allocation4 + $0x38] sm:$0xff]  ;;  %v2157_v41 = vld [vmem:[#allocation4 + $0x1b0] sm:$0xff]  ;;  %v2127_v60 = vld [vmem:[#allocation4 + $0xc0] sm:$0xff] }
 0x3b4   :  { %4130 = vmatpush3.bf16.msra.mxu1 %v4129_v24  ;;  %v2158_v36 = vld [vmem:[#allocation4 + $0x1b8] sm:$0xff]  ;;  %v2141_v10 = vld [vmem:[#allocation4 + $0x130] sm:$0xff]  ;;  %v2128_v2 = vld [vmem:[#allocation4 + $0xc8] sm:$0xff]  ;;  %v4105_v13 = vpack.c.bf16 %v2110_v53, %v2109_v50 }
 0x3b5   :  { %4132 = vmatprep.subr.bf16.mxu1 %v4131_v12  ;;  %v4135_v37 = vpack.c.bf16 %v2158_v36, %v2157_v41  ;;  %v2142_v57 = vld [vmem:[#allocation4 + $0x138] sm:$0xff]  ;;  %v2159_v40 = vld [vmem:[#allocation4 + $0x1c0] sm:$0xff]  ;;  %v2160_v33 = vld [vmem:[#allocation4 + $0x1c8] sm:$0xff]  ;;  %v4107_v26 = vpack.c.bf16 %v2128_v2, %v2127_v60 }
 0x3b6   :  { %4102 = vmatpush3.bf16.msra.mxu0 %v4101_v62  ;;  %v4137_v63 = vpack.c.bf16 %v2142_v57, %v2141_v10  ;;  %v2111_v16 = vld [vmem:[#allocation4 + $0x40] sm:$0xff]  ;;  %v2112_v6 = vld [vmem:[#allocation4 + $0x48] sm:$0xff]  ;;  %v4139_v46 = vpack.c.bf16 %v2160_v33, %v2159_v40  ;;  %v2129_v18 = vld [vmem:[#allocation4 + $0xd0] sm:$0xff] }
 0x3b7   :  { %4104 = vmatprep.subr.bf16.mxu0 %v4103_v48  ;;  %v2143_v27 = vld [vmem:[#allocation4 + $0x140] sm:$0xff]  ;;  %v2144_v58 = vld [vmem:[#allocation4 + $0x148] sm:$0xff]  ;;  %v2130_v22 = vld [vmem:[#allocation4 + $0xd8] sm:$0xff]  ;;  %v4109_v39 = vpack.c.bf16 %v2112_v6, %v2111_v16 }
 0x3b8   :  { %4134 = vmatpush3.bf16.msra.mxu1 %v4133_v55  ;;  %v2161_v56 = vld [vmem:[#allocation4 + $0x1d0] sm:$0xff]  ;;  %v2162_v23 = vld [vmem:[#allocation4 + $0x1d8] sm:$0xff]  ;;  %v4141_v59 = vpack.c.bf16 %v2144_v58, %v2143_v27  ;;  %v4111_v35 = vpack.c.bf16 %v2130_v22, %v2129_v18  ;;  %v2131_v14 = vld [vmem:[#allocation4 + $0xe0] sm:$0xff] }
 0x3b9   :  { %4136 = vmatprep.subr.bf16.mxu1 %v4135_v37  ;;  %v2113_v34 = vld [vmem:[#allocation4 + $0x50] sm:$0xff]  ;;  %v2114_v47 = vld [vmem:[#allocation4 + $0x58] sm:$0xff]  ;;  %v4143_v7 = vpack.c.bf16 %v2162_v23, %v2161_v56  ;;  %v2132_v21 = vld [vmem:[#allocation4 + $0xe8] sm:$0xff] }
 0x3ba   :  { %4106 = vmatpush3.bf16.msra.mxu0 %v4105_v13  ;;  %v2145_v28 = vld [vmem:[#allocation4 + $0x150] sm:$0xff]  ;;  %v2146_v20 = vld [vmem:[#allocation4 + $0x158] sm:$0xff]  ;;  %v2163_v45 = vld [vmem:[#allocation4 + $0x1e0] sm:$0xff]  ;;  %v4113_v54 = vpack.c.bf16 %v2114_v47, %v2113_v34  ;;  %v4115_v1 = vpack.c.bf16 %v2132_v21, %v2131_v14 }
 0x3bb   :  { %4108 = vmatprep.subr.bf16.mxu0 %v4107_v26  ;;  %v2164_v17 = vld [vmem:[#allocation4 + $0x1e8] sm:$0xff]  ;;  %v2115_v19 = vld [vmem:[#allocation4 + $0x60] sm:$0xff]  ;;  %v4145_v31 = vpack.c.bf16 %v2146_v20, %v2145_v28  ;;  %v2133_v32 = vld [vmem:[#allocation4 + $0xf0] sm:$0xff] }
 0x3bc   :  { %4138 = vmatpush3.bf16.msra.mxu1 %v4137_v63  ;;  %v2116_v61 = vld [vmem:[#allocation4 + $0x68] sm:$0xff]  ;;  %v2147_v30 = vld [vmem:[#allocation4 + $0x160] sm:$0xff]  ;;  %v4147_v8 = vpack.c.bf16 %v2164_v17, %v2163_v45  ;;  %v2134_v4 = vld [vmem:[#allocation4 + $0xf8] sm:$0xff] }
 0x3bd   :  { %4140 = vmatprep.subr.bf16.mxu1 %v4139_v46  ;;  %v2148_v42 = vld [vmem:[#allocation4 + $0x168] sm:$0xff]  ;;  %v2042_v11 = vld [vmem:[%s7116_s3 + $0x18] sm:$0xff]  ;;  %v2165_v0 = vld [vmem:[#allocation4 + $0x1f0] sm:$0xff]  ;;  %v4117_v3 = vpack.c.bf16 %v2116_v61, %v2115_v19  ;;  %v4119_v25 = vpack.c.bf16 %v2134_v4, %v2133_v32 }
 0x3be   :  { %4110 = vmatpush3.bf16.msra.mxu0 %v4109_v39  ;;  %v2040_v52 = vld [vmem:[%s7116_s3 + $0x8] sm:$0xff]  ;;  %v2166_v43 = vld [vmem:[#allocation4 + $0x1f8] sm:$0xff]  ;;  %2472 = vmatprep.mubr.f32.mxu1 %v2042_v11  ;;  %v4149_v24 = vpack.c.bf16 %v2148_v42, %v2147_v30  ;;  %v2117_v9 = vld [vmem:[#allocation4 + $0x70] sm:$0xff] }
 0x3bf   :  { %4112 = vmatprep.subr.bf16.mxu0 %v4111_v35  ;;  %2327 = vmatprep.mubr.f32.mxu0 %v2040_v52  ;;  %v2118_v29 = vld [vmem:[#allocation4 + $0x78] sm:$0xff]  ;;  %v4151_v49 = vpack.c.bf16 %v2166_v43, %v2165_v0  ;;  %v2149_v51 = vld [vmem:[#allocation4 + $0x170] sm:$0xff]  ;;  %v2167_v12 = vld [vmem:[%s7117_s4] sm:$0xff] }
 0x3c0   :  { %4142 = vmatpush3.bf16.msra.mxu1 %v4141_v59  ;;  %v2150_v15 = vld [vmem:[#allocation4 + $0x178] sm:$0xff]  ;;  %v4121_v44 = vpack.c.bf16 %v2118_v29, %v2117_v9  ;;  %2185 = vperm.xlu0 %4683, %v2167_v12   ;;  %v2169_v5 = vld [vmem:[%s7117_s4 + $0x10] sm:$0xff]  ;;  %v2168_v38 = vld [vmem:[%s7117_s4 + $0x8] sm:$0xff] }
 0x3c1   :  { %4144 = vmatprep.subr.bf16.mxu1 %v4143_v7  ;;  %v4153_v62 = vpack.c.bf16 %v2150_v15, %v2149_v51  ;;  %v2039_v50 = vld [vmem:[%s7116_s3] sm:$0xff]  ;;  %2195 = vperm.xlu1 %4684, %v2169_v5   ;;  %v2041_v55 = vld [vmem:[%s7116_s3 + $0x10] sm:$0xff]  ;;  %v2044_v48 = vld [vmem:[%s7116_s3 + $0x28] sm:$0xff] }
 0x3c2   :  { %4114 = vmatpush3.bf16.msra.mxu0 %v4113_v54  ;;  %v2046_v53 = vld [vmem:[%s7116_s3 + $0x38] sm:$0xff]  ;;  %v2171_v36 = vld [vmem:[%s7117_s4 + $0x20] sm:$0xff]  ;;  %v2045_v10 = vld [vmem:[%s7116_s3 + $0x30] sm:$0xff] }
 0x3c3   :  { %4116 = vmatprep.subr.bf16.mxu0 %v4115_v1  ;;  %v2170_v41 = vld [vmem:[%s7117_s4 + $0x18] sm:$0xff]  ;;  %v2043_v37 = vld [vmem:[%s7116_s3 + $0x20] sm:$0xff]  ;;  %v2048_v57 = vld [vmem:[%s7116_s3 + $0x48] sm:$0xff] }
 0x3c4   :  { %4146 = vmatpush3.bf16.msra.mxu1 %v4145_v31  ;;  %2190 = vperm.xlu0 %4683, %v2168_v38   ;;  %v2050_v60 = vld [vmem:[%s7116_s3 + $0x58] sm:$0xff]  ;;  %v2172_v2 = vld [vmem:[%s7117_s4 + $0x28] sm:$0xff]  ;;  %v2173_v13 = vld [vmem:[%s7117_s4 + $0x30] sm:$0xff] }
 0x3c5   :  { %4148 = vmatprep.subr.bf16.mxu1 %v4147_v8  ;;  %2200 = vperm.xlu1 %4684, %v2170_v41   ;;  %v2047_v40 = vld [vmem:[%s7116_s3 + $0x40] sm:$0xff]  ;;  %v2049_v33 = vld [vmem:[%s7116_s3 + $0x50] sm:$0xff]  ;;  %v2052_v63 = vld [vmem:[%s7116_s3 + $0x68] sm:$0xff] }
 0x3c6   :  { %4118 = vmatpush3.bf16.msra.mxu0 %v4117_v3  ;;  %v2054_v26 = vld [vmem:[%s7116_s3 + $0x78] sm:$0xff]  ;;  %v2175_v6 = vld [vmem:[%s7117_s4 + $0x40] sm:$0xff]  ;;  %v2053_v46 = vld [vmem:[%s7116_s3 + $0x70] sm:$0xff] }
 0x3c7   :  { %4120 = vmatprep.subr.bf16.mxu0 %v4119_v25  ;;  %v2174_v16 = vld [vmem:[%s7117_s4 + $0x38] sm:$0xff]  ;;  %v2051_v27 = vld [vmem:[%s7116_s3 + $0x60] sm:$0xff]  ;;  %v2056_v58 = vld [vmem:[%s7116_s3 + $0x88] sm:$0xff] }
 0x3c8   :  { %4150 = vmatpush3.bf16.msra.mxu1 %v4149_v24  ;;  %2205 = vperm.xlu0 %4683, %v2171_v36   ;;  %v2058_v18 = vld [vmem:[%s7116_s3 + $0x98] sm:$0xff]  ;;  %v2176_v22 = vld [vmem:[%s7117_s4 + $0x48] sm:$0xff]  ;;  %v2177_v56 = vld [vmem:[%s7117_s4 + $0x50] sm:$0xff] }
 0x3c9   :  { %4152 = vmatprep.subr.bf16.mxu1 %v4151_v49  ;;  %2210 = vperm.xlu1 %4684, %v2172_v2   ;;  %v2055_v23 = vld [vmem:[%s7116_s3 + $0x80] sm:$0xff]  ;;  %v2057_v39 = vld [vmem:[%s7116_s3 + $0x90] sm:$0xff]  ;;  %v2060_v59 = vld [vmem:[%s7116_s3 + $0xa8] sm:$0xff] }
 0x3ca   :  { %4122 = vmatpush3.bf16.msra.mxu0 %v4121_v44  ;;  %v2062_v35 = vld [vmem:[%s7116_s3 + $0xb8] sm:$0xff]  ;;  %v2179_v47 = vld [vmem:[%s7117_s4 + $0x60] sm:$0xff]  ;;  %v2061_v7 = vld [vmem:[%s7116_s3 + $0xb0] sm:$0xff] }
 0x3cb   :  { %v2178_v34 = vld [vmem:[%s7117_s4 + $0x58] sm:$0xff]  ;;  %v2059_v28 = vld [vmem:[%s7116_s3 + $0xa0] sm:$0xff]  ;;  %v2064_v20 = vld [vmem:[%s7116_s3 + $0xc8] sm:$0xff] }
 0x3cc   :  { %4154 = vmatpush3.bf16.msra.mxu1 %v4153_v62  ;;  %2215 = vperm.xlu0 %4683, %v2173_v13   ;;  %v2066_v14 = vld [vmem:[%s7116_s3 + $0xd8] sm:$0xff]  ;;  %v2180_v21 = vld [vmem:[%s7117_s4 + $0x68] sm:$0xff]  ;;  %v2181_v45 = vld [vmem:[%s7117_s4 + $0x70] sm:$0xff] }
 0x3cd   :  { %2328 = vmatmul.mubr.f32.vlgmr.msra.gmra.mrb[0].mxu0 %v2039_v50  ;;  %2220 = vperm.xlu1 %4684, %v2174_v16   ;;  %v2063_v17 = vld [vmem:[%s7116_s3 + $0xc0] sm:$0xff]  ;;  %v2065_v54 = vld [vmem:[%s7116_s3 + $0xd0] sm:$0xff]  ;;  %v2068_v19 = vld [vmem:[%s7116_s3 + $0xe8] sm:$0xff] }
 0x3ce   :  { %2332 = vmatprep.mubr.f32.mxu0 %v2044_v48  ;;  %v2070_v61 = vld [vmem:[%s7116_s3 + $0xf8] sm:$0xff]  ;;  %v2585_v1 = vld [vmem:[%s7119_s6] sm:$0xff]  ;;  %v2069_v42 = vld [vmem:[%s7116_s3 + $0xf0] sm:$0xff] }
 0x3cf   :  { %2473 = vmatmul.mubr.f32.vlgmr.msra.gmra.mrb[0].mxu1 %v2041_v55  ;;  %v2182_v31 = vld [vmem:[%s7117_s4 + $0x78] sm:$0xff]  ;;  %v2067_v30 = vld [vmem:[%s7116_s3 + $0xe0] sm:$0xff]  ;;  %v2072_v52 = vld [vmem:[%s7116_s3 + $0x108] sm:$0xff] }
 0x3d0   :  { %2477 = vmatprep.mubr.f32.mxu1 %v2046_v53  ;;  %2225 = vperm.xlu0 %4683, %v2175_v6   ;;  %v2074_v8 = vld [vmem:[%s7116_s3 + $0x118] sm:$0xff]  ;;  %v2586_v32 = vld [vmem:[%s7119_s6 + $0x8] sm:$0xff]  ;;  %v2587_v4 = vld [vmem:[%s7119_s6 + $0x10] sm:$0xff] }
 0x3d1   :  { %2333 = vmatmul.mubr.f32.gmra.mrb[2].mxu0 %v2043_v37  ;;  %2230 = vperm.xlu1 %4684, %v2176_v22   ;;  %v2071_v11 = vld [vmem:[%s7116_s3 + $0x100] sm:$0xff]  ;;  %v2073_v0 = vld [vmem:[%s7116_s3 + $0x110] sm:$0xff]  ;;  %v2076_v43 = vld [vmem:[%s7116_s3 + $0x128] sm:$0xff] }
 0x3d2   :  { %2337 = vmatprep.mubr.f32.mxu0 %v2048_v57  ;;  %v2078_v3 = vld [vmem:[%s7116_s3 + $0x138] sm:$0xff]  ;;  %v2589_v25 = vld [vmem:[%s7119_s6 + $0x20] sm:$0xff]  ;;  %v2077_v29 = vld [vmem:[%s7116_s3 + $0x130] sm:$0xff] }
 0x3d3   :  { %2478 = vmatmul.mubr.f32.gmra.mrb[2].mxu1 %v2045_v10  ;;  %v2588_v24 = vld [vmem:[%s7119_s6 + $0x18] sm:$0xff]  ;;  %v2075_v9 = vld [vmem:[%s7116_s3 + $0x120] sm:$0xff]  ;;  %v2080_v49 = vld [vmem:[%s7116_s3 + $0x148] sm:$0xff] }
 0x3d4   :  { %2482 = vmatprep.mubr.f32.mxu1 %v2050_v60  ;;  %2235 = vperm.xlu0 %4683, %v2177_v56   ;;  %v2082_v51 = vld [vmem:[%s7116_s3 + $0x158] sm:$0xff]  ;;  %v2590_v15 = vld [vmem:[%s7119_s6 + $0x28] sm:$0xff]  ;;  %v2591_v44 = vld [vmem:[%s7119_s6 + $0x30] sm:$0xff] }
 0x3d5   :  { %2338 = vmatmul.mubr.f32.gmra.mrb[4].mxu0 %v2047_v40  ;;  %2240 = vperm.xlu1 %4684, %v2178_v34   ;;  %v2079_v62 = vld [vmem:[%s7116_s3 + $0x140] sm:$0xff]  ;;  %v2081_v12 = vld [vmem:[%s7116_s3 + $0x150] sm:$0xff]  ;;  %v2084_v5 = vld [vmem:[%s7116_s3 + $0x168] sm:$0xff] }
 0x3d6   :  { %2342 = vmatprep.mubr.f32.mxu0 %v2052_v63  ;;  %v2086_v38 = vld [vmem:[%s7116_s3 + $0x178] sm:$0xff]  ;;  %v2593_v55 = vld [vmem:[%s7119_s6 + $0x40] sm:$0xff]  ;;  %v2085_v53 = vld [vmem:[%s7116_s3 + $0x170] sm:$0xff] }
 0x3d7   :  { %2483 = vmatmul.mubr.f32.gmra.mrb[4].mxu1 %v2049_v33  ;;  %v2592_v50 = vld [vmem:[%s7119_s6 + $0x38] sm:$0xff]  ;;  %v2083_v48 = vld [vmem:[%s7116_s3 + $0x160] sm:$0xff]  ;;  %v2088_v41 = vld [vmem:[%s7116_s3 + $0x188] sm:$0xff] }
 0x3d8   :  { %2487 = vmatprep.mubr.f32.mxu1 %v2054_v26  ;;  %2245 = vperm.xlu0 %4683, %v2179_v47   ;;  %v2090_v36 = vld [vmem:[%s7116_s3 + $0x198] sm:$0xff]  ;;  %v2594_v37 = vld [vmem:[%s7119_s6 + $0x48] sm:$0xff]  ;;  %v2595_v10 = vld [vmem:[%s7119_s6 + $0x50] sm:$0xff] }
 0x3d9   :  { %2343 = vmatmul.mubr.f32.gmra.mrb[6].mxu0 %v2051_v27  ;;  %2250 = vperm.xlu1 %4684, %v2180_v21   ;;  %v2087_v57 = vld [vmem:[%s7116_s3 + $0x180] sm:$0xff]  ;;  %v2089_v60 = vld [vmem:[%s7116_s3 + $0x190] sm:$0xff]  ;;  %v2092_v2 = vld [vmem:[%s7116_s3 + $0x1a8] sm:$0xff] }
 0x3da   :  { %2347 = vmatprep.mubr.f32.mxu0 %v2056_v58  ;;  %v2094_v13 = vld [vmem:[%s7116_s3 + $0x1b8] sm:$0xff]  ;;  %v2597_v33 = vld [vmem:[%s7119_s6 + $0x60] sm:$0xff]  ;;  %v2093_v26 = vld [vmem:[%s7116_s3 + $0x1b0] sm:$0xff] }
 0x3db   :  { %2488 = vmatmul.mubr.f32.gmra.mrb[6].mxu1 %v2053_v46  ;;  %v2596_v40 = vld [vmem:[%s7119_s6 + $0x58] sm:$0xff]  ;;  %v2091_v63 = vld [vmem:[%s7116_s3 + $0x1a0] sm:$0xff]  ;;  %v2096_v16 = vld [vmem:[%s7116_s3 + $0x1c8] sm:$0xff] }
 0x3dc   :  { %2492 = vmatprep.mubr.f32.mxu1 %v2058_v18  ;;  %2255 = vperm.xlu0 %4683, %v2181_v45   ;;  %v2098_v6 = vld [vmem:[%s7116_s3 + $0x1d8] sm:$0xff]  ;;  %v2598_v27 = vld [vmem:[%s7119_s6 + $0x68] sm:$0xff]  ;;  %v2599_v46 = vld [vmem:[%s7119_s6 + $0x70] sm:$0xff] }
 0x3dd   :  { %2348 = vmatmul.mubr.f32.gmra.mrb[8].mxu0 %v2055_v23  ;;  %2260 = vperm.xlu1 %4684, %v2182_v31   ;;  %v2095_v58 = vld [vmem:[%s7116_s3 + $0x1c0] sm:$0xff]  ;;  %v2097_v18 = vld [vmem:[%s7116_s3 + $0x1d0] sm:$0xff]  ;;  %v2100_v22 = vld [vmem:[%s7116_s3 + $0x1e8] sm:$0xff] }
 0x3de   :  { %2352 = vmatprep.mubr.f32.mxu0 %v2060_v59  ;;  %v2102_v56 = vld [vmem:[%s7116_s3 + $0x1f8] sm:$0xff]  ;;  %v2099_v59 = vld [vmem:[%s7116_s3 + $0x1e0] sm:$0xff]  ;;  %v2859_v34 = vld [vmem:[%s7121_s8 + $0x8] sm:$0xff] }
 0x3df   :  { %2493 = vmatmul.mubr.f32.gmra.mrb[8].mxu1 %v2057_v39  ;;  %v2600_v23 = vld [vmem:[%s7119_s6 + $0x78] sm:$0xff]  ;;  %v2858_v39 = vld [vmem:[%s7121_s8] sm:$0xff]  ;;  %v2860_v47 = vld [vmem:[%s7121_s8 + $0x10] sm:$0xff] }
 0x3e0   :  { %2497 = vmatprep.mubr.f32.mxu1 %v2062_v35  ;;  %2603 = vperm.xlu0 %4683, %v2585_v1   ;;  %v2101_v35 = vld [vmem:[%s7116_s3 + $0x1f0] sm:$0xff]  ;;  %v2865_v21 = vld [vmem:[%s7121_s8 + $0x38] sm:$0xff]  ;;  %v2866_v45 = vld [vmem:[%s7121_s8 + $0x40] sm:$0xff] }
 0x3e1   :  { %2353 = vmatmul.mubr.f32.gmra.mrb[10].mxu0 %v2059_v28  ;;  %2608 = vperm.xlu1 %4684, %v2586_v32   ;;  %v2861_v28 = vld [vmem:[%s7121_s8 + $0x18] sm:$0xff]  ;;  %v2871_v31 = vld [vmem:[%s7121_s8 + $0x68] sm:$0xff]  ;;  %v2872_v1 = vld [vmem:[%s7121_s8 + $0x70] sm:$0xff] }
 0x3e2   :  { %2357 = vmatprep.mubr.f32.mxu0 %v2064_v20  ;;  %v2863_v20 = vld [vmem:[%s7121_s8 + $0x28] sm:$0xff] }
 0x3e3   :  { %2498 = vmatmul.mubr.f32.gmra.mrb[10].mxu1 %v2061_v7  ;;  %v2862_v7 = vld [vmem:[%s7121_s8 + $0x20] sm:$0xff] }
 0x3e4   :  { %2502 = vmatprep.mubr.f32.mxu1 %v2066_v14  ;;  %2613 = vperm.xlu0 %4683, %v2587_v4   ;;  %v2864_v14 = vld [vmem:[%s7121_s8 + $0x30] sm:$0xff] }
 0x3e5   :  { %2358 = vmatmul.mubr.f32.gmra.mrb[12].mxu0 %v2063_v17  ;;  %2618 = vperm.xlu1 %4684, %v2588_v24   ;;  %v2867_v17 = vld [vmem:[%s7121_s8 + $0x48] sm:$0xff] }
 0x3e6   :  { %2362 = vmatprep.mubr.f32.mxu0 %v2068_v19  ;;  %v2869_v19 = vld [vmem:[%s7121_s8 + $0x58] sm:$0xff] }
 0x3e7   :  { %2503 = vmatmul.mubr.f32.gmra.mrb[12].mxu1 %v2065_v54  ;;  %v2868_v54 = vld [vmem:[%s7121_s8 + $0x50] sm:$0xff] }
 0x3e8   :  { %2507 = vmatprep.mubr.f32.mxu1 %v2070_v61  ;;  %2623 = vperm.xlu0 %4683, %v2589_v25   ;;  %v2870_v61 = vld [vmem:[%s7121_s8 + $0x60] sm:$0xff] }
 0x3e9   :  { %2363 = vmatmul.mubr.f32.gmra.mrb[14].mxu0 %v2067_v30  ;;  %2628 = vperm.xlu1 %4684, %v2590_v15   ;;  %v2873_v30 = vld [vmem:[%s7121_s8 + $0x78] sm:$0xff] }
 0x3ea   :  { %2367 = vmatprep.mubr.f32.mxu0 %v2072_v52 }
 0x3eb   :  { %2508 = vmatmul.mubr.f32.gmra.mrb[14].mxu1 %v2069_v42  ;;  %v2569_v42 = vld [vmem:[%s7118_s5] sm:$0xff] }
 0x3ec   :  { %2512 = vmatprep.mubr.f32.mxu1 %v2074_v8  ;;  %2633 = vperm.xlu0 %4683, %v2591_v44  }
 0x3ed   :  { %2368 = vmatmul.mubr.f32.gmra.mrb[16].mxu0 %v2071_v11  ;;  %2638 = vperm.xlu1 %4684, %v2592_v50  }
 0x3ee   :  { %2372 = vmatprep.mubr.f32.mxu0 %v2076_v43 }
 0x3ef   :  { %2513 = vmatmul.mubr.f32.gmra.mrb[16].mxu1 %v2073_v0 }
 0x3f0   :  { %2517 = vmatprep.mubr.f32.mxu1 %v2078_v3  ;;  %2643 = vperm.xlu0 %4683, %v2593_v55  }
 0x3f1   :  { %2373 = vmatmul.mubr.f32.gmra.mrb[18].mxu0 %v2075_v9  ;;  %2648 = vperm.xlu1 %4684, %v2594_v37  }
 0x3f2   :  { %2377 = vmatprep.mubr.f32.mxu0 %v2080_v49 }
 0x3f3   :  { %2518 = vmatmul.mubr.f32.gmra.mrb[18].mxu1 %v2077_v29 }
 0x3f4   :  { %2522 = vmatprep.mubr.f32.mxu1 %v2082_v51  ;;  %2653 = vperm.xlu0 %4683, %v2595_v10  }
 0x3f5   :  { %2378 = vmatmul.mubr.f32.gmra.mrb[20].mxu0 %v2079_v62  ;;  %2658 = vperm.xlu1 %4684, %v2596_v40  }
 0x3f6   :  { %2382 = vmatprep.mubr.f32.mxu0 %v2084_v5 }
 0x3f7   :  { %2523 = vmatmul.mubr.f32.gmra.mrb[20].mxu1 %v2081_v12 }
 0x3f8   :  { %2527 = vmatprep.mubr.f32.mxu1 %v2086_v38  ;;  %2663 = vperm.xlu0 %4683, %v2597_v33  }
 0x3f9   :  { %2383 = vmatmul.mubr.f32.gmra.mrb[22].mxu0 %v2083_v48  ;;  %2668 = vperm.xlu1 %4684, %v2598_v27  }
 0x3fa   :  { %2387 = vmatprep.mubr.f32.mxu0 %v2088_v41 }
 0x3fb   :  { %2528 = vmatmul.mubr.f32.gmra.mrb[22].mxu1 %v2085_v53 }
 0x3fc   :  { %2532 = vmatprep.mubr.f32.mxu1 %v2090_v36  ;;  %2673 = vperm.xlu0 %4683, %v2599_v46  }
 0x3fd   :  { %2388 = vmatmul.mubr.f32.gmra.mrb[24].mxu0 %v2087_v57  ;;  %2678 = vperm.xlu1 %4684, %v2600_v23  }
 0x3fe   :  { %2392 = vmatprep.mubr.f32.mxu0 %v2092_v2 }
 0x3ff   :  { %2533 = vmatmul.mubr.f32.gmra.mrb[24].mxu1 %v2089_v60 }
 0x400   :  { %2537 = vmatprep.mubr.f32.mxu1 %v2094_v13  ;;  %2876 = vperm.xlu0 %4683, %v2858_v39  }
 0x401   :  { %2393 = vmatmul.mubr.f32.gmra.mrb[26].mxu0 %v2091_v63  ;;  %2881 = vperm.xlu1 %4684, %v2859_v34  }
 0x402   :  { %2397 = vmatprep.mubr.f32.mxu0 %v2096_v16 }
 0x403   :  { %2538 = vmatmul.mubr.f32.gmra.mrb[26].mxu1 %v2093_v26 }
 0x404   :  { %2542 = vmatprep.mubr.f32.mxu1 %v2098_v6  ;;  %2886 = vperm.xlu0 %4683, %v2860_v47  }
 0x405   :  { %2398 = vmatmul.mubr.f32.gmra.mrb[28].mxu0 %v2095_v58  ;;  %2891 = vperm.xlu1 %4684, %v2861_v28  }
 0x406   :  { %2402 = vmatprep.mubr.f32.mxu0 %v2100_v22 }
 0x407   :  { %2543 = vmatmul.mubr.f32.gmra.mrb[28].mxu1 %v2097_v18 }
 0x408   :  { %2547 = vmatprep.mubr.f32.mxu1 %v2102_v56  ;;  %2896 = vperm.xlu0 %4683, %v2862_v7  }
 0x409   :  { %2403 = vmatmul.mubr.f32.gmra.mrb[30].mxu0 %v2099_v59  ;;  %2901 = vperm.xlu1 %4684, %v2863_v20  }
 0x40a   :  { %3808 = vmatprep.mubr.f32.mxu0 %v2569_v42 }
 0x40b   :  { %2548 = vmatmul.mubr.f32.gmra.mrb[30].mxu1 %v2101_v35 }
 0x40c   :  { %2906 = vperm.xlu0 %4683, %v2864_v14  }
 0x40d   :  { %2911 = vperm.xlu1 %4684, %v2865_v21  }
 0x410   :  { %2916 = vperm.xlu0 %4683, %v2866_v45  }
 0x411   :  { %2921 = vperm.xlu1 %4684, %v2867_v17  }
 0x414   :  { %2926 = vperm.xlu0 %4683, %v2868_v54  }
 0x415   :  { %2931 = vperm.xlu1 %4684, %v2869_v19  }
 0x418   :  { %2936 = vperm.xlu0 %4683, %v2870_v61  }
 0x419   :  { %2941 = vperm.xlu1 %4684, %v2871_v31  }
 0x41c   :  { %2946 = vperm.xlu0 %4683, %v2872_v1  }
 0x41d   :  { %2951 = vperm.xlu1 %4684, %v2873_v30  }
 0x43f   :  { %v2186_v52 = vpop.permute.xlu0 %2185 }
 0x440   :  { %v2196_v62 = vpop.permute.xlu1 %2195 }
 0x443   :  { %v2191_v15 = vpop.permute.xlu0 %2190 }
 0x444   :  { %v2201_v26 = vpop.permute.xlu1 %2200 }
 0x447   :  { %v2206_v23 = vpop.permute.xlu0 %2205 }
 0x448   :  { %v2211_v17 = vpop.permute.xlu1 %2210 }
 0x4a0   :  { %v3513_v8 = vpop.f32.mrb[0].mxu0 }
 0x4a1   :  { %v3514_v32 = vpop.f32.mrb[1].mxu0 }
 0x4a2   :  { %v3593_v4 = vpop.f32.mrb[0].mxu1  ;;  %v3515_v11 = vadd.f32 %v3514_v32, %v3513_v8  ;;  %v2216_v8 = vpop.permute.xlu0 %2215 }
 0x4a3   :  { %v3594_v0 = vpop.f32.mrb[1].mxu1 }
 0x4a4   :  { %v3595_v43 = vadd.f32 %v3594_v0, %v3593_v4  ;;  %v2330_v3 = vadd.f32 %v3515_v11, %v2186_v52  ;;  %v3516_v24 = vpop.f32.mrb[2].mxu0 }
 0x4a5   :  { %v3517_v25 = vpop.f32.mrb[3].mxu0 }
 0x4a6   :  { %v3596_v9 = vpop.f32.mrb[2].mxu1  ;;  %v2475_v29 = vadd.f32 %v3595_v43, %v2330_v3  ;;  %v3518_v49 = vadd.f32 %v3517_v25, %v3516_v24 }
 0x4a7   :  { %v3597_v51 = vpop.f32.mrb[3].mxu1 }
 0x4a8   :  { %v3598_v44 = vadd.f32 %v3597_v51, %v3596_v9  ;;  %v2335_v12 = vadd.f32 %v3518_v49, %v2191_v15  ;;  %v3519_v5 = vpop.f32.mrb[4].mxu0  ;;  %v2553_v36 = vmax.f32 %v2475_v29, 0.0  ;;  %v2221_v51 = vpop.permute.xlu1 %2220 }
 0x4a9   :  { %v3520_v38 = vpop.f32.mrb[5].mxu0 }
 0x4aa   :  { %v3599_v50 = vpop.f32.mrb[4].mxu1  ;;  %v2480_v55 = vadd.f32 %v3598_v44, %v2335_v12  ;;  %v3521_v48 = vadd.f32 %v3520_v38, %v3519_v5 }
 0x4ab   :  { %v3600_v53 = vpop.f32.mrb[5].mxu1 }
 0x4ac   :  { %v3601_v41 = vadd.f32 %v3600_v53, %v3599_v50  ;;  %v2554_v37 = vmax.f32 %v2480_v55, 0.0  ;;  %v2340_v10 = vadd.f32 %v3521_v48, %v2196_v62  ;;  %v3522_v57 = vpop.f32.mrb[6].mxu0  ;;  %v2226_v48 = vpop.permute.xlu0 %2225 }
 0x4ad   :  { %v3523_v60 = vpop.f32.mrb[7].mxu0 }
 0x4ae   :  { %v3602_v2 = vpop.f32.mrb[6].mxu1  ;;  %v2485_v13 = vadd.f32 %v3601_v41, %v2340_v10  ;;  %v3524_v40 = vadd.f32 %v3523_v60, %v3522_v57  ;;  %v4155_v63 = vpack.c.bf16 %v2554_v37, %v2553_v36 }
 0x4af   :  { %v3603_v33 = vpop.f32.mrb[7].mxu1 }
 0x4b0   :  { %v3604_v16 = vadd.f32 %v3603_v33, %v3602_v2  ;;  %v2345_v6 = vadd.f32 %v3524_v40, %v2201_v26  ;;  %v3525_v27 = vpop.f32.mrb[8].mxu0  ;;  %4156 = vmatprep.subr.bf16.mxu0 %v4155_v63  ;;  %v2555_v59 = vmax.f32 %v2485_v13, 0.0 }
 0x4b1   :  { %v3526_v46 = vpop.f32.mrb[9].mxu0  ;;  %4158 = vmatpush3.bf16.msra.mxu0 %v4155_v63  ;;  %v2231_v63 = vpop.permute.xlu1 %2230 }
 0x4b2   :  { %v3605_v58 = vpop.f32.mrb[8].mxu1  ;;  %v2490_v18 = vadd.f32 %v3604_v16, %v2345_v6  ;;  %v3527_v22 = vadd.f32 %v3526_v46, %v3525_v27 }
 0x4b3   :  { %v3606_v56 = vpop.f32.mrb[9].mxu1 }
 0x4b4   :  { %v3607_v39 = vadd.f32 %v3606_v56, %v3605_v58  ;;  %v2556_v35 = vmax.f32 %v2490_v18, 0.0  ;;  %v2350_v34 = vadd.f32 %v3527_v22, %v2206_v23  ;;  %v3528_v47 = vpop.f32.mrb[10].mxu0  ;;  %v2236_v56 = vpop.permute.xlu0 %2235 }
 0x4b5   :  { %v3529_v28 = vpop.f32.mrb[11].mxu0 }
 0x4b6   :  { %v3608_v7 = vpop.f32.mrb[10].mxu1  ;;  %v2495_v20 = vadd.f32 %v3607_v39, %v2350_v34  ;;  %v3530_v14 = vadd.f32 %v3529_v28, %v3528_v47  ;;  %v4159_v45 = vpack.c.bf16 %v2556_v35, %v2555_v59 }
 0x4b7   :  { %v3609_v21 = vpop.f32.mrb[11].mxu1 }
 0x4b8   :  { %v3610_v54 = vadd.f32 %v3609_v21, %v3608_v7  ;;  %v2355_v19 = vadd.f32 %v3530_v14, %v2211_v17  ;;  %v3531_v61 = vpop.f32.mrb[12].mxu0  ;;  %4160 = vmatprep.subr.bf16.mxu0 %v4159_v45  ;;  %v2557_v4 = vmax.f32 %v2495_v20, 0.0 }
 0x4b9   :  { %v3532_v31 = vpop.f32.mrb[13].mxu0  ;;  %4162 = vmatpush3.bf16.msra.mxu0 %v4159_v45  ;;  %v2241_v45 = vpop.permute.xlu1 %2240 }
 0x4ba   :  { %v3611_v1 = vpop.f32.mrb[12].mxu1  ;;  %v2500_v30 = vadd.f32 %v3610_v54, %v2355_v19  ;;  %v3533_v42 = vadd.f32 %v3532_v31, %v3531_v61 }
 0x4bb   :  { %v3612_v52 = vpop.f32.mrb[13].mxu1 }
 0x4bc   :  { %v3613_v32 = vadd.f32 %v3612_v52, %v3611_v1  ;;  %v2558_v11 = vmax.f32 %v2500_v30, 0.0  ;;  %v2360_v0 = vadd.f32 %v3533_v42, %v2216_v8  ;;  %v3534_v43 = vpop.f32.mrb[14].mxu0  ;;  %v2246_v52 = vpop.permute.xlu0 %2245 }
 0x4bd   :  { %v3535_v3 = vpop.f32.mrb[15].mxu0 }
 0x4be   :  { %v3614_v24 = vpop.f32.mrb[14].mxu1  ;;  %v2505_v25 = vadd.f32 %v3613_v32, %v2360_v0  ;;  %v3536_v9 = vadd.f32 %v3535_v3, %v3534_v43  ;;  %v4163_v49 = vpack.c.bf16 %v2558_v11, %v2557_v4 }
 0x4bf   :  { %v3615_v29 = vpop.f32.mrb[15].mxu1 }
 0x4c0   :  { %v3616_v15 = vadd.f32 %v3615_v29, %v3614_v24  ;;  %v2365_v44 = vadd.f32 %v3536_v9, %v2221_v51  ;;  %v3537_v62 = vpop.f32.mrb[16].mxu0  ;;  %4164 = vmatprep.subr.bf16.mxu0 %v4163_v49  ;;  %v2559_v41 = vmax.f32 %v2505_v25, 0.0 }
 0x4c1   :  { %v3538_v12 = vpop.f32.mrb[17].mxu0  ;;  %4166 = vmatpush3.bf16.msra.mxu0 %v4163_v49  ;;  %v2251_v49 = vpop.permute.xlu1 %2250 }
 0x4c2   :  { %v3617_v5 = vpop.f32.mrb[16].mxu1  ;;  %v2510_v38 = vadd.f32 %v3616_v15, %v2365_v44  ;;  %v3539_v50 = vadd.f32 %v3538_v12, %v3537_v62 }
 0x4c3   :  { %v3618_v55 = vpop.f32.mrb[17].mxu1 }
 0x4c4   :  { %v3619_v53 = vadd.f32 %v3618_v55, %v3617_v5  ;;  %v2560_v36 = vmax.f32 %v2510_v38, 0.0  ;;  %v2370_v37 = vadd.f32 %v3539_v50, %v2226_v48  ;;  %v3540_v10 = vpop.f32.mrb[18].mxu0  ;;  %v2256_v55 = vpop.permute.xlu0 %2255 }
 0x4c5   :  { %v3541_v57 = vpop.f32.mrb[19].mxu0 }
 0x4c6   :  { %v3620_v60 = vpop.f32.mrb[18].mxu1  ;;  %v2515_v2 = vadd.f32 %v3619_v53, %v2370_v37  ;;  %v3542_v13 = vadd.f32 %v3541_v57, %v3540_v10  ;;  %v4167_v33 = vpack.c.bf16 %v2560_v36, %v2559_v41 }
 0x4c7   :  { %v3621_v40 = vpop.f32.mrb[19].mxu1 }
 0x4c8   :  { %v3622_v26 = vadd.f32 %v3621_v40, %v3620_v60  ;;  %v2375_v16 = vadd.f32 %v3542_v13, %v2231_v63  ;;  %v3543_v6 = vpop.f32.mrb[20].mxu0  ;;  %4168 = vmatprep.subr.bf16.mxu0 %v4167_v33  ;;  %v2561_v39 = vmax.f32 %v2515_v2, 0.0 }
 0x4c9   :  { %v3544_v27 = vpop.f32.mrb[21].mxu0  ;;  %4170 = vmatpush3.bf16.msra.mxu0 %v4167_v33  ;;  %v2261_v33 = vpop.permute.xlu1 %2260 }
 0x4ca   :  { %v3623_v46 = vpop.f32.mrb[20].mxu1  ;;  %v2520_v58 = vadd.f32 %v3622_v26, %v2375_v16  ;;  %v3545_v18 = vadd.f32 %v3544_v27, %v3543_v6 }
 0x4cb   :  { %v3624_v22 = vpop.f32.mrb[21].mxu1 }
 0x4cc   :  { %v3625_v23 = vadd.f32 %v3624_v22, %v3623_v46  ;;  %v2562_v59 = vmax.f32 %v2520_v58, 0.0  ;;  %v2380_v35 = vadd.f32 %v3545_v18, %v2236_v56  ;;  %v3546_v34 = vpop.f32.mrb[22].mxu0  ;;  %v2570_v58 = vld [vmem:[%s7118_s5 + $0x8] sm:$0xff]  ;;  %v2571_v18 = vld [vmem:[%s7118_s5 + $0x10] sm:$0xff]  ;;  %v2572_v22 = vld [vmem:[%s7118_s5 + $0x18] sm:$0xff] }
 0x4cd   :  { %v3547_v47 = vpop.f32.mrb[23].mxu0  ;;  %v2573_v56 = vld [vmem:[%s7118_s5 + $0x20] sm:$0xff] }
 0x4ce   :  { %v3626_v28 = vpop.f32.mrb[22].mxu1  ;;  %v2525_v7 = vadd.f32 %v3625_v23, %v2380_v35  ;;  %v3548_v20 = vadd.f32 %v3547_v47, %v3546_v34  ;;  %v4171_v21 = vpack.c.bf16 %v2562_v59, %v2561_v39  ;;  %v2574_v23 = vld [vmem:[%s7118_s5 + $0x28] sm:$0xff]  ;;  %v2575_v39 = vld [vmem:[%s7118_s5 + $0x30] sm:$0xff]  ;;  %v2576_v59 = vld [vmem:[%s7118_s5 + $0x38] sm:$0xff] }
 0x4cf   :  { %v3627_v14 = vpop.f32.mrb[23].mxu1  ;;  %v2577_v35 = vld [vmem:[%s7118_s5 + $0x40] sm:$0xff]  ;;  %v2578_v34 = vld [vmem:[%s7118_s5 + $0x48] sm:$0xff]  ;;  %v2579_v47 = vld [vmem:[%s7118_s5 + $0x50] sm:$0xff] }
 0x4d0   :  { %v3628_v17 = vadd.f32 %v3627_v14, %v3626_v28  ;;  %v2385_v54 = vadd.f32 %v3548_v20, %v2241_v45  ;;  %v3549_v19 = vpop.f32.mrb[24].mxu0  ;;  %4172 = vmatprep.subr.bf16.mxu0 %v4171_v21  ;;  %v2563_v32 = vmax.f32 %v2525_v7, 0.0  ;;  %v2580_v28 = vld [vmem:[%s7118_s5 + $0x58] sm:$0xff]  ;;  %v2581_v7 = vld [vmem:[%s7118_s5 + $0x60] sm:$0xff]  ;;  %v2582_v20 = vld [vmem:[%s7118_s5 + $0x68] sm:$0xff] }
 0x4d1   :  { %v3550_v61 = vpop.f32.mrb[25].mxu0  ;;  %4174 = vmatpush3.bf16.msra.mxu0 %v4171_v21  ;;  %v2583_v14 = vld [vmem:[%s7118_s5 + $0x70] sm:$0xff]  ;;  %v2584_v21 = vld [vmem:[%s7118_s5 + $0x78] sm:$0xff]  ;;  %v2842_v45 = vld [vmem:[%s7120_s7] sm:$0xff] }
 0x4d2   :  { %v3629_v31 = vpop.f32.mrb[24].mxu1  ;;  %v2530_v1 = vadd.f32 %v3628_v17, %v2385_v54  ;;  %v3551_v30 = vadd.f32 %v3550_v61, %v3549_v19  ;;  %3864 = vmatprep.mubr.f32.mxu1 %v2842_v45  ;;  %v2609_v17 = vpop.permute.xlu1 %2608 }
 0x4d3   :  { %v3630_v42 = vpop.f32.mrb[25].mxu1  ;;  %v2604_v54 = vpop.permute.xlu0 %2603 }
 0x4d4   :  { %v3631_v8 = vadd.f32 %v3630_v42, %v3629_v31  ;;  %v2564_v4 = vmax.f32 %v2530_v1, 0.0  ;;  %v2390_v11 = vadd.f32 %v3551_v30, %v2246_v52  ;;  %v3552_v0 = vpop.f32.mrb[26].mxu0 }
 0x4d5   :  { %v3553_v43 = vpop.f32.mrb[27].mxu0 }
 0x4d6   :  { %v3632_v3 = vpop.f32.mrb[26].mxu1  ;;  %v2535_v24 = vadd.f32 %v3631_v8, %v2390_v11  ;;  %v3554_v25 = vadd.f32 %v3553_v43, %v3552_v0  ;;  %v4175_v29 = vpack.c.bf16 %v2564_v4, %v2563_v32  ;;  %v2619_v19 = vpop.permute.xlu1 %2618 }
 0x4d7   :  { %v3633_v9 = vpop.f32.mrb[27].mxu1  ;;  %v2614_v61 = vpop.permute.xlu0 %2613 }
 0x4d8   :  { %v3634_v51 = vadd.f32 %v3633_v9, %v3632_v3  ;;  %v2395_v15 = vadd.f32 %v3554_v25, %v2251_v49  ;;  %v3555_v44 = vpop.f32.mrb[28].mxu0  ;;  %4176 = vmatprep.subr.bf16.mxu0 %v4175_v29  ;;  %v2565_v53 = vmax.f32 %v2535_v24, 0.0 }
 0x4d9   :  { %v3556_v62 = vpop.f32.mrb[29].mxu0  ;;  %4178 = vmatpush3.bf16.msra.mxu0 %v4175_v29 }
 0x4da   :  { %v3635_v12 = vpop.f32.mrb[28].mxu1  ;;  %v2540_v5 = vadd.f32 %v3634_v51, %v2395_v15  ;;  %v3557_v38 = vadd.f32 %v3556_v62, %v3555_v44  ;;  %v2629_v31 = vpop.permute.xlu1 %2628 }
 0x4db   :  { %v3636_v50 = vpop.f32.mrb[29].mxu1  ;;  %v2624_v1 = vpop.permute.xlu0 %2623 }
 0x4dc   :  { %v3637_v48 = vadd.f32 %v3636_v50, %v3635_v12  ;;  %v2566_v41 = vmax.f32 %v2540_v5, 0.0  ;;  %v2400_v36 = vadd.f32 %v3557_v38, %v2256_v55  ;;  %v3558_v37 = vpop.f32.mrb[30].mxu0 }
 0x4dd   :  { %v3559_v10 = vpop.f32.mrb[31].mxu0 }
 0x4de   :  { %v3638_v57 = vpop.f32.mrb[30].mxu1  ;;  %v2545_v60 = vadd.f32 %v3637_v48, %v2400_v36  ;;  %v3560_v2 = vadd.f32 %v3559_v10, %v3558_v37  ;;  %v4179_v40 = vpack.c.bf16 %v2566_v41, %v2565_v53  ;;  %v2639_v4 = vpop.permute.xlu1 %2638 }
 0x4df   :  { %v3639_v13 = vpop.f32.mrb[31].mxu1  ;;  %v2634_v43 = vpop.permute.xlu0 %2633 }
 0x4e0   :  { %v3640_v63 = vadd.f32 %v3639_v13, %v3638_v57  ;;  %v2405_v26 = vadd.f32 %v3560_v2, %v2261_v33  ;;  %4180 = vmatprep.subr.bf16.mxu0 %v4179_v40  ;;  %v2567_v6 = vmax.f32 %v2545_v60, 0.0 }
 0x4e1   :  { %4182 = vmatpush3.bf16.msra.mxu0 %v4179_v40 }
 0x4e2   :  { %v2550_v16 = vadd.f32 %v3640_v63, %v2405_v26  ;;  %v2649_v62 = vpop.permute.xlu1 %2648 }
 0x4e3   :  { %v2644_v38 = vpop.permute.xlu0 %2643 }
 0x4e4   :  { %v2568_v27 = vmax.f32 %v2550_v16, 0.0 }
 0x4e6   :  { %v4183_v46 = vpack.c.bf16 %v2568_v27, %v2567_v6  ;;  %v2659_v57 = vpop.permute.xlu1 %2658 }
 0x4e7   :  { %v2654_v13 = vpop.permute.xlu0 %2653 }
 0x4e8   :  { %4184 = vmatprep.subr.bf16.mxu0 %v4183_v46 }
 0x4e9   :  { %4186 = vmatpush3.bf16.msra.mxu0 %v4183_v46 }
 0x4ec   :  { %3809 = vmatmul.mubr.f32.vlgmr.msra.gmra.mrb[32].mxu0 %v2570_v58 }
 0x4ed   :  { %3811 = vmatprep.mubr.f32.mxu0 %v2571_v18  ;;  %v2669_v18 = vpop.permute.xlu1 %2668 }
 0x4f0   :  { %3812 = vmatmul.mubr.f32.gmra.mrb[34].mxu0 %v2572_v22 }
 0x4f1   :  { %3814 = vmatprep.mubr.f32.mxu0 %v2573_v56 }
 0x4f4   :  { %3815 = vmatmul.mubr.f32.gmra.mrb[36].mxu0 %v2574_v23  ;;  %v2664_v23 = vpop.permute.xlu0 %2663 }
 0x4f5   :  { %3817 = vmatprep.mubr.f32.mxu0 %v2575_v39 }
 0x4f8   :  { %3818 = vmatmul.mubr.f32.gmra.mrb[38].mxu0 %v2576_v59 }
 0x4f9   :  { %3820 = vmatprep.mubr.f32.mxu0 %v2577_v35 }
 0x4fc   :  { %3821 = vmatmul.mubr.f32.gmra.mrb[40].mxu0 %v2578_v34 }
 0x4fd   :  { %3823 = vmatprep.mubr.f32.mxu0 %v2579_v47 }
 0x500   :  { %3824 = vmatmul.mubr.f32.gmra.mrb[42].mxu0 %v2580_v28 }
 0x501   :  { %3826 = vmatprep.mubr.f32.mxu0 %v2581_v7 }
 0x504   :  { %3827 = vmatmul.mubr.f32.gmra.mrb[44].mxu0 %v2582_v20 }
 0x505   :  { %3829 = vmatprep.mubr.f32.mxu0 %v2583_v14  ;;  %v2679_v14 = vpop.permute.xlu1 %2678 }
 0x508   :  { %3830 = vmatmul.mubr.f32.gmra.mrb[46].mxu0 %v2584_v21 }
 0x5bf   :  { %v3810_v30 = vpop.f32.mrb[32].mxu0 }
 0x5c0   :  { %v2753_v42 = vadd.f32 %v3810_v30, %v2609_v17  ;;  %v2747_v52 = vpop.f32.mrb[33].mxu0  ;;  %v2674_v17 = vpop.permute.xlu0 %2673 }
 0x5c1   :  { %v2748_v8 = vadd.f32 %v2747_v52, %v2604_v54  ;;  %v2843_v52 = vld [vmem:[%s7120_s7 + $0x8] sm:$0xff] }
 0x5c2   :  { %v2827_v32 = vmax.f32 %v2753_v42, 0.0 }
 0x5c3   :  { %v2826_v11 = vmax.f32 %v2748_v8, 0.0  ;;  %v3813_v0 = vpop.f32.mrb[34].mxu0  ;;  %v2844_v8 = vld [vmem:[%s7120_s7 + $0x10] sm:$0xff] }
 0x5c4   :  { %v2763_v3 = vadd.f32 %v3813_v0, %v2619_v19  ;;  %v2757_v24 = vpop.f32.mrb[35].mxu0  ;;  %v2848_v0 = vld [vmem:[%s7120_s7 + $0x30] sm:$0xff] }
 0x5c5   :  { %v4187_v25 = vpack.c.bf16 %v2827_v32, %v2826_v11  ;;  %v2758_v9 = vadd.f32 %v2757_v24, %v2614_v61  ;;  %v2845_v32 = vld [vmem:[%s7120_s7 + $0x18] sm:$0xff]  ;;  %v2847_v11 = vld [vmem:[%s7120_s7 + $0x28] sm:$0xff] }
 0x5c6   :  { %v2829_v29 = vmax.f32 %v2763_v3, 0.0  ;;  %v2850_v3 = vld [vmem:[%s7120_s7 + $0x40] sm:$0xff]  ;;  %v2851_v24 = vld [vmem:[%s7120_s7 + $0x48] sm:$0xff] }
 0x5c7   :  { %v2828_v49 = vmax.f32 %v2758_v9, 0.0  ;;  %v3816_v51 = vpop.f32.mrb[36].mxu0  ;;  %4188 = vmatprep.subr.bf16.mxu1 %v4187_v25  ;;  %v2853_v9 = vld [vmem:[%s7120_s7 + $0x58] sm:$0xff] }
 0x5c8   :  { %v2773_v15 = vadd.f32 %v3816_v51, %v2629_v31  ;;  %v2767_v44 = vpop.f32.mrb[37].mxu0  ;;  %4190 = vmatpush3.bf16.msra.mxu1 %v4187_v25  ;;  %v2852_v25 = vld [vmem:[%s7120_s7 + $0x50] sm:$0xff] }
 0x5c9   :  { %v4191_v12 = vpack.c.bf16 %v2829_v29, %v2828_v49  ;;  %v2768_v5 = vadd.f32 %v2767_v44, %v2624_v1  ;;  %v2854_v29 = vld [vmem:[%s7120_s7 + $0x60] sm:$0xff]  ;;  %v2855_v49 = vld [vmem:[%s7120_s7 + $0x68] sm:$0xff]  ;;  %v2856_v51 = vld [vmem:[%s7120_s7 + $0x70] sm:$0xff]  ;;  %v2882_v44 = vpop.permute.xlu1 %2881 }
 0x5ca   :  { %v2831_v50 = vmax.f32 %v2773_v15, 0.0  ;;  %v2857_v15 = vld [vmem:[%s7120_s7 + $0x78] sm:$0xff] }
 0x5cb   :  { %v2830_v55 = vmax.f32 %v2768_v5, 0.0  ;;  %v3819_v48 = vpop.f32.mrb[38].mxu0  ;;  %4192 = vmatprep.subr.bf16.mxu1 %v4191_v12 }
 0x5cc   :  { %v2783_v53 = vadd.f32 %v3819_v48, %v2639_v4  ;;  %v2777_v41 = vpop.f32.mrb[39].mxu0  ;;  %4194 = vmatpush3.bf16.msra.mxu1 %v4191_v12  ;;  %v2846_v4 = vld [vmem:[%s7120_s7 + $0x20] sm:$0xff] }
 0x5cd   :  { %v4195_v36 = vpack.c.bf16 %v2831_v50, %v2830_v55  ;;  %v2778_v37 = vadd.f32 %v2777_v41, %v2634_v43  ;;  %v2849_v43 = vld [vmem:[%s7120_s7 + $0x38] sm:$0xff]  ;;  %v2892_v12 = vpop.permute.xlu1 %2891 }
 0x5ce   :  { %v2833_v10 = vmax.f32 %v2783_v53, 0.0 }
 0x5cf   :  { %v2832_v60 = vmax.f32 %v2778_v37, 0.0  ;;  %v3822_v2 = vpop.f32.mrb[40].mxu0  ;;  %4196 = vmatprep.subr.bf16.mxu1 %v4195_v36 }
 0x5d0   :  { %v2793_v40 = vadd.f32 %v3822_v2, %v2649_v62  ;;  %v2787_v33 = vpop.f32.mrb[41].mxu0  ;;  %4198 = vmatpush3.bf16.msra.mxu1 %v4195_v36  ;;  %v2877_v62 = vpop.permute.xlu0 %2876 }
 0x5d1   :  { %v4199_v63 = vpack.c.bf16 %v2833_v10, %v2832_v60  ;;  %v2788_v26 = vadd.f32 %v2787_v33, %v2644_v38  ;;  %v2902_v38 = vpop.permute.xlu1 %2901 }
 0x5d2   :  { %v2835_v16 = vmax.f32 %v2793_v40, 0.0 }
 0x5d3   :  { %v2834_v6 = vmax.f32 %v2788_v26, 0.0  ;;  %v3825_v27 = vpop.f32.mrb[42].mxu0  ;;  %4200 = vmatprep.subr.bf16.mxu1 %v4199_v63 }
 0x5d4   :  { %v2803_v46 = vadd.f32 %v3825_v27, %v2659_v57  ;;  %v2797_v58 = vpop.f32.mrb[43].mxu0  ;;  %4202 = vmatpush3.bf16.msra.mxu1 %v4199_v63  ;;  %v2887_v5 = vpop.permute.xlu0 %2886 }
 0x5d5   :  { %v4203_v22 = vpack.c.bf16 %v2835_v16, %v2834_v6  ;;  %v2798_v56 = vadd.f32 %v2797_v58, %v2654_v13  ;;  %v2912_v36 = vpop.permute.xlu1 %2911 }
 0x5d6   :  { %v2837_v39 = vmax.f32 %v2803_v46, 0.0 }
 0x5d7   :  { %v2836_v59 = vmax.f32 %v2798_v56, 0.0  ;;  %v3828_v35 = vpop.f32.mrb[44].mxu0  ;;  %4204 = vmatprep.subr.bf16.mxu1 %v4203_v22 }
 0x5d8   :  { %v2813_v34 = vadd.f32 %v3828_v35, %v2669_v18  ;;  %v2807_v47 = vpop.f32.mrb[45].mxu0  ;;  %4206 = vmatpush3.bf16.msra.mxu1 %v4203_v22  ;;  %v2897_v50 = vpop.permute.xlu0 %2896 }
 0x5d9   :  { %v4207_v28 = vpack.c.bf16 %v2837_v39, %v2836_v59  ;;  %v2808_v7 = vadd.f32 %v2807_v47, %v2664_v23  ;;  %v2922_v63 = vpop.permute.xlu1 %2921 }
 0x5da   :  { %v2839_v20 = vmax.f32 %v2813_v34, 0.0 }
 0x5db   :  { %v2838_v21 = vmax.f32 %v2808_v7, 0.0  ;;  %v3831_v45 = vpop.f32.mrb[46].mxu0  ;;  %4208 = vmatprep.subr.bf16.mxu1 %v4207_v28 }
 0x5dc   :  { %v2823_v54 = vadd.f32 %v3831_v45, %v2679_v14  ;;  %v2817_v19 = vpop.f32.mrb[47].mxu0  ;;  %4210 = vmatpush3.bf16.msra.mxu1 %v4207_v28  ;;  %v2907_v10 = vpop.permute.xlu0 %2906 }
 0x5dd   :  { %v4211_v61 = vpack.c.bf16 %v2839_v20, %v2838_v21  ;;  %v2818_v31 = vadd.f32 %v2817_v19, %v2674_v17  ;;  %v2932_v18 = vpop.permute.xlu1 %2931 }
 0x5de   :  { %v2841_v1 = vmax.f32 %v2823_v54, 0.0 }
 0x5df   :  { %v2840_v30 = vmax.f32 %v2818_v31, 0.0  ;;  %4212 = vmatprep.subr.bf16.mxu1 %v4211_v61 }
 0x5e0   :  { %4214 = vmatpush3.bf16.msra.mxu1 %v4211_v61  ;;  %v2917_v16 = vpop.permute.xlu0 %2916 }
 0x5e1   :  { %v4215_v42 = vpack.c.bf16 %v2841_v1, %v2840_v30  ;;  %v2942_v28 = vpop.permute.xlu1 %2941 }
 0x5e3   :  { %4216 = vmatprep.subr.bf16.mxu1 %v4215_v42 }
 0x5e4   :  { %4218 = vmatpush3.bf16.msra.mxu1 %v4215_v42  ;;  %v2927_v56 = vpop.permute.xlu0 %2926 }
 0x5e5   :  { %v2952_v54 = vpop.permute.xlu1 %2951 }
 0x5e7   :  { %3865 = vmatmul.mubr.f32.vlgmr.msra.gmra.mrb[32].mxu1 %v2843_v52 }
 0x5e8   :  { %3867 = vmatprep.mubr.f32.mxu1 %v2844_v8  ;;  %v2937_v20 = vpop.permute.xlu0 %2936 }
 0x5eb   :  { %3868 = vmatmul.mubr.f32.gmra.mrb[34].mxu1 %v2845_v32 }
 0x5ec   :  { %3870 = vmatprep.mubr.f32.mxu1 %v2846_v4  ;;  %v2947_v61 = vpop.permute.xlu0 %2946 }
 0x5ef   :  { %3871 = vmatmul.mubr.f32.gmra.mrb[36].mxu1 %v2847_v11 }
 0x5f0   :  { %3873 = vmatprep.mubr.f32.mxu1 %v2848_v0 }
 0x5f3   :  { %3874 = vmatmul.mubr.f32.gmra.mrb[38].mxu1 %v2849_v43 }
 0x5f4   :  { %3876 = vmatprep.mubr.f32.mxu1 %v2850_v3 }
 0x5f7   :  { %3877 = vmatmul.mubr.f32.gmra.mrb[40].mxu1 %v2851_v24 }
 0x5f8   :  { %3879 = vmatprep.mubr.f32.mxu1 %v2852_v25 }
 0x5fb   :  { %3880 = vmatmul.mubr.f32.gmra.mrb[42].mxu1 %v2853_v9 }
 0x5fc   :  { %3882 = vmatprep.mubr.f32.mxu1 %v2854_v29 }
 0x5ff   :  { %3883 = vmatmul.mubr.f32.gmra.mrb[44].mxu1 %v2855_v49 }
 0x600   :  { %3885 = vmatprep.mubr.f32.mxu1 %v2856_v51 }
 0x603   :  { %3886 = vmatmul.mubr.f32.gmra.mrb[46].mxu1 %v2857_v15 }
 0x6ba   :  { %v3866_v55 = vpop.f32.mrb[32].mxu1 }
 0x6bb   :  { %v3026_v48 = vadd.f32 %v3866_v55, %v2882_v44  ;;  %v3020_v53 = vpop.f32.mrb[33].mxu1 }
 0x6bc   :  { %v3021_v41 = vadd.f32 %v3020_v53, %v2877_v62 }
 0x6bd   :  { %3100 = vst [vmem:[%s7127_s14 + $0x8] sm:$0xff] %v3026_v48 }
 0x6be   :  { %3099 = vst [vmem:[%s7127_s14] sm:$0xff] %v3021_v41  ;;  %v3869_v37 = vpop.f32.mrb[34].mxu1 }
 0x6bf   :  { %v3036_v57 = vadd.f32 %v3869_v37, %v2892_v12  ;;  %v3030_v60 = vpop.f32.mrb[35].mxu1 }
 0x6c0   :  { %v3031_v2 = vadd.f32 %v3030_v60, %v2887_v5 }
 0x6c1   :  { %3102 = vst [vmem:[%s7127_s14 + $0x18] sm:$0xff] %v3036_v57 }
 0x6c2   :  { %3101 = vst [vmem:[%s7127_s14 + $0x10] sm:$0xff] %v3031_v2  ;;  %v3872_v13 = vpop.f32.mrb[36].mxu1 }
 0x6c3   :  { %v3046_v40 = vadd.f32 %v3872_v13, %v2902_v38  ;;  %v3040_v33 = vpop.f32.mrb[37].mxu1 }
 0x6c4   :  { %v3041_v26 = vadd.f32 %v3040_v33, %v2897_v50 }
 0x6c5   :  { %3104 = vst [vmem:[%s7127_s14 + $0x28] sm:$0xff] %v3046_v40 }
 0x6c6   :  { %3103 = vst [vmem:[%s7127_s14 + $0x20] sm:$0xff] %v3041_v26  ;;  %v3875_v6 = vpop.f32.mrb[38].mxu1 }
 0x6c7   :  { %v3056_v27 = vadd.f32 %v3875_v6, %v2912_v36  ;;  %v3050_v46 = vpop.f32.mrb[39].mxu1 }
 0x6c8   :  { %v3051_v58 = vadd.f32 %v3050_v46, %v2907_v10 }
 0x6c9   :  { %3106 = vst [vmem:[%s7127_s14 + $0x38] sm:$0xff] %v3056_v27 }
 0x6ca   :  { %3105 = vst [vmem:[%s7127_s14 + $0x30] sm:$0xff] %v3051_v58  ;;  %v3878_v22 = vpop.f32.mrb[40].mxu1 }
 0x6cb   :  { %v3066_v23 = vadd.f32 %v3878_v22, %v2922_v63  ;;  %v3060_v39 = vpop.f32.mrb[41].mxu1 }
 0x6cc   :  { %v3061_v59 = vadd.f32 %v3060_v39, %v2917_v16 }
 0x6cd   :  { %3108 = vst [vmem:[%s7127_s14 + $0x48] sm:$0xff] %v3066_v23 }
 0x6ce   :  { %3107 = vst [vmem:[%s7127_s14 + $0x40] sm:$0xff] %v3061_v59  ;;  %v3881_v35 = vpop.f32.mrb[42].mxu1 }
 0x6cf   :  { %v3076_v34 = vadd.f32 %v3881_v35, %v2932_v18  ;;  %v3070_v47 = vpop.f32.mrb[43].mxu1 }
 0x6d0   :  { %v3071_v7 = vadd.f32 %v3070_v47, %v2927_v56 }
 0x6d1   :  { %3110 = vst [vmem:[%s7127_s14 + $0x58] sm:$0xff] %v3076_v34 }
 0x6d2   :  { %3109 = vst [vmem:[%s7127_s14 + $0x50] sm:$0xff] %v3071_v7  ;;  %v3884_v14 = vpop.f32.mrb[44].mxu1 }
 0x6d3   :  { %v3086_v21 = vadd.f32 %v3884_v14, %v2942_v28  ;;  %v3080_v45 = vpop.f32.mrb[45].mxu1 }
 0x6d4   :  { %v3081_v17 = vadd.f32 %v3080_v45, %v2937_v20 }
 0x6d5   :  { %3112 = vst [vmem:[%s7127_s14 + $0x68] sm:$0xff] %v3086_v21 }
 0x6d6   :  { %3111 = vst [vmem:[%s7127_s14 + $0x60] sm:$0xff] %v3081_v17  ;;  %v3887_v19 = vpop.f32.mrb[46].mxu1 }
 0x6d7   :  { %v3096_v31 = vadd.f32 %v3887_v19, %v2952_v54  ;;  %v3090_v1 = vpop.f32.mrb[47].mxu1 }
 0x6d8   :  { %v3091_v30 = vadd.f32 %v3090_v1, %v2947_v61 }
 0x6d9   :  { %3114 = vst [vmem:[%s7127_s14 + $0x78] sm:$0xff] %v3096_v31 }
 0x6da   :  { %3113 = vst [vmem:[%s7127_s14 + $0x70] sm:$0xff] %v3091_v30 }
 0x6db   :  { %3119 = vsyncpa [#allocation6], 1 }
 0x6dc   :  { %3120 = vsyncpa [#allocation8], 1 }
 0x6dd   :  { %3121 = vsyncpa [#allocation11], 1 }

</bundles_post_ra>
